<compile_context>
chip_gen: v7x
topology: tpu7x:2x2x1
jax: 0.10.0
libtpu: 0.0.40
codegen_flags: <defaults>
</compile_context>

<pallas_src>
import functools
import math

import jax
import jax.numpy as jnp
from jax.experimental import pallas as pl
from jax.experimental.pallas import tpu as pltpu

LN_EPS = 1e-5                      # RoBERTa layer_norm_eps
COS_EPS = 1e-8                     # torch.nn.CosineSimilarity default eps (self.cosine)
PAD_IDX = 1                        # RoBERTa padding token id (drives position ids)
NEG_INF = jnp.finfo(jnp.float32).min


# ----------------------------- in-kernel helpers -----------------------------

def _layer_norm(x, gamma, beta):
    mu = jnp.mean(x, axis=-1, keepdims=True)
    var = jnp.mean(jnp.square(x - mu), axis=-1, keepdims=True)
    return (x - mu) * jax.lax.rsqrt(var + LN_EPS) * gamma + beta


def _gelu(x):
    # TODO(synk): HF RoBERTa uses exact erf-GELU; tanh approximation used here (EUP path).
    c = math.sqrt(2.0 / math.pi)
    return 0.5 * x * (1.0 + jnp.tanh(c * (x + 0.044715 * x * x * x)))


# --------------------------------- kernel ------------------------------------

def _encoder_kernel(n_heads, ffn_chunk,
                    x_ref, bias_ref, eg_ref, eb_ref,
                    wq_ref, bq_ref, wk_ref, bk_ref, wv_ref, bv_ref,
                    wo_ref, bo_ref, ln1g_ref, ln1b_ref,
                    w1_ref, b1_ref, w2_ref, b2_ref, ln2g_ref, ln2b_ref,
                    cls_ref,
                    hid_ref, ctx_ref):
    """One grid step = one transformer layer applied to one batch tile.

    Grid = (batch_tiles, layers).  The hidden state lives in the persistent VMEM
    scratch `hid_ref` and carries from layer l to layer l+1 (layer axis is innermost);
    only the CLS row is written to HBM at the last layer.
    """
    layer = pl.program_id(1)
    last_layer = pl.num_programs(1) - 1

    @pl.when(layer == 0)
    def _():
        # Fused embedding LayerNorm: initialize the resident hidden state (f32 math).
        hid_ref[...] = _layer_norm(x_ref[...].astype(jnp.float32),
                                   eg_ref[...], eb_ref[...])

    x = hid_ref[...]                                 # (Bt, S, H) f32, VMEM-resident
    Bt, S, H = x.shape
    dh = H // n_heads
    scale = 1.0 / math.sqrt(dh)

    # ---- fused QKV projections (bf16 MXU operands, f32 accumulation) ----
    xb = x.astype(jnp.bfloat16).reshape(Bt * S, H)
    q = (jnp.dot(xb, wq_ref[...], preferred_element_type=jnp.float32)
         + bq_ref[...]).astype(jnp.bfloat16).reshape(Bt, S, H)
    k = (jnp.dot(xb, wk_ref[...], preferred_element_type=jnp.float32)
         + bk_ref[...]).astype(jnp.bfloat16).reshape(Bt, S, H)
    v = (jnp.dot(xb, wv_ref[...], preferred_element_type=jnp.float32)
         + bv_ref[...]).astype(jnp.bfloat16).reshape(Bt, S, H)

    # Additive attention mask: (Bt, 1, S) broadcasts implicitly in the score add
    # (no materialized (Bt, S, S) bias).
    bias = bias_ref[...]

    # ---- multi-head attention: per-head ctx written straight into VMEM scratch ----
    for h in range(n_heads):                         # static loop; dh=128 in the demo
        sl = slice(h * dh, (h + 1) * dh)
        s = jnp.einsum('bqd,bkd->bqk', q[:, :, sl], k[:, :, sl],
                       preferred_element_type=jnp.float32) * scale + bias
        s = s - jnp.max(s, axis=-1, keepdims=True)
        p = jnp.exp(s)
        p = p * pl.reciprocal(jnp.sum(p, axis=-1, keepdims=True), approx=True)
        ctx_ref[:, :, sl] = jnp.einsum('bqk,bkd->bqd',
                                       p.astype(jnp.bfloat16), v[:, :, sl],
                                       preferred_element_type=jnp.float32)

    # Single full-width output projection.
    attn = (jnp.dot(ctx_ref[...].astype(jnp.bfloat16).reshape(Bt * S, H), wo_ref[...],
                    preferred_element_type=jnp.float32)
            + bo_ref[...]).reshape(Bt, S, H)

    h1 = _layer_norm(x + attn, ln1g_ref[...], ln1b_ref[...])

    # ---- FFN, chunked over F: bounds the live f32 intermediate to Bt*S*fc*4 bytes.
    # Slices of the already-resident weight block cost no extra DMA.
    F = w1_ref.shape[-1]
    fc = F if ffn_chunk is None else min(ffn_chunk, F)
    h1b = h1.astype(jnp.bfloat16).reshape(Bt * S, H)
    ff_acc = jnp.zeros((Bt * S, H), jnp.float32)
    for f0 in range(0, F, fc):
        f1 = min(f0 + fc, F)
        g = (jnp.dot(h1b, w1_ref[:, f0:f1], preferred_element_type=jnp.float32)
             + b1_ref[:, f0:f1])
        g = _gelu(g)
        ff_acc = ff_acc + jnp.dot(g.astype(jnp.bfloat16), w2_ref[f0:f1, :],
                                  preferred_element_type=jnp.float32)
    ff = (ff_acc + b2_ref[...]).reshape(Bt, S, H)

    out = _layer_norm(h1 + ff, ln2g_ref[...], ln2b_ref[...])
    hid_ref[...] = out

    @pl.when(layer == last_layer)
    def _():
        cls_ref[...] = out[:, 0:1, :]                # only the CLS row goes back to HBM


# ------------------------------ pallas wrapper --------------------------------

def _vmem_limit_bytes():
    """Per-generation VMEM cap: ~100 MiB on 128-MiB parts, ~56 MiB on v7x's 64 MiB/TC."""
    try:
        cap = int(pltpu.get_tpu_info().vmem_capacity_bytes)
    except Exception:
        cap = 64 * 1024 * 1024
    return max(32 * 1024 * 1024, min(cap - 8 * 1024 * 1024, 100 * 1024 * 1024))


def roberta_encode(params, input_ids, attention_mask, *, n_heads,
                   block_b=None, ffn_chunk=None):
    """Full RoBERTa encoder as ONE gridded pallas_call over (batch_tiles, layers).

    Returns only the CLS hidden states, shape (B, 1, H) float32.
    On v7x pick block_b = B // 2 (nb multiple of 2) so the "parallel" batch axis
    shards across both TensorCores; on v5e/v6e a single big tile maximizes MXU fill.
    """
    B, S = input_ids.shape
    H = params['word_emb'].shape[1]
    L = params['wq'].shape[0]
    if block_b is None:
        block_b = B
    assert B % block_b == 0
    nb = B // block_b

    # Embedding gather + RoBERTa position ids (plain JAX glue); bf16 into the kernel
    # (halves the DMA and the layer-0 input buffer that stays VMEM-resident all L layers).
    not_pad = (input_ids != PAD_IDX).astype(jnp.int32)
    position_ids = jnp.cumsum(not_pad, axis=1) * not_pad + PAD_IDX
    emb = (params['word_emb'][input_ids]
           + params['pos_emb'][position_ids]
           + params['type_emb'][0][None, None, :]).astype(jnp.bfloat16)  # token_type = 0

    # HF-style extended attention mask: (1 - mask) * finfo.min, added pre-softmax.
    bias = (1.0 - attention_mask.astype(jnp.float32))[:, None, :] * NEG_INF  # (B, 1, S)

    def bspec(shape):   # per-batch-tile activations
        return pl.BlockSpec(shape, lambda b, l: (b, 0, 0))

    def cspec(shape):   # grid-constant params (embedding LN)
        return pl.BlockSpec(shape, lambda b, l: (0,) * len(shape))

    def lspec(shape):   # per-layer stacked weights: leading layer axis squeezed
        return pl.BlockSpec((None,) + shape, lambda b, l: (l,) + (0,) * len(shape))

    F = params['w1'].shape[-1]

    in_specs = [
        bspec((block_b, S, H)),            # x_emb (bf16)
        bspec((block_b, 1, S)),            # attention bias (f32)
        cspec((1, H)), cspec((1, H)),      # emb LN gamma / beta
        lspec((H, H)), lspec((1, H)),      # wq, bq
        lspec((H, H)), lspec((1, H)),      # wk, bk
        lspec((H, H)), lspec((1, H)),      # wv, bv
        lspec((H, H)), lspec((1, H)),      # wo, bo
        lspec((1, H)), lspec((1, H)),      # ln1 gamma / beta
        lspec((H, F)), lspec((1, F)),      # w1, b1
        lspec((F, H)), lspec((1, H)),      # w2, b2
        lspec((1, H)), lspec((1, H)),      # ln2 gamma / beta
    ]

    return pl.pallas_call(
        functools.partial(_encoder_kernel, n_heads, ffn_chunk),
        out_shape=jax.ShapeDtypeStruct((B, 1, H), jnp.float32),   # CLS only, lane-dense
        grid=(nb, L),
        in_specs=in_specs,
        out_specs=pl.BlockSpec((block_b, 1, H), lambda b, l: (b, 0, 0)),
        scratch_shapes=[
            pltpu.VMEM((block_b, S, H), jnp.float32),   # resident hidden state
            pltpu.VMEM((block_b, S, H), jnp.float32),   # attention context (per-head slices)
        ],
        compiler_params=pltpu.CompilerParams(
            dimension_semantics=("parallel", "arbitrary"),
            vmem_limit_bytes=_vmem_limit_bytes(),
        ),
    )(emb, bias,
      params['emb_ln_g'], params['emb_ln_b'],
      params['wq'], params['bq'], params['wk'], params['bk'],
      params['wv'], params['bv'], params['wo'], params['bo'],
      params['ln1_g'], params['ln1_b'],
      params['w1'], params['b1'], params['w2'], params['b2'],
      params['ln2_g'], params['ln2_b'])


def cosine_similarity(a, b, eps=COS_EPS):
    # Tiny (B,) reduction: plain JAX (a Pallas call here is launch overhead).
    # torch.nn.CosineSimilarity clamps each norm separately: max(||a||,eps)*max(||b||,eps).
    dot = jnp.sum(a * b, axis=1)
    na = jnp.maximum(jnp.sqrt(jnp.sum(a * a, axis=1)), eps)
    nb = jnp.maximum(jnp.sqrt(jnp.sum(b * b, axis=1)), eps)
    return dot / (na * nb)


# ----------------------------- model (glue in JAX) ----------------------------

def init_params(key, *, vocab, max_pos, hidden, ffn, layers):
    std = 0.02
    ks = jax.random.split(key, 9)

    def w(k, shape):  # bf16 weights in HBM: halves DMA bytes, feeds the MXU natively
        return (jax.random.normal(k, shape, jnp.float32) * std).astype(jnp.bfloat16)

    return dict(
        word_emb=jax.random.normal(ks[0], (vocab, hidden), jnp.float32) * std,
        pos_emb=jax.random.normal(ks[1], (max_pos, hidden), jnp.float32) * std,
        type_emb=jax.random.normal(ks[2], (1, hidden), jnp.float32) * std,
        emb_ln_g=jnp.ones((1, hidden), jnp.float32),
        emb_ln_b=jnp.zeros((1, hidden), jnp.float32),
        # Per-layer weights stacked with a leading layer axis (streamed by BlockSpec).
        wq=w(ks[3], (layers, hidden, hidden)), bq=jnp.zeros((layers, 1, hidden), jnp.float32),
        wk=w(ks[4], (layers, hidden, hidden)), bk=jnp.zeros((layers, 1, hidden), jnp.float32),
        wv=w(ks[5], (layers, hidden, hidden)), bv=jnp.zeros((layers, 1, hidden), jnp.float32),
        wo=w(ks[6], (layers, hidden, hidden)), bo=jnp.zeros((layers, 1, hidden), jnp.float32),
        ln1_g=jnp.ones((layers, 1, hidden), jnp.float32),
        ln1_b=jnp.zeros((layers, 1, hidden), jnp.float32),
        w1=w(ks[7], (layers, hidden, ffn)), b1=jnp.zeros((layers, 1, ffn), jnp.float32),
        w2=w(ks[8], (layers, ffn, hidden)), b2=jnp.zeros((layers, 1, hidden), jnp.float32),
        ln2_g=jnp.ones((layers, 1, hidden), jnp.float32),
        ln2_b=jnp.zeros((layers, 1, hidden), jnp.float32),
    )


def roberta_class_forward(params, input_ids, attention_mask, token_type_ids,
                          input_ids2, attention_mask2, token_type_ids2,
                          *, n_heads, block_b=None, ffn_chunk=None):
    del token_type_ids, token_type_ids2   # torch forward calls l1 without them (type=0)
    B = input_ids.shape[0]
    # Batch the two encoder passes: weights stream once per layer instead of twice.
    ids = jnp.concatenate([input_ids, input_ids2], axis=0)
    mask = jnp.concatenate([attention_mask, attention_mask2], axis=0)
    cls = roberta_encode(params, ids, mask, n_heads=n_heads,
                         block_b=block_b, ffn_chunk=ffn_chunk)[:, 0, :]   # CLS pooling
    cat = cosine_similarity(cls[:B], cls[B:])          # (B,); Identity transform is a no-op
    return cat


# ----------------------------------- main -------------------------------------

if __name__ == "__main__":
    B, S = 2, 16
    HIDDEN, FFN, LAYERS, HEADS = 256, 512, 2, 2        # dh = 128 (lane-aligned head slices)
    VOCAB, MAX_POS = 64, 64

    key = jax.random.PRNGKey(0)
    kp, k1, k2 = jax.random.split(key, 3)
    params = init_params(kp, vocab=VOCAB, max_pos=MAX_POS,
                         hidden=HIDDEN, ffn=FFN, layers=LAYERS)

    input_ids = jax.random.randint(k1, (B, S), 2, VOCAB, dtype=jnp.int32)
    input_ids2 = jax.random.randint(k2, (B, S), 2, VOCAB, dtype=jnp.int32)
    attention_mask = jnp.ones((B, S), jnp.int32)
    attention_mask2 = jnp.ones((B, S), jnp.int32)
    token_type_ids = jnp.zeros((B, S), jnp.int32)
    token_type_ids2 = jnp.zeros((B, S), jnp.int32)

    # block_b=2 -> concatenated batch of 4 splits into 2 tiles (megacore-friendly nb=2).
    fwd = jax.jit(functools.partial(roberta_class_forward, n_heads=HEADS, block_b=2))
    out = fwd(params, input_ids, attention_mask, token_type_ids,
              input_ids2, attention_mask2, token_type_ids2)
    out = jax.block_until_ready(out)
    assert out.shape == (B,) and out.dtype == jnp.float32
    assert bool(jnp.all(jnp.isfinite(out)))
    print("KERNEL_OK")
</pallas_src>

<mosaic_0001>
module attributes {stable_mosaic.version = 11 : i64} {
  func.func @_encoder_kernel(%arg0: i32, %arg1: i32, %arg2: memref<2x16x256xbf16, #tpu.memory_space<vmem>>, %arg3: memref<2x1x16xf32, #tpu.memory_space<vmem>>, %arg4: memref<1x256xf32, #tpu.memory_space<vmem>>, %arg5: memref<1x256xf32, #tpu.memory_space<vmem>>, %arg6: memref<1x256x256xbf16, #tpu.memory_space<vmem>>, %arg7: memref<1x1x256xf32, #tpu.memory_space<vmem>>, %arg8: memref<1x256x256xbf16, #tpu.memory_space<vmem>>, %arg9: memref<1x1x256xf32, #tpu.memory_space<vmem>>, %arg10: memref<1x256x256xbf16, #tpu.memory_space<vmem>>, %arg11: memref<1x1x256xf32, #tpu.memory_space<vmem>>, %arg12: memref<1x256x256xbf16, #tpu.memory_space<vmem>>, %arg13: memref<1x1x256xf32, #tpu.memory_space<vmem>>, %arg14: memref<1x1x256xf32, #tpu.memory_space<vmem>>, %arg15: memref<1x1x256xf32, #tpu.memory_space<vmem>>, %arg16: memref<1x256x512xbf16, #tpu.memory_space<vmem>>, %arg17: memref<1x1x512xf32, #tpu.memory_space<vmem>>, %arg18: memref<1x512x256xbf16, #tpu.memory_space<vmem>>, %arg19: memref<1x1x256xf32, #tpu.memory_space<vmem>>, %arg20: memref<1x1x256xf32, #tpu.memory_space<vmem>>, %arg21: memref<1x1x256xf32, #tpu.memory_space<vmem>>, %arg22: memref<2x1x256xf32, #tpu.memory_space<vmem>>, %arg23: memref<2x16x256xf32, #tpu.memory_space<vmem>>, %arg24: memref<2x16x256xf32, #tpu.memory_space<vmem>>) attributes {dimension_semantics = [#tpu.dimension_semantics<parallel>, #tpu.dimension_semantics<arbitrary>], iteration_bounds = array<i64: 2, 2>, scalar_prefetch = 0 : i64, scratch_operands = 2 : i64, tpu.core_type = #tpu.core_type<tc>, window_params = [{transform_indices = @transform_0, window_bounds = array<i64: 2, 16, 256>}, {transform_indices = @transform_1, window_bounds = array<i64: 2, 1, 16>}, {pipeline_mode = #tpu.pipeline_mode<synchronous>, transform_indices = @transform_2, window_bounds = array<i64: 1, 256>}, {pipeline_mode = #tpu.pipeline_mode<synchronous>, transform_indices = @transform_3, window_bounds = array<i64: 1, 256>}, {transform_indices = @transform_4, window_bounds = array<i64: 1, 256, 256>}, {transform_indices = @transform_5, window_bounds = array<i64: 1, 1, 256>}, {transform_indices = @transform_6, window_bounds = array<i64: 1, 256, 256>}, {transform_indices = @transform_7, window_bounds = array<i64: 1, 1, 256>}, {transform_indices = @transform_8, window_bounds = array<i64: 1, 256, 256>}, {transform_indices = @transform_9, window_bounds = array<i64: 1, 1, 256>}, {transform_indices = @transform_10, window_bounds = array<i64: 1, 256, 256>}, {transform_indices = @transform_11, window_bounds = array<i64: 1, 1, 256>}, {transform_indices = @transform_12, window_bounds = array<i64: 1, 1, 256>}, {transform_indices = @transform_13, window_bounds = array<i64: 1, 1, 256>}, {transform_indices = @transform_14, window_bounds = array<i64: 1, 256, 512>}, {transform_indices = @transform_15, window_bounds = array<i64: 1, 1, 512>}, {transform_indices = @transform_16, window_bounds = array<i64: 1, 512, 256>}, {transform_indices = @transform_17, window_bounds = array<i64: 1, 1, 256>}, {transform_indices = @transform_18, window_bounds = array<i64: 1, 1, 256>}, {transform_indices = @transform_19, window_bounds = array<i64: 1, 1, 256>}, {transform_indices = @transform_20, window_bounds = array<i64: 2, 1, 256>}]} {
    %c0_i32 = arith.constant 0 : i32
    %0 = arith.cmpi eq, %arg1, %c0_i32 : i32
    %1 = arith.extui %0 : i1 to i32
    %c0_i32_0 = arith.constant 0 : i32
    %2 = arith.cmpi ne, %1, %c0_i32_0 : i32
    scf.if %2 {
      %c0_96 = arith.constant 0 : index
      %c0_97 = arith.constant 0 : index
      %c0_98 = arith.constant 0 : index
      %182 = vector.load %arg2[%c0_96, %c0_97, %c0_98] : memref<2x16x256xbf16, #tpu.memory_space<vmem>>, vector<2x16x256xbf16>
      %183 = arith.extf %182 : vector<2x16x256xbf16> to vector<2x16x256xf32>
      %c0_99 = arith.constant 0 : index
      %c0_100 = arith.constant 0 : index
      %184 = vector.load %arg4[%c0_99, %c0_100] : memref<1x256xf32, #tpu.memory_space<vmem>>, vector<1x256xf32>
      %c0_101 = arith.constant 0 : index
      %c0_102 = arith.constant 0 : index
      %185 = vector.load %arg5[%c0_101, %c0_102] : memref<1x256xf32, #tpu.memory_space<vmem>>, vector<1x256xf32>
      %cst_103 = arith.constant dense<0.000000e+00> : vector<2x16xf32>
      %186 = vector.multi_reduction <add>, %183, %cst_103 [2] : vector<2x16x256xf32> to vector<2x16xf32>
      %187 = vector.shape_cast %186 : vector<2x16xf32> to vector<2x16x1xf32>
      %cst_104 = arith.constant 2.560000e+02 : f32
      %188 = vector.broadcast %cst_104 : f32 to vector<2x16x1xf32>
      %189 = arith.divf %187, %188 : vector<2x16x1xf32>
      %190 = vector.broadcast %189 : vector<2x16x1xf32> to vector<2x16x256xf32>
      %191 = arith.subf %183, %190 : vector<2x16x256xf32>
      %192 = arith.mulf %191, %191 : vector<2x16x256xf32>
      %cst_105 = arith.constant dense<0.000000e+00> : vector<2x16xf32>
      %193 = vector.multi_reduction <add>, %192, %cst_105 [2] : vector<2x16x256xf32> to vector<2x16xf32>
      %194 = vector.shape_cast %193 : vector<2x16xf32> to vector<2x16x1xf32>
      %cst_106 = arith.constant 2.560000e+02 : f32
      %195 = vector.broadcast %cst_106 : f32 to vector<2x16x1xf32>
      %196 = arith.divf %194, %195 : vector<2x16x1xf32>
      %197 = vector.broadcast %189 : vector<2x16x1xf32> to vector<2x16x256xf32>
      %198 = arith.subf %183, %197 : vector<2x16x256xf32>
      %cst_107 = arith.constant 9.99999974E-6 : f32
      %199 = vector.broadcast %cst_107 : f32 to vector<2x16x1xf32>
      %200 = arith.addf %196, %199 : vector<2x16x1xf32>
      %201 = math.rsqrt %200 : vector<2x16x1xf32>
      %202 = vector.broadcast %201 : vector<2x16x1xf32> to vector<2x16x256xf32>
      %203 = arith.mulf %198, %202 : vector<2x16x256xf32>
      %204 = vector.shape_cast %184 : vector<1x256xf32> to vector<1x1x256xf32>
      %205 = vector.broadcast %204 : vector<1x1x256xf32> to vector<2x16x256xf32>
      %206 = arith.mulf %203, %205 : vector<2x16x256xf32>
      %207 = vector.shape_cast %185 : vector<1x256xf32> to vector<1x1x256xf32>
      %208 = vector.broadcast %207 : vector<1x1x256xf32> to vector<2x16x256xf32>
      %209 = arith.addf %206, %208 : vector<2x16x256xf32>
      %c0_108 = arith.constant 0 : index
      %c0_109 = arith.constant 0 : index
      %c0_110 = arith.constant 0 : index
      %210 = vector.load %arg23[%c0_108, %c0_109, %c0_110] : memref<2x16x256xf32, #tpu.memory_space<vmem>>, vector<2x16x256xf32>
      tpu.vector_store %arg23[%c0_108, %c0_109, %c0_110], %209 {strides = array<i32>} : memref<2x16x256xf32, #tpu.memory_space<vmem>>, vector<2x16x256xf32>,
    } else {
    }
    %c0 = arith.constant 0 : index
    %c0_1 = arith.constant 0 : index
    %c0_2 = arith.constant 0 : index
    %3 = vector.load %arg23[%c0, %c0_1, %c0_2] : memref<2x16x256xf32, #tpu.memory_space<vmem>>, vector<2x16x256xf32>
    %4 = arith.truncf %3 : vector<2x16x256xf32> to vector<2x16x256xbf16>
    %5 = vector.shape_cast %4 : vector<2x16x256xbf16> to vector<32x256xbf16>
    %c0_3 = arith.constant 0 : index
    %c0_4 = arith.constant 0 : index
    %c0_5 = arith.constant 0 : index
    %6 = vector.load %arg6[%c0_3, %c0_4, %c0_5] : memref<1x256x256xbf16, #tpu.memory_space<vmem>>, vector<1x256x256xbf16>
    %7 = vector.shape_cast %6 : vector<1x256x256xbf16> to vector<256x256xbf16>
    %cst = arith.constant dense<0.000000e+00> : vector<32x256xf32>
    %8 = tpu.matmul %5, %7, %cst {dimension_numbers = #tpu.dot_dimension_numbers<[1], [0], [0], [1], [0, 0, 1, 1], [], []>} : vector<32x256xbf16>, vector<256x256xbf16>, vector<32x256xf32> -> vector<32x256xf32>
    %c0_6 = arith.constant 0 : index
    %c0_7 = arith.constant 0 : index
    %c0_8 = arith.constant 0 : index
    %9 = vector.load %arg7[%c0_6, %c0_7, %c0_8] : memref<1x1x256xf32, #tpu.memory_space<vmem>>, vector<1x1x256xf32>
    %10 = vector.shape_cast %9 : vector<1x1x256xf32> to vector<1x256xf32>
    %11 = vector.broadcast %10 : vector<1x256xf32> to vector<32x256xf32>
    %12 = arith.addf %8, %11 : vector<32x256xf32>
    %13 = arith.truncf %12 : vector<32x256xf32> to vector<32x256xbf16>
    %14 = vector.shape_cast %13 : vector<32x256xbf16> to vector<2x16x256xbf16>
    %c0_9 = arith.constant 0 : index
    %c0_10 = arith.constant 0 : index
    %c0_11 = arith.constant 0 : index
    %15 = vector.load %arg8[%c0_9, %c0_10, %c0_11] : memref<1x256x256xbf16, #tpu.memory_space<vmem>>, vector<1x256x256xbf16>
    %16 = vector.shape_cast %15 : vector<1x256x256xbf16> to vector<256x256xbf16>
    %cst_12 = arith.constant dense<0.000000e+00> : vector<32x256xf32>
    %17 = tpu.matmul %5, %16, %cst_12 {dimension_numbers = #tpu.dot_dimension_numbers<[1], [0], [0], [1], [0, 0, 1, 1], [], []>} : vector<32x256xbf16>, vector<256x256xbf16>, vector<32x256xf32> -> vector<32x256xf32>
    %c0_13 = arith.constant 0 : index
    %c0_14 = arith.constant 0 : index
    %c0_15 = arith.constant 0 : index
    %18 = vector.load %arg9[%c0_13, %c0_14, %c0_15] : memref<1x1x256xf32, #tpu.memory_space<vmem>>, vector<1x1x256xf32>
    %19 = vector.shape_cast %18 : vector<1x1x256xf32> to vector<1x256xf32>
    %20 = vector.broadcast %19 : vector<1x256xf32> to vector<32x256xf32>
    %21 = arith.addf %17, %20 : vector<32x256xf32>
    %22 = arith.truncf %21 : vector<32x256xf32> to vector<32x256xbf16>
    %23 = vector.shape_cast %22 : vector<32x256xbf16> to vector<2x16x256xbf16>
    %c0_16 = arith.constant 0 : index
    %c0_17 = arith.constant 0 : index
    %c0_18 = arith.constant 0 : index
    %24 = vector.load %arg10[%c0_16, %c0_17, %c0_18] : memref<1x256x256xbf16, #tpu.memory_space<vmem>>, vector<1x256x256xbf16>
    %25 = vector.shape_cast %24 : vector<1x256x256xbf16> to vector<256x256xbf16>
    %cst_19 = arith.constant dense<0.000000e+00> : vector<32x256xf32>
    %26 = tpu.matmul %5, %25, %cst_19 {dimension_numbers = #tpu.dot_dimension_numbers<[1], [0], [0], [1], [0, 0, 1, 1], [], []>} : vector<32x256xbf16>, vector<256x256xbf16>, vector<32x256xf32> -> vector<32x256xf32>
    %c0_20 = arith.constant 0 : index
    %c0_21 = arith.constant 0 : index
    %c0_22 = arith.constant 0 : index
    %27 = vector.load %arg11[%c0_20, %c0_21, %c0_22] : memref<1x1x256xf32, #tpu.memory_space<vmem>>, vector<1x1x256xf32>
    %28 = vector.shape_cast %27 : vector<1x1x256xf32> to vector<1x256xf32>
    %29 = vector.broadcast %28 : vector<1x256xf32> to vector<32x256xf32>
    %30 = arith.addf %26, %29 : vector<32x256xf32>
    %31 = arith.truncf %30 : vector<32x256xf32> to vector<32x256xbf16>
    %32 = vector.shape_cast %31 : vector<32x256xbf16> to vector<2x16x256xbf16>
    %c0_23 = arith.constant 0 : index
    %c0_24 = arith.constant 0 : index
    %c0_25 = arith.constant 0 : index
    %33 = vector.load %arg3[%c0_23, %c0_24, %c0_25] : memref<2x1x16xf32, #tpu.memory_space<vmem>>, vector<2x1x16xf32>
    %34 = vector.extract_strided_slice %14 {offsets = [0, 0, 0], sizes = [2, 16, 128], strides = [1, 1, 1]} : vector<2x16x256xbf16> to vector<2x16x128xbf16>
    %35 = vector.extract_strided_slice %23 {offsets = [0, 0, 0], sizes = [2, 16, 128], strides = [1, 1, 1]} : vector<2x16x256xbf16> to vector<2x16x128xbf16>
    "tpu.trace_start"() <{level = 10 : i32, message = "bqd,bkd->bqk"}> : () -> ()
    %cst_26 = arith.constant dense<0.000000e+00> : vector<2x16x16xf32>
    %36 = tpu.matmul %34, %35, %cst_26 {dimension_numbers = #tpu.dot_dimension_numbers<[2], [2], [1], [1], [0, 0, 0, 1, 1, 1], [0], [0]>} : vector<2x16x128xbf16>, vector<2x16x128xbf16>, vector<2x16x16xf32> -> vector<2x16x16xf32>
    "tpu.trace_stop"() : () -> ()
    %cst_27 = arith.constant 0.0883883461 : f32
    %37 = vector.broadcast %cst_27 : f32 to vector<2x16x16xf32>
    %38 = arith.mulf %36, %37 : vector<2x16x16xf32>
    %39 = vector.broadcast %33 : vector<2x1x16xf32> to vector<2x16x16xf32>
    %40 = arith.addf %38, %39 : vector<2x16x16xf32>
    %cst_28 = arith.constant dense<0xFF800000> : vector<2x16xf32>
    %41 = vector.multi_reduction <maximumf>, %40, %cst_28 [2] : vector<2x16x16xf32> to vector<2x16xf32>
    %42 = vector.shape_cast %41 : vector<2x16xf32> to vector<2x16x1xf32>
    %43 = vector.broadcast %42 : vector<2x16x1xf32> to vector<2x16x16xf32>
    %44 = arith.subf %40, %43 : vector<2x16x16xf32>
    %45 = math.exp %44 : vector<2x16x16xf32>
    %cst_29 = arith.constant dense<0.000000e+00> : vector<2x16xf32>
    %46 = vector.multi_reduction <add>, %45, %cst_29 [2] : vector<2x16x16xf32> to vector<2x16xf32>
    %47 = vector.shape_cast %46 : vector<2x16xf32> to vector<2x16x1xf32>
    %48 = tpu.reciprocal %47 {approx = true} : vector<2x16x1xf32> -> vector<2x16x1xf32>
    %49 = vector.broadcast %48 : vector<2x16x1xf32> to vector<2x16x16xf32>
    %50 = arith.mulf %45, %49 : vector<2x16x16xf32>
    %51 = arith.truncf %50 : vector<2x16x16xf32> to vector<2x16x16xbf16>
    %52 = vector.extract_strided_slice %32 {offsets = [0, 0, 0], sizes = [2, 16, 128], strides = [1, 1, 1]} : vector<2x16x256xbf16> to vector<2x16x128xbf16>
    "tpu.trace_start"() <{level = 10 : i32, message = "bqk,bkd->bqd"}> : () -> ()
    %cst_30 = arith.constant dense<0.000000e+00> : vector<2x16x128xf32>
    %53 = tpu.matmul %51, %52, %cst_30 {dimension_numbers = #tpu.dot_dimension_numbers<[2], [1], [1], [2], [0, 0, 0, 1, 1, 2], [0], [0]>} : vector<2x16x16xbf16>, vector<2x16x128xbf16>, vector<2x16x128xf32> -> vector<2x16x128xf32>
    "tpu.trace_stop"() : () -> ()
    %c0_31 = arith.constant 0 : index
    %c0_32 = arith.constant 0 : index
    %c0_33 = arith.constant 0 : index
    %54 = vector.load %arg24[%c0_31, %c0_32, %c0_33] : memref<2x16x256xf32, #tpu.memory_space<vmem>>, vector<2x16x128xf32>
    tpu.vector_store %arg24[%c0_31, %c0_32, %c0_33], %53 {strides = array<i32>} : memref<2x16x256xf32, #tpu.memory_space<vmem>>, vector<2x16x128xf32>,
    %55 = vector.extract_strided_slice %14 {offsets = [0, 0, 128], sizes = [2, 16, 128], strides = [1, 1, 1]} : vector<2x16x256xbf16> to vector<2x16x128xbf16>
    %56 = vector.extract_strided_slice %23 {offsets = [0, 0, 128], sizes = [2, 16, 128], strides = [1, 1, 1]} : vector<2x16x256xbf16> to vector<2x16x128xbf16>
    "tpu.trace_start"() <{level = 10 : i32, message = "bqd,bkd->bqk"}> : () -> ()
    %cst_34 = arith.constant dense<0.000000e+00> : vector<2x16x16xf32>
    %57 = tpu.matmul %55, %56, %cst_34 {dimension_numbers = #tpu.dot_dimension_numbers<[2], [2], [1], [1], [0, 0, 0, 1, 1, 1], [0], [0]>} : vector<2x16x128xbf16>, vector<2x16x128xbf16>, vector<2x16x16xf32> -> vector<2x16x16xf32>
    "tpu.trace_stop"() : () -> ()
    %cst_35 = arith.constant 0.0883883461 : f32
    %58 = vector.broadcast %cst_35 : f32 to vector<2x16x16xf32>
    %59 = arith.mulf %57, %58 : vector<2x16x16xf32>
    %60 = vector.broadcast %33 : vector<2x1x16xf32> to vector<2x16x16xf32>
    %61 = arith.addf %59, %60 : vector<2x16x16xf32>
    %cst_36 = arith.constant dense<0xFF800000> : vector<2x16xf32>
    %62 = vector.multi_reduction <maximumf>, %61, %cst_36 [2] : vector<2x16x16xf32> to vector<2x16xf32>
    %63 = vector.shape_cast %62 : vector<2x16xf32> to vector<2x16x1xf32>
    %64 = vector.broadcast %63 : vector<2x16x1xf32> to vector<2x16x16xf32>
    %65 = arith.subf %61, %64 : vector<2x16x16xf32>
    %66 = math.exp %65 : vector<2x16x16xf32>
    %cst_37 = arith.constant dense<0.000000e+00> : vector<2x16xf32>
    %67 = vector.multi_reduction <add>, %66, %cst_37 [2] : vector<2x16x16xf32> to vector<2x16xf32>
    %68 = vector.shape_cast %67 : vector<2x16xf32> to vector<2x16x1xf32>
    %69 = tpu.reciprocal %68 {approx = true} : vector<2x16x1xf32> -> vector<2x16x1xf32>
    %70 = vector.broadcast %69 : vector<2x16x1xf32> to vector<2x16x16xf32>
    %71 = arith.mulf %66, %70 : vector<2x16x16xf32>
    %72 = arith.truncf %71 : vector<2x16x16xf32> to vector<2x16x16xbf16>
    %73 = vector.extract_strided_slice %32 {offsets = [0, 0, 128], sizes = [2, 16, 128], strides = [1, 1, 1]} : vector<2x16x256xbf16> to vector<2x16x128xbf16>
    "tpu.trace_start"() <{level = 10 : i32, message = "bqk,bkd->bqd"}> : () -> ()
    %cst_38 = arith.constant dense<0.000000e+00> : vector<2x16x128xf32>
    %74 = tpu.matmul %72, %73, %cst_38 {dimension_numbers = #tpu.dot_dimension_numbers<[2], [1], [1], [2], [0, 0, 0, 1, 1, 2], [0], [0]>} : vector<2x16x16xbf16>, vector<2x16x128xbf16>, vector<2x16x128xf32> -> vector<2x16x128xf32>
    "tpu.trace_stop"() : () -> ()
    %c0_39 = arith.constant 0 : index
    %c0_40 = arith.constant 0 : index
    %c128 = arith.constant 128 : index
    %75 = vector.load %arg24[%c0_39, %c0_40, %c128] : memref<2x16x256xf32, #tpu.memory_space<vmem>>, vector<2x16x128xf32>
    tpu.vector_store %arg24[%c0_39, %c0_40, %c128], %74 {strides = array<i32>} : memref<2x16x256xf32, #tpu.memory_space<vmem>>, vector<2x16x128xf32>,
    %c0_41 = arith.constant 0 : index
    %c0_42 = arith.constant 0 : index
    %c0_43 = arith.constant 0 : index
    %76 = vector.load %arg24[%c0_41, %c0_42, %c0_43] : memref<2x16x256xf32, #tpu.memory_space<vmem>>, vector<2x16x256xf32>
    %77 = arith.truncf %76 : vector<2x16x256xf32> to vector<2x16x256xbf16>
    %78 = vector.shape_cast %77 : vector<2x16x256xbf16> to vector<32x256xbf16>
    %c0_44 = arith.constant 0 : index
    %c0_45 = arith.constant 0 : index
    %c0_46 = arith.constant 0 : index
    %79 = vector.load %arg12[%c0_44, %c0_45, %c0_46] : memref<1x256x256xbf16, #tpu.memory_space<vmem>>, vector<1x256x256xbf16>
    %80 = vector.shape_cast %79 : vector<1x256x256xbf16> to vector<256x256xbf16>
    %cst_47 = arith.constant dense<0.000000e+00> : vector<32x256xf32>
    %81 = tpu.matmul %78, %80, %cst_47 {dimension_numbers = #tpu.dot_dimension_numbers<[1], [0], [0], [1], [0, 0, 1, 1], [], []>} : vector<32x256xbf16>, vector<256x256xbf16>, vector<32x256xf32> -> vector<32x256xf32>
    %c0_48 = arith.constant 0 : index
    %c0_49 = arith.constant 0 : index
    %c0_50 = arith.constant 0 : index
    %82 = vector.load %arg13[%c0_48, %c0_49, %c0_50] : memref<1x1x256xf32, #tpu.memory_space<vmem>>, vector<1x1x256xf32>
    %83 = vector.shape_cast %82 : vector<1x1x256xf32> to vector<1x256xf32>
    %84 = vector.broadcast %83 : vector<1x256xf32> to vector<32x256xf32>
    %85 = arith.addf %81, %84 : vector<32x256xf32>
    %86 = vector.shape_cast %85 : vector<32x256xf32> to vector<2x16x256xf32>
    %87 = arith.addf %3, %86 : vector<2x16x256xf32>
    %c0_51 = arith.constant 0 : index
    %c0_52 = arith.constant 0 : index
    %c0_53 = arith.constant 0 : index
    %88 = vector.load %arg14[%c0_51, %c0_52, %c0_53] : memref<1x1x256xf32, #tpu.memory_space<vmem>>, vector<1x1x256xf32>
    %89 = vector.shape_cast %88 : vector<1x1x256xf32> to vector<1x256xf32>
    %c0_54 = arith.constant 0 : index
    %c0_55 = arith.constant 0 : index
    %c0_56 = arith.constant 0 : index
    %90 = vector.load %arg15[%c0_54, %c0_55, %c0_56] : memref<1x1x256xf32, #tpu.memory_space<vmem>>, vector<1x1x256xf32>
    %91 = vector.shape_cast %90 : vector<1x1x256xf32> to vector<1x256xf32>
    %cst_57 = arith.constant dense<0.000000e+00> : vector<2x16xf32>
    %92 = vector.multi_reduction <add>, %87, %cst_57 [2] : vector<2x16x256xf32> to vector<2x16xf32>
    %93 = vector.shape_cast %92 : vector<2x16xf32> to vector<2x16x1xf32>
    %cst_58 = arith.constant 2.560000e+02 : f32
    %94 = vector.broadcast %cst_58 : f32 to vector<2x16x1xf32>
    %95 = arith.divf %93, %94 : vector<2x16x1xf32>
    %96 = vector.broadcast %95 : vector<2x16x1xf32> to vector<2x16x256xf32>
    %97 = arith.subf %87, %96 : vector<2x16x256xf32>
    %98 = arith.mulf %97, %97 : vector<2x16x256xf32>
    %cst_59 = arith.constant dense<0.000000e+00> : vector<2x16xf32>
    %99 = vector.multi_reduction <add>, %98, %cst_59 [2] : vector<2x16x256xf32> to vector<2x16xf32>
    %100 = vector.shape_cast %99 : vector<2x16xf32> to vector<2x16x1xf32>
    %cst_60 = arith.constant 2.560000e+02 : f32
    %101 = vector.broadcast %cst_60 : f32 to vector<2x16x1xf32>
    %102 = arith.divf %100, %101 : vector<2x16x1xf32>
    %103 = vector.broadcast %95 : vector<2x16x1xf32> to vector<2x16x256xf32>
    %104 = arith.subf %87, %103 : vector<2x16x256xf32>
    %cst_61 = arith.constant 9.99999974E-6 : f32
    %105 = vector.broadcast %cst_61 : f32 to vector<2x16x1xf32>
    %106 = arith.addf %102, %105 : vector<2x16x1xf32>
    %107 = math.rsqrt %106 : vector<2x16x1xf32>
    %108 = vector.broadcast %107 : vector<2x16x1xf32> to vector<2x16x256xf32>
    %109 = arith.mulf %104, %108 : vector<2x16x256xf32>
    %110 = vector.shape_cast %89 : vector<1x256xf32> to vector<1x1x256xf32>
    %111 = vector.broadcast %110 : vector<1x1x256xf32> to vector<2x16x256xf32>
    %112 = arith.mulf %109, %111 : vector<2x16x256xf32>
    %113 = vector.shape_cast %91 : vector<1x256xf32> to vector<1x1x256xf32>
    %114 = vector.broadcast %113 : vector<1x1x256xf32> to vector<2x16x256xf32>
    %115 = arith.addf %112, %114 : vector<2x16x256xf32>
    %116 = arith.truncf %115 : vector<2x16x256xf32> to vector<2x16x256xbf16>
    %117 = vector.shape_cast %116 : vector<2x16x256xbf16> to vector<32x256xbf16>
    %cst_62 = arith.constant 0.000000e+00 : f32
    %118 = vector.broadcast %cst_62 : f32 to vector<32x256xf32>
    %c0_63 = arith.constant 0 : index
    %c0_64 = arith.constant 0 : index
    %c0_65 = arith.constant 0 : index
    %119 = vector.load %arg16[%c0_63, %c0_64, %c0_65] : memref<1x256x512xbf16, #tpu.memory_space<vmem>>, vector<1x256x512xbf16>
    %120 = vector.shape_cast %119 : vector<1x256x512xbf16> to vector<256x512xbf16>
    %cst_66 = arith.constant dense<0.000000e+00> : vector<32x512xf32>
    %121 = tpu.matmul %117, %120, %cst_66 {dimension_numbers = #tpu.dot_dimension_numbers<[1], [0], [0], [1], [0, 0, 1, 1], [], []>} : vector<32x256xbf16>, vector<256x512xbf16>, vector<32x512xf32> -> vector<32x512xf32>
    %c0_67 = arith.constant 0 : index
    %c0_68 = arith.constant 0 : index
    %c0_69 = arith.constant 0 : index
    %122 = vector.load %arg17[%c0_67, %c0_68, %c0_69] : memref<1x1x512xf32, #tpu.memory_space<vmem>>, vector<1x1x512xf32>
    %123 = vector.shape_cast %122 : vector<1x1x512xf32> to vector<1x512xf32>
    %124 = vector.broadcast %123 : vector<1x512xf32> to vector<32x512xf32>
    %125 = arith.addf %121, %124 : vector<32x512xf32>
    %cst_70 = arith.constant 5.000000e-01 : f32
    %126 = vector.broadcast %cst_70 : f32 to vector<32x512xf32>
    %127 = arith.mulf %126, %125 : vector<32x512xf32>
    %cst_71 = arith.constant 4.471500e-02 : f32
    %128 = vector.broadcast %cst_71 : f32 to vector<32x512xf32>
    %129 = arith.mulf %128, %125 : vector<32x512xf32>
    %130 = arith.mulf %129, %125 : vector<32x512xf32>
    %131 = arith.mulf %130, %125 : vector<32x512xf32>
    %132 = arith.addf %125, %131 : vector<32x512xf32>
    %cst_72 = arith.constant 0.797884583 : f32
    %133 = vector.broadcast %cst_72 : f32 to vector<32x512xf32>
    %134 = arith.mulf %133, %132 : vector<32x512xf32>
    %135 = math.tanh %134 : vector<32x512xf32>
    %cst_73 = arith.constant 1.000000e+00 : f32
    %136 = vector.broadcast %cst_73 : f32 to vector<32x512xf32>
    %137 = arith.addf %136, %135 : vector<32x512xf32>
    %138 = arith.mulf %127, %137 : vector<32x512xf32>
    %139 = arith.truncf %138 : vector<32x512xf32> to vector<32x512xbf16>
    %c0_74 = arith.constant 0 : index
    %c0_75 = arith.constant 0 : index
    %c0_76 = arith.constant 0 : index
    %140 = vector.load %arg18[%c0_74, %c0_75, %c0_76] : memref<1x512x256xbf16, #tpu.memory_space<vmem>>, vector<1x512x256xbf16>
    %141 = vector.shape_cast %140 : vector<1x512x256xbf16> to vector<512x256xbf16>
    %cst_77 = arith.constant dense<0.000000e+00> : vector<32x256xf32>
    %142 = tpu.matmul %139, %141, %cst_77 {dimension_numbers = #tpu.dot_dimension_numbers<[1], [0], [0], [1], [0, 0, 1, 1], [], []>} : vector<32x512xbf16>, vector<512x256xbf16>, vector<32x256xf32> -> vector<32x256xf32>
    %143 = arith.addf %118, %142 : vector<32x256xf32>
    %c0_78 = arith.constant 0 : index
    %c0_79 = arith.constant 0 : index
    %c0_80 = arith.constant 0 : index
    %144 = vector.load %arg19[%c0_78, %c0_79, %c0_80] : memref<1x1x256xf32, #tpu.memory_space<vmem>>, vector<1x1x256xf32>
    %145 = vector.shape_cast %144 : vector<1x1x256xf32> to vector<1x256xf32>
    %146 = vector.broadcast %145 : vector<1x256xf32> to vector<32x256xf32>
    %147 = arith.addf %143, %146 : vector<32x256xf32>
    %148 = vector.shape_cast %147 : vector<32x256xf32> to vector<2x16x256xf32>
    %149 = arith.addf %115, %148 : vector<2x16x256xf32>
    %c0_81 = arith.constant 0 : index
    %c0_82 = arith.constant 0 : index
    %c0_83 = arith.constant 0 : index
    %150 = vector.load %arg20[%c0_81, %c0_82, %c0_83] : memref<1x1x256xf32, #tpu.memory_space<vmem>>, vector<1x1x256xf32>
    %151 = vector.shape_cast %150 : vector<1x1x256xf32> to vector<1x256xf32>
    %c0_84 = arith.constant 0 : index
    %c0_85 = arith.constant 0 : index
    %c0_86 = arith.constant 0 : index
    %152 = vector.load %arg21[%c0_84, %c0_85, %c0_86] : memref<1x1x256xf32, #tpu.memory_space<vmem>>, vector<1x1x256xf32>
    %153 = vector.shape_cast %152 : vector<1x1x256xf32> to vector<1x256xf32>
    %cst_87 = arith.constant dense<0.000000e+00> : vector<2x16xf32>
    %154 = vector.multi_reduction <add>, %149, %cst_87 [2] : vector<2x16x256xf32> to vector<2x16xf32>
    %155 = vector.shape_cast %154 : vector<2x16xf32> to vector<2x16x1xf32>
    %cst_88 = arith.constant 2.560000e+02 : f32
    %156 = vector.broadcast %cst_88 : f32 to vector<2x16x1xf32>
    %157 = arith.divf %155, %156 : vector<2x16x1xf32>
    %158 = vector.broadcast %157 : vector<2x16x1xf32> to vector<2x16x256xf32>
    %159 = arith.subf %149, %158 : vector<2x16x256xf32>
    %160 = arith.mulf %159, %159 : vector<2x16x256xf32>
    %cst_89 = arith.constant dense<0.000000e+00> : vector<2x16xf32>
    %161 = vector.multi_reduction <add>, %160, %cst_89 [2] : vector<2x16x256xf32> to vector<2x16xf32>
    %162 = vector.shape_cast %161 : vector<2x16xf32> to vector<2x16x1xf32>
    %cst_90 = arith.constant 2.560000e+02 : f32
    %163 = vector.broadcast %cst_90 : f32 to vector<2x16x1xf32>
    %164 = arith.divf %162, %163 : vector<2x16x1xf32>
    %165 = vector.broadcast %157 : vector<2x16x1xf32> to vector<2x16x256xf32>
    %166 = arith.subf %149, %165 : vector<2x16x256xf32>
    %cst_91 = arith.constant 9.99999974E-6 : f32
    %167 = vector.broadcast %cst_91 : f32 to vector<2x16x1xf32>
    %168 = arith.addf %164, %167 : vector<2x16x1xf32>
    %169 = math.rsqrt %168 : vector<2x16x1xf32>
    %170 = vector.broadcast %169 : vector<2x16x1xf32> to vector<2x16x256xf32>
    %171 = arith.mulf %166, %170 : vector<2x16x256xf32>
    %172 = vector.shape_cast %151 : vector<1x256xf32> to vector<1x1x256xf32>
    %173 = vector.broadcast %172 : vector<1x1x256xf32> to vector<2x16x256xf32>
    %174 = arith.mulf %171, %173 : vector<2x16x256xf32>
    %175 = vector.shape_cast %153 : vector<1x256xf32> to vector<1x1x256xf32>
    %176 = vector.broadcast %175 : vector<1x1x256xf32> to vector<2x16x256xf32>
    %177 = arith.addf %174, %176 : vector<2x16x256xf32>
    %c0_92 = arith.constant 0 : index
    %c0_93 = arith.constant 0 : index
    %c0_94 = arith.constant 0 : index
    %178 = vector.load %arg23[%c0_92, %c0_93, %c0_94] : memref<2x16x256xf32, #tpu.memory_space<vmem>>, vector<2x16x256xf32>
    tpu.vector_store %arg23[%c0_92, %c0_93, %c0_94], %177 {strides = array<i32>} : memref<2x16x256xf32, #tpu.memory_space<vmem>>, vector<2x16x256xf32>,
    %c1_i32 = arith.constant 1 : i32
    %179 = arith.cmpi eq, %arg1, %c1_i32 : i32
    %180 = arith.extui %179 : i1 to i32
    %c0_i32_95 = arith.constant 0 : i32
    %181 = arith.cmpi ne, %180, %c0_i32_95 : i32
    scf.if %181 {
      %182 = vector.extract_strided_slice %177 {offsets = [0, 0, 0], sizes = [2, 1, 256], strides = [1, 1, 1]} : vector<2x16x256xf32> to vector<2x1x256xf32>
      %c0_96 = arith.constant 0 : index
      %c0_97 = arith.constant 0 : index
      %c0_98 = arith.constant 0 : index
      %183 = vector.load %arg22[%c0_96, %c0_97, %c0_98] : memref<2x1x256xf32, #tpu.memory_space<vmem>>, vector<2x1x256xf32>
      tpu.vector_store %arg22[%c0_96, %c0_97, %c0_98], %182 {strides = array<i32>} : memref<2x1x256xf32, #tpu.memory_space<vmem>>, vector<2x1x256xf32>,
    } else {
    }
    return
  }
  func.func @transform_0(%arg0: i32, %arg1: i32) -> (i32, i32, i32) {
    %c0_i32 = arith.constant 0 : i32
    %c0_i32_0 = arith.constant 0 : i32
    %c0_i32_1 = arith.constant 0 : i32
    return %arg0, %c0_i32, %c0_i32_0 : i32, i32, i32
  }
  func.func @transform_1(%arg0: i32, %arg1: i32) -> (i32, i32, i32) {
    %c0_i32 = arith.constant 0 : i32
    %c0_i32_0 = arith.constant 0 : i32
    %c0_i32_1 = arith.constant 0 : i32
    return %arg0, %c0_i32, %c0_i32_0 : i32, i32, i32
  }
  func.func @transform_2(%arg0: i32, %arg1: i32) -> (i32, i32) {
    %c0_i32 = arith.constant 0 : i32
    %c0_i32_0 = arith.constant 0 : i32
    %c0_i32_1 = arith.constant 0 : i32
    return %c0_i32, %c0_i32_0 : i32, i32
  }
  func.func @transform_3(%arg0: i32, %arg1: i32) -> (i32, i32) {
    %c0_i32 = arith.constant 0 : i32
    %c0_i32_0 = arith.constant 0 : i32
    %c0_i32_1 = arith.constant 0 : i32
    return %c0_i32, %c0_i32_0 : i32, i32
  }
  func.func @transform_4(%arg0: i32, %arg1: i32) -> (i32, i32, i32) {
    %c0_i32 = arith.constant 0 : i32
    %c0_i32_0 = arith.constant 0 : i32
    %c0_i32_1 = arith.constant 0 : i32
    return %arg1, %c0_i32, %c0_i32_0 : i32, i32, i32
  }
  func.func @transform_5(%arg0: i32, %arg1: i32) -> (i32, i32, i32) {
    %c0_i32 = arith.constant 0 : i32
    %c0_i32_0 = arith.constant 0 : i32
    %c0_i32_1 = arith.constant 0 : i32
    return %arg1, %c0_i32, %c0_i32_0 : i32, i32, i32
  }
  func.func @transform_6(%arg0: i32, %arg1: i32) -> (i32, i32, i32) {
    %c0_i32 = arith.constant 0 : i32
    %c0_i32_0 = arith.constant 0 : i32
    %c0_i32_1 = arith.constant 0 : i32
    return %arg1, %c0_i32, %c0_i32_0 : i32, i32, i32
  }
  func.func @transform_7(%arg0: i32, %arg1: i32) -> (i32, i32, i32) {
    %c0_i32 = arith.constant 0 : i32
    %c0_i32_0 = arith.constant 0 : i32
    %c0_i32_1 = arith.constant 0 : i32
    return %arg1, %c0_i32, %c0_i32_0 : i32, i32, i32
  }
  func.func @transform_8(%arg0: i32, %arg1: i32) -> (i32, i32, i32) {
    %c0_i32 = arith.constant 0 : i32
    %c0_i32_0 = arith.constant 0 : i32
    %c0_i32_1 = arith.constant 0 : i32
    return %arg1, %c0_i32, %c0_i32_0 : i32, i32, i32
  }
  func.func @transform_9(%arg0: i32, %arg1: i32) -> (i32, i32, i32) {
    %c0_i32 = arith.constant 0 : i32
    %c0_i32_0 = arith.constant 0 : i32
    %c0_i32_1 = arith.constant 0 : i32
    return %arg1, %c0_i32, %c0_i32_0 : i32, i32, i32
  }
  func.func @transform_10(%arg0: i32, %arg1: i32) -> (i32, i32, i32) {
    %c0_i32 = arith.constant 0 : i32
    %c0_i32_0 = arith.constant 0 : i32
    %c0_i32_1 = arith.constant 0 : i32
    return %arg1, %c0_i32, %c0_i32_0 : i32, i32, i32
  }
  func.func @transform_11(%arg0: i32, %arg1: i32) -> (i32, i32, i32) {
    %c0_i32 = arith.constant 0 : i32
    %c0_i32_0 = arith.constant 0 : i32
    %c0_i32_1 = arith.constant 0 : i32
    return %arg1, %c0_i32, %c0_i32_0 : i32, i32, i32
  }
  func.func @transform_12(%arg0: i32, %arg1: i32) -> (i32, i32, i32) {
    %c0_i32 = arith.constant 0 : i32
    %c0_i32_0 = arith.constant 0 : i32
    %c0_i32_1 = arith.constant 0 : i32
    return %arg1, %c0_i32, %c0_i32_0 : i32, i32, i32
  }
  func.func @transform_13(%arg0: i32, %arg1: i32) -> (i32, i32, i32) {
    %c0_i32 = arith.constant 0 : i32
    %c0_i32_0 = arith.constant 0 : i32
    %c0_i32_1 = arith.constant 0 : i32
    return %arg1, %c0_i32, %c0_i32_0 : i32, i32, i32
  }
  func.func @transform_14(%arg0: i32, %arg1: i32) -> (i32, i32, i32) {
    %c0_i32 = arith.constant 0 : i32
    %c0_i32_0 = arith.constant 0 : i32
    %c0_i32_1 = arith.constant 0 : i32
    return %arg1, %c0_i32, %c0_i32_0 : i32, i32, i32
  }
  func.func @transform_15(%arg0: i32, %arg1: i32) -> (i32, i32, i32) {
    %c0_i32 = arith.constant 0 : i32
    %c0_i32_0 = arith.constant 0 : i32
    %c0_i32_1 = arith.constant 0 : i32
    return %arg1, %c0_i32, %c0_i32_0 : i32, i32, i32
  }
  func.func @transform_16(%arg0: i32, %arg1: i32) -> (i32, i32, i32) {
    %c0_i32 = arith.constant 0 : i32
    %c0_i32_0 = arith.constant 0 : i32
    %c0_i32_1 = arith.constant 0 : i32
    return %arg1, %c0_i32, %c0_i32_0 : i32, i32, i32
  }
  func.func @transform_17(%arg0: i32, %arg1: i32) -> (i32, i32, i32) {
    %c0_i32 = arith.constant 0 : i32
    %c0_i32_0 = arith.constant 0 : i32
    %c0_i32_1 = arith.constant 0 : i32
    return %arg1, %c0_i32, %c0_i32_0 : i32, i32, i32
  }
  func.func @transform_18(%arg0: i32, %arg1: i32) -> (i32, i32, i32) {
    %c0_i32 = arith.constant 0 : i32
    %c0_i32_0 = arith.constant 0 : i32
    %c0_i32_1 = arith.constant 0 : i32
    return %arg1, %c0_i32, %c0_i32_0 : i32, i32, i32
  }
  func.func @transform_19(%arg0: i32, %arg1: i32) -> (i32, i32, i32) {
    %c0_i32 = arith.constant 0 : i32
    %c0_i32_0 = arith.constant 0 : i32
    %c0_i32_1 = arith.constant 0 : i32
    return %arg1, %c0_i32, %c0_i32_0 : i32, i32, i32
  }
  func.func @transform_20(%arg0: i32, %arg1: i32) -> (i32, i32, i32) {
    %c0_i32 = arith.constant 0 : i32
    %c0_i32_0 = arith.constant 0 : i32
    %c0_i32_1 = arith.constant 0 : i32
    return %arg0, %c0_i32, %c0_i32_0 : i32, i32, i32
  }
}

</mosaic_0001>

<bundles_post_ra>
// kernel: roberta_class_forward.1
= control target key start
LH: loop header
LB: loop body
LE: loop exit
PB: predicated region body
PF: predicated region fallthrough
CT: control target
= control target key end

     0   :  { %s6721_s0 = inlined_call_operand.vmem [shape: bf16[4,16,256], index: 0, kind: input, shape index: {}]   ;;  %s6722_s1 = inlined_call_operand.vmem [shape: f32[4,1,16], index: 1, kind: input, shape index: {}]   ;;  %s6723_s2 = inlined_call_operand.vmem [shape: f32[1,256], index: 2, kind: input, shape index: {}]   ;;  %s6724_s3 = inlined_call_operand.vmem [shape: f32[1,256], index: 3, kind: input, shape index: {}]   ;;  %s6725_s4 = inlined_call_operand.vmem [shape: bf16[2,256,256], index: 4, kind: input, shape index: {}]   ;;  %s6726_s5 = inlined_call_operand.vmem [shape: f32[2,1,256], index: 5, kind: input, shape index: {}]   ;;  %s6727_s6 = inlined_call_operand.vmem [shape: bf16[2,256,256], index: 6, kind: input, shape index: {}]   ;;  %s6728_s7 = inlined_call_operand.vmem [shape: f32[2,1,256], index: 7, kind: input, shape index: {}]   ;;  %s6729_s8 = inlined_call_operand.hbm [shape: bf16[2,256,256], index: 8, kind: input, shape index: {}]   ;;  %s6730_s9 = inlined_call_operand.vmem [shape: f32[2,1,256], index: 9, kind: input, shape index: {}]   ;;  %s6731_s10 = inlined_call_operand.hbm [shape: bf16[2,256,256], index: 10, kind: input, shape index: {}]   ;;  %s6732_s11 = inlined_call_operand.vmem [shape: f32[2,1,256], index: 11, kind: input, shape index: {}]   ;;  %s6733_s12 = inlined_call_operand.vmem [shape: f32[2,1,256], index: 12, kind: input, shape index: {}]   ;;  %s6734_s13 = inlined_call_operand.vmem [shape: f32[2,1,256], index: 13, kind: input, shape index: {}]   ;;  %s6735_s14 = inlined_call_operand.vmem [shape: bf16[2,256,512], index: 14, kind: input, shape index: {}]   ;;  %s6736_s15 = inlined_call_operand.vmem [shape: f32[2,1,512], index: 15, kind: input, shape index: {}]   ;;  %s6737_s16 = inlined_call_operand.vmem [shape: bf16[2,512,256], index: 16, kind: input, shape index: {}]   ;;  %s6738_s17 = inlined_call_operand.vmem [shape: f32[2,1,256], index: 17, kind: input, shape index: {}]   ;;  %s6739_s18 = inlined_call_operand.vmem [shape: f32[2,1,256], index: 18, kind: input, shape index: {}]   ;;  %s6740_s19 = inlined_call_operand.hbm [shape: f32[2,1,256], index: 19, kind: input, shape index: {}]   ;;  %s6741_s20 = inlined_call_operand.vmem [shape: f32[4,1,256], index: 20, kind: output, shape index: {}]  }
   0x1   :  { %6759 = sst [smem:[#allocation23_spill]] %s6721_s0 }
   0x2   :  { %6760 = sst [smem:[#allocation24_spill]] %s6722_s1 }
   0x3   :  { %6761 = sst [smem:[#allocation25_spill]] %s6723_s2 }
   0x4   :  { %6762 = sst [smem:[#allocation26_spill]] %s6724_s3 }
   0x5   :  { %6763 = sst [smem:[#allocation27_spill]] %s6725_s4 }
   0x6   :  { %6764 = sst [smem:[#allocation28_spill]] %s6727_s6 }
   0x7   :  { %6765 = sst [smem:[#allocation29_spill]] %s6729_s8 }
   0x8   :  { %6766 = sst [smem:[#allocation30_spill]] %s6730_s9 }
   0x9   :  { %6767 = sst [smem:[#allocation31_spill]] %s6731_s10 }
   0xa   :  { %6768 = sst [smem:[#allocation32_spill]] %s6732_s11 }
   0xb   :  { %6769 = sst [smem:[#allocation33_spill]] %s6733_s12 }
   0xc   :  { %6770 = sst [smem:[#allocation34_spill]] %s6734_s13 }
   0xd   :  { %6771 = sst [smem:[#allocation35_spill]] %s6735_s14 }
   0xe   :  { %6772 = sst [smem:[#allocation36_spill]] %s6736_s15 }
   0xf   :  { %6773 = sst [smem:[#allocation37_spill]] %s6737_s16 }
  0x10   :  { %6774 = sst [smem:[#allocation38_spill]] %s6738_s17 }
  0x11   :  { %6775 = sst [smem:[#allocation39_spill]] %s6739_s18 }
  0x12   :  { %6776 = sst [smem:[#allocation40_spill]] %s6740_s19 }
  0x13   :  { %6777 = sst [smem:[#allocation41_spill]] %s6741_s20 }
  0x14   :  { %25 = vsyncpa [#allocation5], 0 }
  0x15   :  { %27 = vsyncpa [#allocation5 + $0x1], 0 }
  0x16   :  { %28 = vsyncpa [#allocation7], 0 }
  0x17   :  { %30 = vsyncpa [#allocation7 + $0x1], 0  ;;  %s5663_s1 = smov 0   ;;  %s5665_s22 = smov 0  }
  0x18   :  { %s5667_s23 = smov 0   ;;  %s5669_s24 = smov 0  }
  0x19   :  { %s5671_s2 = smov 0   ;;  %s5673_s25 = smov 0  }
  0x1a   :  { %s5675_s3 = smov 0   ;;  %s5677_s26 = smov 0  }
  0x1b LB: > { %6778 = sst [smem:[#allocation11_spill]] %s5524_s22  ;;  %s6744_s27 = sadd.s32 4294967295, %s5548_s26   ;;  %s5548_s26 = sphi %s5677_s26, %s36_s26   ;;  %s5544_s3 = sphi %s5675_s3, %s6845_s3   ;;  %s5540_s25 = sphi %s5673_s25, %s6844_s25   ;;  %s5536_s2 = sphi %s5671_s2, %s6843_s2   ;;  %s5532_s24 = sphi %s5669_s24, %s6842_s24   ;;  %s5528_s23 = sphi %s5667_s23, %s6841_s23   ;;  %s5524_s22 = sphi %s5665_s22, %s6840_s22   ;;  %s5520_s1 = sphi %s5663_s1, %s6839_s1  }
  0x1c   : > { %6779 = sst [smem:[#allocation12_spill]] %s5528_s23  ;;  %s45_s28 = sadd.s32 1, %s5540_s25 }
  0x1d   : > { %6780 = sst [smem:[#allocation13_spill]] %s5540_s25  ;;  %p46_p0 = scmp.ge.s32.totalorder %s45_s28, 2 }
  0x1e   : > { %6781 = sst [smem:[#allocation14_spill]] %s5544_s3  ;;  %s48_s4 = sadd.s32 1, %s5544_s3 }
  0x1f   : > { %6782 = sst [smem:[#allocation15_spill]] %s5548_s26  ;;  %s253_s29 = sadd.s32 1, %s5528_s23 }
  0x20   : > { %p260_p1 = scmp.ne.s32.totalorder %s5528_s23, %s5524_s22  ;;  %s6847_s28 = smov (%p46_p0, %s45_s28), 0 }
  0x21   : > { %6783 = sst [smem:[#allocation16_spill]] %s6847_s28  ;;  %s6849_s4 = smov (!%p46_p0, %s48_s4), %s5544_s3 }
  0x22   : > { %s250_s30 = ssub.s32 %s5540_s25, %s6847_s28  ;;  %p261_p2 = scmp.eq.s32.totalorder %s5548_s26, 0 }
  0x23   : > { %p50_p3 = scmp.ge.s32.totalorder %s6849_s4, 2  ;;  %p251_p4 = scmp.eq.s32.totalorder %s250_s30, 0 }
  0x24   : > { %p262_p5 = por %p261_p2, %p260_p1  ;;  %p266_p6 = scmp.ne.s32.totalorder %s5524_s22, %s5520_s1 }
  0x25   : > { %s6851_s4 = smov (%p50_p3, %s6849_s4), 0  ;;  %p267_p7 = scmp.eq.s32.totalorder %s6744_s27, 0 }
  0x26   : > { %6784 = sst [smem:[#allocation17_spill]] %s6851_s4  ;;  %p4838_p8 = scmp.lt.s32.totalorder %s5548_s26, 4 }
  0x27   : > { %s5717_s0 = scalar_select %p251_p4, %s5528_s23, %s253_s29  }
  0x28   : > { %s5723_s21 = sand.u32 1, %s5528_s23   ;;  %p5725_p9 = por %p267_p7, %p266_p6 }
  0x29   : > { %6785 = sst [smem:[#allocation18_spill]] %s5717_s0  ;;  %s6746_s3 = sshll.u32 %s5723_s21, 8 }
  0x2a   : > { %s6786_s28 = scalar_select %p5725_p9, 1, 0 }
  0x2b   : > { %s6747_s30 = sshll.u32 %s5540_s25, 12  ;;  %p5731_p10 = pnand %p4838_p8, %p262_p5 }
  0x2c   : > { %s684_s1 = sand.u32 1, %s5548_s26   ;;  %s6788_s10 = sld [smem:[#allocation31_spill]] }
  0x2d   : > { %s6787_s20 = scalar_select %p5731_p10, 1, 0 }
  0x2e   : > { %s688_s0 = scalar_lea.vmem [#allocation6], %s6746_s3  ;;  %s5748_s18 = scalar_lea.sflag [#allocation7], %s684_s1 }
  0x2f   : > { %s695_s23 = sshll.u32 %s688_s0, 4  ;;  %p5754_p13 = pneg %p5731_p10  ;;  %s5745_s23 = int_to_ptr.vmem [resolvable:$true] %s695_s23 }
  0x32   : > { %s5741_s4 = scalar_lea.hbm %s6788_s10, %s6747_s30  ;;  %s5393_s0 = scalar_lea.hbm %s6788_s10, 8192 }
  0x33   : > { %s5388_s17 = scalar_lea.hbm %s5741_s4, 4096  ;;  %p5394_p2 = scmp.lt.u32.totalorder %s5741_s4, %s6788_s10 }
  0x34   : > { %p5389_p12 = scmp.ne.s32.totalorder %s5741_s4, %s5388_s17  ;;  %p5395_p3 = scmp.lt.u32.totalorder %s5393_s0, %s5388_s17 }
  0x35   : > { %p5397_p5 = scmp.lt.u32.totalorder %s5388_s17, %s5741_s4 }
  0x36   : > { %p5391_p0 = pnand %p5754_p13, %p5389_p12  ;;  %p5396_p4 = por %p5395_p3, %p5394_p2 }
  0x38   : > { %p5392_p1 = pneg %p5391_p0  ;;  %p5398_p6 = por %p5397_p5, %p5396_p4 }
  0x3a   : > { %p5399_p7 = pnand %p5398_p6, %p5392_p1 }
  0x3c   : > { %5402 = shalt.err (!%p5399_p7)
}
  0x3d   : > { %s5403_s1 = scalar_lea.vmem %s5745_s23, 4096  ;;  %s5550_s27 = smov [#allocation6]  }
  0x3e   : > { %p5404_p8 = scmp.ne.s32.totalorder %s5745_s23, %s5403_s1  ;;  %s5408_s29 = sshll.u32 %s5550_s27, 4  ;;  %s5409_s29 = int_to_ptr.vmem [resolvable:$false] %s5408_s29 }
  0x3f   : > { %s5410_s3 = scalar_lea.vmem %s5409_s29, 8192  ;;  %p5411_p11 = scmp.lt.s32.totalorder %s5745_s23, %s5409_s29 }
  0x40   : > { %p5406_p12 = pnand %p5404_p8, %p5754_p13  ;;  %p5412_p9 = scmp.lt.s32.totalorder %s5410_s3, %s5403_s1 }
  0x42   : > { %p5407_p0 = pneg %p5406_p12  ;;  %p5413_p2 = por %p5412_p9, %p5411_p11 }
  0x44   : > { %p5414_p3 = pnand %p5413_p2, %p5407_p0 }
  0x46   : > { %5417 = shalt.err (!%p5414_p3)
}
  0x47   : > { %s6749_s17 = smov 128   ;;  %s6750_s30 = smov 8  }
  0x48   : > { %4834 = dma.hbm_to_vmem [thread:$0]  (!%p5731_p10), %s5741_s4, 4096, %s5745_s23, %s5748_s18, %s6749_s17, %s6749_s17, %s6750_s30  }
  0x49   : > { %p780_p9 = scmp.lt.s32.totalorder %s5548_s26, 5  ;;  %p6790_p11 = scmp.ge.s32.totalorder %s5548_s26, 1 }
  0x4a   : > { %s6792_s1 = sshll.u32 %s5540_s25, 12  ;;  %s6793_s8 = sld [smem:[#allocation29_spill]] }
  0x4b   : > { %p5784_p1 = pnand %p6790_p11, %p780_p9  ;;  %s6794_s10 = sshll.u32 %s5723_s21, 8 }
  0x4c   : > { %s660_s15 = scalar_lea.vmem [#allocation4], %s6794_s10  ;;  %s4438_s23 = sshll.u32 %s5723_s21, 1 }
  0x4d   : > { %s6791_s0 = scalar_select %p5784_p1, 1, 0 }
  0x4e   : > { %s667_s14 = sshll.u32 %s660_s15, 4  ;;  %s657_s4 = scalar_lea.sflag [#allocation5], %s5723_s21  ;;  %s5797_s14 = int_to_ptr.vmem [resolvable:$true] %s667_s14 }
  0x50   : > { %s5793_s3 = scalar_lea.hbm %s6793_s8, %s6792_s1  ;;  %s5423_s1 = scalar_lea.hbm %s6793_s8, 8192 }
  0x51   : > { %s5418_s17 = scalar_lea.hbm %s5793_s3, 4096  ;;  %p5424_p7 = scmp.lt.u32.totalorder %s5793_s3, %s6793_s8 }
  0x52   : > { %p5419_p4 = scmp.ne.s32.totalorder %s5793_s3, %s5418_s17  ;;  %p5425_p8 = scmp.lt.u32.totalorder %s5423_s1, %s5418_s17 }
  0x53   : > { %p5427_p0 = scmp.lt.u32.totalorder %s5418_s17, %s5793_s3 }
  0x54   : > { %p5421_p5 = pnand %p5419_p4, %p5754_p13  ;;  %p5426_p12 = por %p5425_p8, %p5424_p7 }
  0x56   : > { %p5422_p6 = pneg %p5421_p5  ;;  %p5428_p2 = por %p5427_p0, %p5426_p12 }
  0x58   : > { %p5429_p3 = pnand %p5428_p2, %p5422_p6 }
  0x5a   : > { %5432 = shalt.err (!%p5429_p3)
}
  0x5b   : > { %s5433_s10 = scalar_lea.vmem %s5797_s14, 4096  ;;  %s5553_s15 = smov [#allocation4]  }
  0x5c   : > { %p5434_p9 = scmp.ne.s32.totalorder %s5797_s14, %s5433_s10  ;;  %s5438_s30 = sshll.u32 %s5553_s15, 4  ;;  %s5439_s30 = int_to_ptr.vmem [resolvable:$false] %s5438_s30 }
  0x5d   : > { %s5440_s13 = scalar_lea.vmem %s5439_s30, 8192  ;;  %p5441_p5 = scmp.lt.s32.totalorder %s5797_s14, %s5439_s30 }
  0x5e   : > { %p5436_p11 = pnand %p5434_p9, %p5754_p13  ;;  %p5442_p1 = scmp.lt.s32.totalorder %s5440_s13, %s5433_s10 }
  0x60   : > { %p5437_p4 = pneg %p5436_p11  ;;  %p5443_p7 = por %p5442_p1, %p5441_p5 }
  0x62   : > { %p5444_p8 = pnand %p5443_p7, %p5437_p4 }
  0x64   : > { %5447 = shalt.err (!%p5444_p8)
}
  0x65   : > { %s6795_s17 = smov 8   ;;  %s6796_s27 = smov 128  }
  0x66   : > { %4831 = dma.hbm_to_vmem [thread:$0]  (!%p5731_p10), %s5793_s3, 4096, %s5797_s14, %s657_s4, %s6796_s27, %s6796_s27, %s6795_s17  }
  0x67   : > { %s4736_s1 = sshll.u32 %s5540_s25, 5  ;;  %s6797_s19 = sld [smem:[#allocation40_spill]] }
  0x68   : > { %s767_s30 = scalar_lea.vmem [#allocation8], %s4438_s23 }
  0x69   : > { %s775_s13 = sshll.u32 %s767_s30, 4  ;;  %s776_s13 = int_to_ptr.vmem [resolvable:$true] %s775_s13 }
  0x6d   : > { %s5831_s10 = scalar_lea.hbm %s6797_s19, %s4736_s1  ;;  %s5453_s4 = scalar_lea.hbm %s6797_s19, 64 }
  0x6e   : > { %s5448_s8 = scalar_lea.hbm %s5831_s10, 32  ;;  %p5454_p0 = scmp.lt.u32.totalorder %s5831_s10, %s6797_s19 }
  0x6f   : > { %p5449_p1 = scmp.ne.s32.totalorder %s5831_s10, %s5448_s8  ;;  %p5455_p2 = scmp.lt.u32.totalorder %s5453_s4, %s5448_s8 }
  0x70   : > { %p5457_p9 = scmp.lt.u32.totalorder %s5448_s8, %s5831_s10 }
  0x71   : > { %p5451_p6 = pnand %p5449_p1, %p5754_p13  ;;  %p5456_p3 = por %p5455_p2, %p5454_p0 }
  0x73   : > { %p5452_p12 = pneg %p5451_p6  ;;  %p5458_p11 = por %p5457_p9, %p5456_p3 }
  0x75   : > { %p5459_p4 = pnand %p5458_p11, %p5452_p12 }
  0x77   : > { %5462 = shalt.err (!%p5459_p4)
}
  0x78   : > { %s5463_s21 = scalar_lea.vmem %s776_s13, 32  ;;  %s5554_s23 = smov [#allocation8]  }
  0x79   : > { %p5464_p5 = scmp.ne.s32.totalorder %s776_s13, %s5463_s21  ;;  %s5468_s1 = sshll.u32 %s5554_s23, 4  ;;  %s5469_s1 = int_to_ptr.vmem [resolvable:$false] %s5468_s1 }
  0x7a   : > { %s5470_s29 = scalar_lea.vmem %s5469_s1, 64  ;;  %p5471_p1 = scmp.lt.s32.totalorder %s776_s13, %s5469_s1 }
  0x7b   : > { %p5466_p7 = pnand %p5464_p5, %p5754_p13  ;;  %p5472_p6 = scmp.lt.s32.totalorder %s5470_s29, %s5463_s21 }
  0x7d   : > { %p5467_p8 = pneg %p5466_p7  ;;  %p5473_p10 = por %p5472_p6, %p5471_p1 }
  0x7f   : > { %p5474_p0 = pnand %p5473_p10, %p5467_p8 }
  0x81   : > { %5477 = shalt.err (!%p5474_p0)
}
  0x82   : > { %p6798_p2 = scmp.ne.s32.totalorder %s6787_s20, 0  ;;  %p6799_p12 = scmp.ne.s32.totalorder %s6791_s0, 0 }
  0x84   : > { %4837 = dma.hbm_to_vmem [thread:$0]  (!%p6798_p2), %s5831_s10, 32, %s776_s13, %s5748_s18  }
  0x85   : > { %784 = sbr.rel (%p6799_p12) target bundleno = 3550 (0xdde), region = 100 }
  0x8c   : > { %s5856_s8 = sand.u32 1, %s5524_s22   ;;  %p6801_p10 = scmp.ne.s32.totalorder %s6786_s28, 0 }
  0x8d   : > { %s4442_s16 = sshll.u32 %s5856_s8, 8  ;;  %s787_s15 = scalar_lea.sflag [#allocation5], %s5856_s8 }
  0x8e   : > { %s5860_s30 = scalar_lea.vmem [#allocation4], %s4442_s16 }
  0x8f   : > { %6800 = sst [smem:[#allocation19_spill]] %s5860_s30 }
  0x90   : > { %5511 = dma.done.wait (%p6801_p10), %s787_s15, 4096  }
  0x91   : > { %5513 = vsyncadd (%p6801_p10), %s787_s15, 4294963200  ;;  %s6802_s18 = sadd.s32 4294967295, %s5548_s26   ;;  %s5868_s10 = scalar_lea.vmem [#allocation6], %s4442_s16 }
  0x92   : > { %s795_s20 = sand.u32 1, %s6802_s18   ;;  %6803 = sst [smem:[#allocation20_spill]] %s5868_s10 }
  0x93   : > { %s796_s0 = scalar_lea.sflag [#allocation7], %s795_s20 }
  0x94   : > { %5515 = dma.done.wait (%p6801_p10), %s796_s0, 4128  }
  0x95   : > { %5517 = vsyncadd (%p6801_p10), %s796_s0, 4294963168  ;;  %s4444_s13 = sshll.u32 %s5856_s8, 1  ;;  %s4445_s14 = sshll.u32 %s5536_s2, 1 }
  0x96   : > { %p942_p13 = scmp.lt.s32.totalorder %s4445_s14, 3  ;;  %p953_p3 = scmp.lt.s32.totalorder %s5532_s24, 1 }
  0x97   : > { %s6804_s21 = sld [smem:[#allocation24_spill]]  ;;  %s6806_s28 = sld [smem:[#allocation23_spill]] }
  0x98   : > { %s6853_s14 = smov (!%p942_p13, %s4445_s14), 3  ;;  %s6807_s0 = sld [smem:[#allocation27_spill]] }
  0x99   : > { %s954_s3 = scalar_select %p953_p3, %s5532_s24, 1 }
  0x9a   : > { %s4737_s4 = sshll.u32 %s6853_s14, 4  ;;  %s6808_s6 = sld [smem:[#allocation28_spill]] }
  0x9b   : > { %s4738_s15 = sshll.u32 %s954_s3, 8  ;;  %s5891_s2 = sshll.u32 %s954_s3, 1 }
  0x9c   : > { %s6813_s29 = sld [smem:[#allocation35_spill]]  ;;  %s4461_s18 = sshll.u32 %s954_s3, 2 }
  0x9d   : > { %s5881_s23 = scalar_lea.vmem %s6804_s21, %s6853_s14  ;;  %s946_s16 = scalar_lea.vmem %s6806_s28, %s4737_s4 }
  0x9e   : > { %6805 = sst [smem:[#allocation21_spill]] %s5881_s23  ;;  %s5889_s8 = scalar_lea.vmem %s6807_s0, %s4738_s15 }
  0x9f   : > { %s6815_s9 = sld [smem:[#allocation36_spill]]  ;;  %s6816_s26 = sld [smem:[#allocation37_spill]] }
  0xa0   : > { %s5900_s21 = scalar_lea.vmem %s6808_s6, %s4738_s15  ;;  %s4740_s6 = sshll.u32 %s954_s3, 9 }
  0xa1   : > { %s6817_s17 = sld [smem:[#allocation38_spill]]  ;;  %s6818_s30 = sld [smem:[#allocation39_spill]] }
  0xa2   : > { %s5925_s28 = scalar_lea.vmem %s6813_s29, %s4740_s6  ;;  %s4467_s29 = sshll.u32 %s6853_s14, 1 }
  0xa3   : > { %6814 = sst [smem:[#allocation22_spill]] %s5925_s28  ;;  %s6819_s11 = sld [smem:[#allocation41_spill]] }
  0xa4   : > { %p4468_p9 = scmp.ne.s32.totalorder %s5532_s24, 0 }
  0xa5   : > { %s5930_s25 = scalar_lea.vmem %s6815_s9, %s4461_s18  ;;  %s5935_s10 = scalar_lea.vmem %s6816_s26, %s4740_s6  ;;  %v1020_v0 = vld [vmem:[%s946_s16] sm:$0xff] (!%p4468_p9)  ;;  %v1022_v1 = vld [vmem:[%s946_s16 + $0x10] sm:$0xff] (!%p4468_p9)  ;;  %v1021_v2 = vld [vmem:[%s946_s16 + $0x8] sm:$0xff] (!%p4468_p9)  ;;  %v1100_v46 = vlaneseq (!%p4468_p9) }
  0xa6   : > { %s5950_s9 = scalar_lea.vmem [#allocation8], %s4444_s13  ;;  %1019 = sbr.rel (%p4468_p9) target bundleno = 492 (0x1ec), region = 116  ;;  %v1024_v3 = vunpack.c.l.bf16 (!%p4468_p9), %v1020_v0  ;;  %v1025_v4 = vunpack.c.h.bf16 (!%p4468_p9), %v1020_v0  ;;  %v1028_v5 = vunpack.c.l.bf16 (!%p4468_p9), %v1022_v1  ;;  %v1029_v6 = vunpack.c.h.bf16 (!%p4468_p9), %v1022_v1  ;;  %v1023_v7 = vld [vmem:[%s946_s16 + $0x18] sm:$0xff] (!%p4468_p9) }
  0xa7   : > { %s1004_s15 = scalar_lea.vmem %s6817_s17, %s5891_s2  ;;  %s1008_s1 = scalar_lea.vmem %s6818_s30, %s5891_s2  ;;  %v1026_v8 = vunpack.c.l.bf16 (!%p4468_p9), %v1021_v2  ;;  %v1027_v9 = vunpack.c.h.bf16 (!%p4468_p9), %v1021_v2  ;;  %v1030_v10 = vunpack.c.l.bf16 (!%p4468_p9), %v1023_v7  ;;  %v1031_v11 = vunpack.c.h.bf16 (!%p4468_p9), %v1023_v7 }
  0xa8   : > { %v1034_v12 = vadd.f32 (!%p4468_p9), %v1025_v4, %v1024_v3  ;;  %v1040_v13 = vadd.f32 (!%p4468_p9), %v1029_v6, %v1028_v5  ;;  %v1101_v52 = vshrl.u32 (!%p4468_p9), %v1100_v46, 7  ;;  %s6820_s12 = sld [smem:[#allocation25_spill]] (!%p4468_p9)  ;;  %s6821_s14 = sld [smem:[#allocation26_spill]] (!%p4468_p9) }
  0xa9   : > { %s5948_s19 = scalar_lea.vmem %s6819_s11, %s4467_s29  ;;  %v1037_v14 = vadd.f32 (!%p4468_p9), %v1027_v9, %v1026_v8  ;;  %v1043_v15 = vadd.f32 (!%p4468_p9), %v1031_v11, %v1030_v10 }
  0xaa   : > { %1035 = vadd.xlane.f32.xlu0 (!%p4468_p9), %v1034_v12  ;;  %1041 = vadd.xlane.f32.xlu1 (!%p4468_p9), %v1040_v13  ;;  %v1102_v57 = vsub.s32 (!%p4468_p9), 0, %v1101_v52  ;;  %v1106_v58 = vsub.s32 (!%p4468_p9), 1, %v1101_v52 }
  0xae   : > { %1038 = vadd.xlane.f32.xlu0 %v1037_v14  ;;  %1044 = vadd.xlane.f32.xlu1 %v1043_v15  ;;  %v1032_v60 = vld [vmem:[%s6820_s12] sm:$0x3] }
  0xaf   : > { %v1033_v61 = vld [vmem:[%s6821_s14] sm:$0x3]  ;;  %v1103_v62 = vrot.slane %v1032_v60, %v1102_v57  ;;  %v1107_v63 = vrot.slane %v1032_v60, %v1106_v58 }
  0xb0   : > { %v1122_v1 = vrot.slane %v1033_v61, %v1102_v57  ;;  %v1126_v2 = vrot.slane %v1033_v61, %v1106_v58 }
 0x137   : > { %v1036_v16 = vpop.xlane.xlu0 %1035  ;;  %v1042_v17 = vpop.xlane.xlu1 %1041 }
 0x138   : > { %v1047_v18 = vmul.f32 0.00390625, %v1036_v16  ;;  %v1049_v19 = vmul.f32 0.00390625, %v1042_v17 }
 0x13a   : > { %v1051_v20 = vsub.f32 %v1024_v3, %v1047_v18  ;;  %v1052_v21 = vsub.f32 %v1025_v4, %v1047_v18  ;;  %v5953_v22 = vsub.f32 %v1028_v5, %v1049_v19  ;;  %v5955_v23 = vsub.f32 %v1029_v6, %v1049_v19 }
 0x13b   : > { %v1039_v24 = vpop.xlane.xlu0 %1038  ;;  %v1045_v25 = vpop.xlane.xlu1 %1044 }
 0x13c   : > { %v1048_v26 = vmul.f32 0.00390625, %v1039_v24  ;;  %v1050_v27 = vmul.f32 0.00390625, %v1045_v25  ;;  %v1059_v28 = vmul.f32 %v1051_v20, %v1051_v20  ;;  %v1060_v29 = vmul.f32 %v1052_v21, %v1052_v21 }
 0x13d   : > { %v1063_v30 = vmul.f32 %v5953_v22, %v5953_v22  ;;  %v1064_v31 = vmul.f32 %v5955_v23, %v5955_v23 }
 0x13e   : > { %v1053_v32 = vsub.f32 %v1026_v8, %v1048_v26  ;;  %v1054_v33 = vsub.f32 %v1027_v9, %v1048_v26  ;;  %v1057_v34 = vsub.f32 %v1030_v10, %v1050_v27  ;;  %v1058_v35 = vsub.f32 %v1031_v11, %v1050_v27 }
 0x13f   : > { %v1067_v36 = vadd.f32 %v1060_v29, %v1059_v28  ;;  %v1073_v41 = vadd.f32 %v1064_v31, %v1063_v30 }
 0x140   : > { %v1061_v37 = vmul.f32 %v1053_v32, %v1053_v32  ;;  %v1062_v38 = vmul.f32 %v1054_v33, %v1054_v33  ;;  %v1065_v39 = vmul.f32 %v1057_v34, %v1057_v34  ;;  %v1066_v40 = vmul.f32 %v1058_v35, %v1058_v35 }
 0x141   : > { %1068 = vadd.xlane.f32.xlu0 %v1067_v36 }
 0x142   : > { %v1070_v42 = vadd.f32 %v1062_v38, %v1061_v37  ;;  %v1076_v43 = vadd.f32 %v1066_v40, %v1065_v39 }
 0x144   : > { %1071 = vadd.xlane.f32.xlu1 %v1070_v42 }
 0x145   : > { %1074 = vadd.xlane.f32.xlu0 %v1073_v41 }
 0x148   : > { %1077 = vadd.xlane.f32.xlu1 %v1076_v43 }
 0x1ce   : > { %v1069_v44 = vpop.xlane.xlu0 %1068 }
 0x1cf   : > { %v1079_v45 = vmul.f32 0.00390625, %v1069_v44 }
 0x1d1   : > { %v1083_v47 = vadd.f32 1e-05, %v1079_v45  ;;  %v1072_v48 = vpop.xlane.xlu1 %1071 }
 0x1d2   : > { %v1080_v49 = vmul.f32 0.00390625, %v1072_v48  ;;  %v1075_v50 = vpop.xlane.xlu0 %1074 }
 0x1d3   : > { %4908 = vrsqrt.f32 %v1083_v47  ;;  %v1081_v51 = vmul.f32 0.00390625, %v1075_v50 }
 0x1d4   : > { %v1084_v53 = vadd.f32 1e-05, %v1080_v49 }
 0x1d5   : > { %v1085_v54 = vadd.f32 1e-05, %v1081_v51  ;;  %v1078_v55 = vpop.xlane.xlu1 %1077 }
 0x1d6   : > { %4910 = vrsqrt.f32 %v1084_v53  ;;  %v1082_v56 = vmul.f32 0.00390625, %v1078_v55 }
 0x1d7   : > { %4912 = vrsqrt.f32 %v1085_v54 }
 0x1d8   : > { %v1086_v59 = vadd.f32 1e-05, %v1082_v56 }
 0x1da   : > { %4914 = vrsqrt.f32 %v1086_v59 }
 0x1dd   : > { %v4909_v0 = vpop.eup %4908 }
 0x1de   : > { %v1091_v3 = vmul.f32 %v4909_v0, %v1051_v20  ;;  %v1092_v4 = vmul.f32 %v4909_v0, %v1052_v21 }
 0x1e0   : > { %v4911_v5 = vpop.eup %4910  ;;  %v1110_v6 = vmul.f32 %v1103_v62, %v1091_v3  ;;  %v1111_v7 = vmul.f32 %v1107_v63, %v1092_v4 }
 0x1e1   : > { %v4913_v8 = vpop.eup %4912  ;;  %v1093_v9 = vmul.f32 %v4911_v5, %v1053_v32  ;;  %v1094_v10 = vmul.f32 %v4911_v5, %v1054_v33 }
 0x1e2   : > { %v1129_v11 = vadd.f32 %v1122_v1, %v1110_v6  ;;  %v1130_v12 = vadd.f32 %v1126_v2, %v1111_v7  ;;  %v1095_v13 = vmul.f32 %v4913_v8, %v5953_v22  ;;  %v1096_v14 = vmul.f32 %v4913_v8, %v5955_v23 }
 0x1e3   : > { %v1112_v15 = vmul.f32 %v1103_v62, %v1093_v9  ;;  %v1113_v16 = vmul.f32 %v1107_v63, %v1094_v10 }
 0x1e4   : > { %v4915_v17 = vpop.eup %4914  ;;  %1137 = vst [vmem:[#allocation2] sm:$0xff] %v1129_v11  ;;  %1138 = vst [vmem:[#allocation2 + $0x8] sm:$0xff] %v1130_v12  ;;  %v1114_v18 = vmul.f32 %v1103_v62, %v1095_v13  ;;  %v1115_v19 = vmul.f32 %v1107_v63, %v1096_v14 }
 0x1e5   : > { %v1131_v20 = vadd.f32 %v1122_v1, %v1112_v15  ;;  %v1132_v21 = vadd.f32 %v1126_v2, %v1113_v16  ;;  %v1097_v24 = vmul.f32 %v4915_v17, %v1057_v34  ;;  %v1098_v25 = vmul.f32 %v4915_v17, %v1058_v35 }
 0x1e6   : > { %v1133_v26 = vadd.f32 %v1122_v1, %v1114_v18  ;;  %v1134_v27 = vadd.f32 %v1126_v2, %v1115_v19 }
 0x1e7   : > { %1139 = vst [vmem:[#allocation2 + $0x10] sm:$0xff] %v1131_v20  ;;  %1140 = vst [vmem:[#allocation2 + $0x18] sm:$0xff] %v1132_v21  ;;  %v1116_v28 = vmul.f32 %v1103_v62, %v1097_v24  ;;  %v1117_v29 = vmul.f32 %v1107_v63, %v1098_v25 }
 0x1e8   : > { %1141 = vst [vmem:[#allocation2 + $0x20] sm:$0xff] %v1133_v26  ;;  %1142 = vst [vmem:[#allocation2 + $0x28] sm:$0xff] %v1134_v27 }
 0x1e9   : > { %v1135_v22 = vadd.f32 %v1122_v1, %v1116_v28  ;;  %v1136_v23 = vadd.f32 %v1126_v2, %v1117_v29 }
 0x1eb   : > { %1143 = vst [vmem:[#allocation2 + $0x30] sm:$0xff] %v1135_v22  ;;  %1144 = vst [vmem:[#allocation2 + $0x38] sm:$0xff] %v1136_v23 }
 0x1ec PF: > { %v4916_v30 = vld [vmem:[%s5889_s8 + $0x4] ss:$8 sps:$4 sm:$0xff]   ;;  %v4918_v31 = vld [vmem:[%s5889_s8] ss:$8 sps:$4 sm:$0xff]   ;;  %v4919_v32 = vld [vmem:[%s5889_s8 + $0x14] ss:$8 sps:$4 sm:$0xff]   ;;  %s6822_s4 = scalar_lea.vmem %s6726_s5, %s5891_s2  ;;  %s6823_s27 = scalar_lea.vmem %s6728_s7, %s5891_s2 }
 0x1ed   : > { %1361 = vmatprep.subr.bf16.mxu0 %v4916_v30  ;;  %v4921_v33 = vld [vmem:[%s5889_s8 + $0x10] ss:$8 sps:$4 sm:$0xff]   ;;  %v4922_v34 = vld [vmem:[%s5889_s8 + $0x24] ss:$8 sps:$4 sm:$0xff]   ;;  %v4924_v35 = vld [vmem:[%s5889_s8 + $0x20] ss:$8 sps:$4 sm:$0xff]  }
 0x1ee   : > { %1362 = vmatpush1.bf16.msra.mxu0 %v4918_v31  ;;  %v4925_v36 = vld [vmem:[%s5889_s8 + $0x34] ss:$8 sps:$4 sm:$0xff]   ;;  %v4927_v37 = vld [vmem:[%s5889_s8 + $0x30] ss:$8 sps:$4 sm:$0xff]   ;;  %v4928_v38 = vld [vmem:[%s5889_s8 + $0x44] ss:$8 sps:$4 sm:$0xff]  }
 0x1ef   : > { %1363 = vmatprep.subr.bf16.mxu0 %v4919_v32  ;;  %v4930_v39 = vld [vmem:[%s5889_s8 + $0x40] ss:$8 sps:$4 sm:$0xff]   ;;  %v4931_v40 = vld [vmem:[%s5889_s8 + $0x54] ss:$8 sps:$4 sm:$0xff]   ;;  %v4933_v41 = vld [vmem:[%s5889_s8 + $0x50] ss:$8 sps:$4 sm:$0xff]  }
 0x1f0   : > { %v4934_v42 = vld [vmem:[%s5889_s8 + $0x64] ss:$8 sps:$4 sm:$0xff]   ;;  %v1148_v44 = vld [vmem:[#allocation2 + $0x18] sm:$0xff]  ;;  %v4936_v46 = vld [vmem:[%s5889_s8 + $0x60] ss:$8 sps:$4 sm:$0xff]   ;;  %vm5556_vm0 = vmmov 0  }
 0x1f1   : > { %v1146_v43 = vld [vmem:[#allocation2 + $0x8] sm:$0xff]  ;;  %v4937_v47 = vld [vmem:[%s5889_s8 + $0x74] ss:$8 sps:$4 sm:$0xff]   ;;  %v4939_v48 = vld [vmem:[%s5889_s8 + $0x70] ss:$8 sps:$4 sm:$0xff]   ;;  %s6824_s18 = sld [smem:[#allocation19_spill]] }
 0x1f2   : > { %1364 = vmatpush1.bf16.msra.mxu0 %v4921_v33  ;;  %v5982_v45 = vpack.c.bf16 %v1148_v44, %v1146_v43  ;;  %v4940_v49 = vld [vmem:[%s5889_s8 + $0x84] ss:$8 sps:$4 sm:$0xff]   ;;  %v4942_v50 = vld [vmem:[%s5889_s8 + $0x80] ss:$8 sps:$4 sm:$0xff]   ;;  %v4943_v51 = vld [vmem:[%s5889_s8 + $0x94] ss:$8 sps:$4 sm:$0xff]   ;;  %v1191_v43 = vlaneseq }
 0x1f3   : > { %1365 = vmatprep.subr.bf16.mxu0 %v4922_v34  ;;  %v4945_v52 = vld [vmem:[%s5889_s8 + $0x90] ss:$8 sps:$4 sm:$0xff]   ;;  %v4946_v53 = vld [vmem:[%s5889_s8 + $0xa4] ss:$8 sps:$4 sm:$0xff]   ;;  %v4948_v54 = vld [vmem:[%s5889_s8 + $0xa0] ss:$8 sps:$4 sm:$0xff]  }
 0x1f4   : > { %1393 = vmatprep.mubr.bf16.mxu0 %v5982_v45  ;;  %v4949_v55 = vld [vmem:[%s5889_s8 + $0xb4] ss:$8 sps:$4 sm:$0xff]   ;;  %v4951_v56 = vld [vmem:[%s5889_s8 + $0xb0] ss:$8 sps:$4 sm:$0xff]   ;;  %v4952_v57 = vld [vmem:[%s5889_s8 + $0xc4] ss:$8 sps:$4 sm:$0xff]  }
 0x1f5   : > { %v4954_v58 = vld [vmem:[%s5889_s8 + $0xc0] ss:$8 sps:$4 sm:$0xff]   ;;  %v4955_v59 = vld [vmem:[%s5889_s8 + $0xd4] ss:$8 sps:$4 sm:$0xff]   ;;  %v4957_v60 = vld [vmem:[%s5889_s8 + $0xd0] ss:$8 sps:$4 sm:$0xff]  }
 0x1f6   : > { %1366 = vmatpush1.bf16.msra.mxu0 %v4924_v35  ;;  %v4958_v61 = vld [vmem:[%s5889_s8 + $0xe4] ss:$8 sps:$4 sm:$0xff]   ;;  %v4960_v62 = vld [vmem:[%s5889_s8 + $0xe0] ss:$8 sps:$4 sm:$0xff]   ;;  %v4961_v63 = vld [vmem:[%s5889_s8 + $0xf4] ss:$8 sps:$4 sm:$0xff]  }
 0x1f7   : > { %1367 = vmatprep.subr.bf16.mxu0 %v4925_v36  ;;  %v4963_v0 = vld [vmem:[%s5889_s8 + $0xf0] ss:$8 sps:$4 sm:$0xff]   ;;  %v1145_v1 = vld [vmem:[#allocation2] sm:$0xff]  ;;  %v1150_v4 = vld [vmem:[#allocation2 + $0x28] sm:$0xff]  ;;  %v6054_v44 = vshrl.u32 %v1191_v43, 7  ;;  %s6825_s20 = sld [smem:[#allocation21_spill]] }
 0x1f8   : > { %v1147_v2 = vld [vmem:[#allocation2 + $0x10] sm:$0xff]  ;;  %v4966_v3 = vld [vmem:[%s5900_s21 + $0x4] ss:$8 sps:$4 sm:$0xff]   ;;  %v1152_v5 = vld [vmem:[#allocation2 + $0x38] sm:$0xff]  ;;  %vm2044_vm1 = vcmask 130048   ;;  %s6826_s23 = sld [smem:[#allocation30_spill]] }
 0x1f9   : > { %v4964_v6 = vld [vmem:[%s5900_s21] ss:$8 sps:$4 sm:$0xff]   ;;  %v6006_v7 = vpack.c.bf16 %v1147_v2, %v1145_v1  ;;  %v4969_v8 = vld [vmem:[%s5900_s21 + $0x14] ss:$8 sps:$4 sm:$0xff]   ;;  %v6009_v9 = vpack.c.bf16 %v1152_v5, %v1150_v4  ;;  %v4967_v10 = vld [vmem:[%s5900_s21 + $0x10] ss:$8 sps:$4 sm:$0xff]  }
 0x1fa   : > { %1368 = vmatpush1.bf16.msra.mxu0 %v4927_v37  ;;  %v1149_v11 = vld [vmem:[#allocation2 + $0x20] sm:$0xff]  ;;  %v1151_v12 = vld [vmem:[#allocation2 + $0x30] sm:$0xff]  ;;  %s6828_s30 = sld [smem:[#allocation20_spill]]  ;;  %s6829_s6 = sld [smem:[#allocation32_spill]] }
 0x1fb   : > { %1369 = vmatprep.subr.bf16.mxu0 %v4928_v38  ;;  %v4972_v13 = vld [vmem:[%s5900_s21 + $0x24] ss:$8 sps:$4 sm:$0xff]   ;;  %v4970_v14 = vld [vmem:[%s5900_s21 + $0x20] ss:$8 sps:$4 sm:$0xff]   ;;  %v4975_v15 = vld [vmem:[%s5900_s21 + $0x34] ss:$8 sps:$4 sm:$0xff]   ;;  %v6017_v16 = vpack.c.bf16 %v1151_v12, %v1149_v11 }
 0x1fc   : > { %v4973_v17 = vld [vmem:[%s5900_s21 + $0x30] ss:$8 sps:$4 sm:$0xff]   ;;  %v4978_v18 = vld [vmem:[%s5900_s21 + $0x44] ss:$8 sps:$4 sm:$0xff]   ;;  %v4976_v19 = vld [vmem:[%s5900_s21 + $0x40] ss:$8 sps:$4 sm:$0xff]  }
 0x1fd   : > { %v4981_v20 = vld [vmem:[%s5900_s21 + $0x54] ss:$8 sps:$4 sm:$0xff]   ;;  %v4979_v21 = vld [vmem:[%s5900_s21 + $0x50] ss:$8 sps:$4 sm:$0xff]   ;;  %v4984_v24 = vld [vmem:[%s5900_s21 + $0x64] ss:$8 sps:$4 sm:$0xff]  }
 0x1fe   : > { %1370 = vmatpush1.bf16.msra.mxu0 %v4930_v39  ;;  %v4982_v25 = vld [vmem:[%s5900_s21 + $0x60] ss:$8 sps:$4 sm:$0xff]   ;;  %v4987_v26 = vld [vmem:[%s5900_s21 + $0x74] ss:$8 sps:$4 sm:$0xff]   ;;  %v4985_v27 = vld [vmem:[%s5900_s21 + $0x70] ss:$8 sps:$4 sm:$0xff]   ;;  %s6827_s17 = scalar_lea.vmem %s6826_s23, %s5891_s2 }
 0x1ff   : > { %1371 = vmatprep.subr.bf16.mxu0 %v4931_v40  ;;  %v4990_v28 = vld [vmem:[%s5900_s21 + $0x84] ss:$8 sps:$4 sm:$0xff]   ;;  %v4988_v29 = vld [vmem:[%s5900_s21 + $0x80] ss:$8 sps:$4 sm:$0xff]   ;;  %v4993_v22 = vld [vmem:[%s5900_s21 + $0x94] ss:$8 sps:$4 sm:$0xff]  }
 0x200   : > { %v4991_v23 = vld [vmem:[%s5900_s21 + $0x90] ss:$8 sps:$4 sm:$0xff]   ;;  %v4996_v30 = vld [vmem:[%s5900_s21 + $0xa4] ss:$8 sps:$4 sm:$0xff]   ;;  %v4994_v31 = vld [vmem:[%s5900_s21 + $0xa0] ss:$8 sps:$4 sm:$0xff]   ;;  %s6830_s11 = scalar_lea.vmem %s6829_s6, %s5891_s2 }
 0x201   : > { %v4999_v32 = vld [vmem:[%s5900_s21 + $0xb4] ss:$8 sps:$4 sm:$0xff]   ;;  %v4997_v33 = vld [vmem:[%s5900_s21 + $0xb0] ss:$8 sps:$4 sm:$0xff]   ;;  %v5002_v34 = vld [vmem:[%s5900_s21 + $0xc4] ss:$8 sps:$4 sm:$0xff]  }
 0x202   : > { %1372 = vmatpush1.bf16.msra.mxu0 %v4933_v41  ;;  %v5000_v35 = vld [vmem:[%s5900_s21 + $0xc0] ss:$8 sps:$4 sm:$0xff]   ;;  %v5005_v36 = vld [vmem:[%s5900_s21 + $0xd4] ss:$8 sps:$4 sm:$0xff]   ;;  %v5003_v37 = vld [vmem:[%s5900_s21 + $0xd0] ss:$8 sps:$4 sm:$0xff]  }
 0x203   : > { %1373 = vmatprep.subr.bf16.mxu0 %v4934_v42  ;;  %v5008_v38 = vld [vmem:[%s5900_s21 + $0xe4] ss:$8 sps:$4 sm:$0xff]   ;;  %v5006_v39 = vld [vmem:[%s5900_s21 + $0xe0] ss:$8 sps:$4 sm:$0xff]   ;;  %v5011_v40 = vld [vmem:[%s5900_s21 + $0xf4] ss:$8 sps:$4 sm:$0xff]  }
 0x204   : > { %v5009_v41 = vld [vmem:[%s5900_s21 + $0xf0] ss:$8 sps:$4 sm:$0xff]   ;;  %v5555_v42 = vmov 0.0   ;;  %s6831_s12 = sld [smem:[#allocation22_spill]]  ;;  %s6832_s14 = sld [smem:[#allocation33_spill]] }
 0x205   : > { %4758 = vmatprep.subr.bf16.mxu1 %v5555_v42  ;;  %4760 = vmatprep.mubr.msk.bf16.mxu1 %vm5556_vm0, %v5555_v42  ;;  %s6834_s21 = sld [smem:[#allocation34_spill]]  ;;  %p4731_p11 = scmp.ne.s32.totalorder %s5532_s24, 1 }
 0x206   : > { %1374 = vmatpush1.bf16.msra.mxu0 %v4936_v46  ;;  %v6057_v46 = vsub.s32 0, %v6054_v44  ;;  %vm4125_vm2 = vcmp.lt.s32.totalorder (!%p4731_p11), %v1191_v43, 256 }
 0x207   : > { %1375 = vmatprep.subr.bf16.mxu0 %v4937_v47  ;;  %v1189_v47 = vld [vmem:[%s6822_s4] sm:$0x3] }
 0x20a   : > { %1376 = vmatpush1.bf16.msra.mxu0 %v4939_v48  ;;  %v1194_v48 = vrot.slane %v1189_v47, %v6057_v46  ;;  %s6833_s16 = scalar_lea.vmem %s6832_s14, %s5891_s2 }
 0x20b   : > { %1377 = vmatprep.subr.bf16.mxu0 %v4940_v49  ;;  %s6835_s28 = scalar_lea.vmem %s6834_s21, %s5891_s2 }
 0x20e   : > { %1378 = vmatpush1.bf16.msra.mxu0 %v4942_v50 }
 0x20f   : > { %1379 = vmatprep.subr.bf16.mxu0 %v4943_v51 }
 0x212   : > { %1380 = vmatpush1.bf16.msra.mxu0 %v4945_v52 }
 0x213   : > { %1381 = vmatprep.subr.bf16.mxu0 %v4946_v53 }
 0x216   : > { %1382 = vmatpush1.bf16.msra.mxu0 %v4948_v54 }
 0x217   : > { %1383 = vmatprep.subr.bf16.mxu0 %v4949_v55 }
 0x21a   : > { %1384 = vmatpush1.bf16.msra.mxu0 %v4951_v56 }
 0x21b   : > { %1385 = vmatprep.subr.bf16.mxu0 %v4952_v57 }
 0x21e   : > { %1386 = vmatpush1.bf16.msra.mxu0 %v4954_v58 }
 0x21f   : > { %1387 = vmatprep.subr.bf16.mxu0 %v4955_v59 }
 0x222   : > { %1388 = vmatpush1.bf16.msra.mxu0 %v4957_v60 }
 0x223   : > { %1389 = vmatprep.subr.bf16.mxu0 %v4958_v61 }
 0x226   : > { %1390 = vmatpush1.bf16.msra.mxu0 %v4960_v62 }
 0x227   : > { %1391 = vmatprep.subr.bf16.mxu0 %v4961_v63 }
 0x22a   : > { %1392 = vmatpush1.bf16.msra.mxu0 %v4963_v0 }
 0x22b   : > { %1622 = vmatprep.subr.bf16.mxu0 %v4966_v3 }
 0x22d   : > { %1394 = vmatmul.mubr.bf16.vlgmr.msra.gmra.mrb[0].mxu0 %v6006_v7 }
 0x22e   : > { %1623 = vmatpush1.bf16.msra.mxu0 %v4964_v6  ;;  %1403 = vmatprep.mubr.bf16.mxu0 %v6009_v9  ;;  %v1450_v6 = vld [vmem:[%s6823_s27] sm:$0x3] }
 0x22f   : > { %1624 = vmatprep.subr.bf16.mxu0 %v4969_v8 }
 0x232   : > { %1625 = vmatpush1.bf16.msra.mxu0 %v4967_v10  ;;  %v1455_v10 = vrot.slane %v1450_v6, %v6057_v46 }
 0x233   : > { %1626 = vmatprep.subr.bf16.mxu0 %v4972_v13 }
 0x235   : > { %1404 = vmatmul.mubr.bf16.gmra.mrb[4].mxu0 %v6017_v16 }
 0x236   : > { %1627 = vmatpush1.bf16.msra.mxu0 %v4970_v14  ;;  %1654 = vmatprep.mubr.bf16.mxu0 %v5982_v45 }
 0x237   : > { %1628 = vmatprep.subr.bf16.mxu0 %v4975_v15 }
 0x23a   : > { %1629 = vmatpush1.bf16.msra.mxu0 %v4973_v17 }
 0x23b   : > { %1630 = vmatprep.subr.bf16.mxu0 %v4978_v18 }
 0x23e   : > { %1631 = vmatpush1.bf16.msra.mxu0 %v4976_v19 }
 0x23f   : > { %1632 = vmatprep.subr.bf16.mxu0 %v4981_v20 }
 0x242   : > { %1633 = vmatpush1.bf16.msra.mxu0 %v4979_v21 }
 0x243   : > { %1634 = vmatprep.subr.bf16.mxu0 %v4984_v24 }
 0x246   : > { %1635 = vmatpush1.bf16.msra.mxu0 %v4982_v25 }
 0x247   : > { %1636 = vmatprep.subr.bf16.mxu0 %v4987_v26 }
 0x24a   : > { %1637 = vmatpush1.bf16.msra.mxu0 %v4985_v27 }
 0x24b   : > { %1638 = vmatprep.subr.bf16.mxu0 %v4990_v28 }
 0x24e   : > { %1639 = vmatpush1.bf16.msra.mxu0 %v4988_v29 }
 0x24f   : > { %1640 = vmatprep.subr.bf16.mxu0 %v4993_v22 }
 0x252   : > { %1641 = vmatpush1.bf16.msra.mxu0 %v4991_v23 }
 0x253   : > { %1642 = vmatprep.subr.bf16.mxu0 %v4996_v30 }
 0x256   : > { %1643 = vmatpush1.bf16.msra.mxu0 %v4994_v31 }
 0x257   : > { %1644 = vmatprep.subr.bf16.mxu0 %v4999_v32  ;;  %v5012_v32 = vld [vmem:[%s6824_s18] ss:$8 sps:$4 sm:$0xff]  }
 0x25a   : > { %1645 = vmatpush1.bf16.msra.mxu0 %v4997_v33  ;;  %v5014_v33 = vld [vmem:[%s6824_s18 + $0x4] ss:$8 sps:$4 sm:$0xff]  }
 0x25b   : > { %1646 = vmatprep.subr.bf16.mxu0 %v5002_v34  ;;  %v5017_v34 = vld [vmem:[%s6824_s18 + $0x14] ss:$8 sps:$4 sm:$0xff]  }
 0x25e   : > { %1647 = vmatpush1.bf16.msra.mxu0 %v5000_v35  ;;  %v5015_v35 = vld [vmem:[%s6824_s18 + $0x10] ss:$8 sps:$4 sm:$0xff]  }
 0x25f   : > { %1648 = vmatprep.subr.bf16.mxu0 %v5005_v36  ;;  %v5020_v36 = vld [vmem:[%s6824_s18 + $0x24] ss:$8 sps:$4 sm:$0xff]  }
 0x262   : > { %1649 = vmatpush1.bf16.msra.mxu0 %v5003_v37  ;;  %v5018_v37 = vld [vmem:[%s6824_s18 + $0x20] ss:$8 sps:$4 sm:$0xff]  }
 0x263   : > { %1650 = vmatprep.subr.bf16.mxu0 %v5008_v38  ;;  %v5023_v38 = vld [vmem:[%s6824_s18 + $0x34] ss:$8 sps:$4 sm:$0xff]  }
 0x266   : > { %1651 = vmatpush1.bf16.msra.mxu0 %v5006_v39  ;;  %v5021_v39 = vld [vmem:[%s6824_s18 + $0x30] ss:$8 sps:$4 sm:$0xff]  }
 0x267   : > { %1652 = vmatprep.subr.bf16.mxu0 %v5011_v40  ;;  %v5026_v40 = vld [vmem:[%s6824_s18 + $0x44] ss:$8 sps:$4 sm:$0xff]  }
 0x26a   : > { %1653 = vmatpush1.bf16.msra.mxu0 %v5009_v41  ;;  %v5024_v41 = vld [vmem:[%s6824_s18 + $0x40] ss:$8 sps:$4 sm:$0xff]  }
 0x26b   : > { %1883 = vmatprep.subr.bf16.mxu0 %v5014_v33 }
 0x26d   : > { %1655 = vmatmul.mubr.bf16.vlgmr.msra.gmra.mrb[8].mxu0 %v6006_v7 }
 0x26e   : > { %1664 = vmatprep.mubr.bf16.mxu0 %v6009_v9  ;;  %1884 = vmatpush1.bf16.msra.mxu0 %v5012_v32 }
 0x26f   : > { %1885 = vmatprep.subr.bf16.mxu0 %v5017_v34 }
 0x272   : > { %1886 = vmatpush1.bf16.msra.mxu0 %v5015_v35 }
 0x273   : > { %1887 = vmatprep.subr.bf16.mxu0 %v5020_v36 }
 0x275   : > { %1665 = vmatmul.mubr.bf16.gmra.mrb[12].mxu0 %v6017_v16 }
 0x276   : > { %1915 = vmatprep.mubr.bf16.mxu0 %v5982_v45  ;;  %v6065_v45 = vsub.s32 1, %v6054_v44  ;;  %1888 = vmatpush1.bf16.msra.mxu0 %v5018_v37 }
 0x277   : > { %1889 = vmatprep.subr.bf16.mxu0 %v5023_v38 }
 0x278   : > { %v1198_v50 = vrot.slane %v1189_v47, %v6065_v45  ;;  %v1459_v8 = vrot.slane %v1450_v6, %v6065_v45  ;;  %v5029_v47 = vld [vmem:[%s6824_s18 + $0x54] ss:$8 sps:$4 sm:$0xff]   ;;  %v5051_v6 = vld [vmem:[%s6824_s18 + $0xd0] ss:$8 sps:$4 sm:$0xff]  }
 0x27a   : > { %1890 = vmatpush1.bf16.msra.mxu0 %v5021_v39 }
 0x27b   : > { %1891 = vmatprep.subr.bf16.mxu0 %v5026_v40 }
 0x27e   : > { %1892 = vmatpush1.bf16.msra.mxu0 %v5024_v41 }
 0x27f   : > { %1893 = vmatprep.subr.bf16.mxu0 %v5029_v47 }
 0x300   : > { %v1395_v49 = vpop.f32.mrb[0].mxu0 }
 0x301   : > { %v1396_v51 = vadd.f32 %v1395_v49, %v1194_v48  ;;  %v1397_v52 = vpop.f32.mrb[1].mxu0  ;;  %v5032_v49 = vld [vmem:[%s6824_s18 + $0x64] ss:$8 sps:$4 sm:$0xff]  }
 0x302   : > { %v1399_v53 = vpop.f32.mrb[2].mxu0  ;;  %v6069_v56 = vadd.f32 %v1397_v52, %v1198_v50  ;;  %v5033_v52 = vld [vmem:[%s6824_s18 + $0x70] ss:$8 sps:$4 sm:$0xff]  }
 0x303   : > { %v1400_v54 = vadd.f32 %v1399_v53, %v1194_v48  ;;  %v1401_v55 = vpop.f32.mrb[3].mxu0  ;;  %v5038_v53 = vld [vmem:[%s6824_s18 + $0x84] ss:$8 sps:$4 sm:$0xff]  }
 0x304   : > { %v6071_v57 = vadd.f32 %v1401_v55, %v1198_v50  ;;  %v5041_v55 = vld [vmem:[%s6824_s18 + $0x94] ss:$8 sps:$4 sm:$0xff]  }
 0x305   : > { %v1414_v58 = vpack.c.bf16 %v1400_v54, %v1396_v51  ;;  %v5035_v51 = vld [vmem:[%s6824_s18 + $0x74] ss:$8 sps:$4 sm:$0xff]   ;;  %v5036_v54 = vld [vmem:[%s6824_s18 + $0x80] ss:$8 sps:$4 sm:$0xff]  }
 0x306   : > { %v1415_v59 = vpack.c.bf16 %v6071_v57, %v6069_v56 }
 0x308   : > { %v1405_v60 = vpop.f32.mrb[4].mxu0 }
 0x309   : > { %v1406_v61 = vadd.f32 %v1405_v60, %v1194_v48  ;;  %v1407_v62 = vpop.f32.mrb[5].mxu0  ;;  %v5044_v60 = vld [vmem:[%s6824_s18 + $0xa4] ss:$8 sps:$4 sm:$0xff]  }
 0x30a   : > { %v6075_v63 = vadd.f32 %v1407_v62, %v1198_v50  ;;  %v1409_v0 = vpop.f32.mrb[6].mxu0  ;;  %v5047_v62 = vld [vmem:[%s6824_s18 + $0xb4] ss:$8 sps:$4 sm:$0xff]  }
 0x30b   : > { %v1410_v1 = vadd.f32 %v1409_v0, %v1194_v48  ;;  %v1411_v2 = vpop.f32.mrb[7].mxu0  ;;  %v5027_v48 = vld [vmem:[%s6824_s18 + $0x50] ss:$8 sps:$4 sm:$0xff]  }
 0x30c   : > { %v6077_v3 = vadd.f32 %v1411_v2, %v1198_v50  ;;  %1894 = vmatpush1.bf16.msra.mxu0 %v5027_v48  ;;  %v5030_v50 = vld [vmem:[%s6824_s18 + $0x60] ss:$8 sps:$4 sm:$0xff]   ;;  %v5045_v0 = vld [vmem:[%s6824_s18 + $0xb0] ss:$8 sps:$4 sm:$0xff]  }
 0x30d   : > { %v1416_v4 = vpack.c.bf16 %v1410_v1, %v1406_v61  ;;  %1895 = vmatprep.subr.bf16.mxu0 %v5032_v49  ;;  %v5042_v61 = vld [vmem:[%s6824_s18 + $0xa0] ss:$8 sps:$4 sm:$0xff]   ;;  %v5050_v1 = vld [vmem:[%s6824_s18 + $0xc4] ss:$8 sps:$4 sm:$0xff]  }
 0x30e   : > { %v1417_v5 = vpack.c.bf16 %v6077_v3, %v6075_v63  ;;  %v5048_v2 = vld [vmem:[%s6824_s18 + $0xc0] ss:$8 sps:$4 sm:$0xff]  }
 0x310   : > { %1896 = vmatpush1.bf16.msra.mxu0 %v5030_v50 }
 0x311   : > { %1897 = vmatprep.subr.bf16.mxu0 %v5035_v51 }
 0x314   : > { %1898 = vmatpush1.bf16.msra.mxu0 %v5033_v52 }
 0x315   : > { %1899 = vmatprep.subr.bf16.mxu0 %v5038_v53 }
 0x318   : > { %1900 = vmatpush1.bf16.msra.mxu0 %v5036_v54 }
 0x319   : > { %1901 = vmatprep.subr.bf16.mxu0 %v5041_v55 }
 0x340   : > { %v1656_v11 = vpop.f32.mrb[8].mxu0 }
 0x341   : > { %v1658_v12 = vpop.f32.mrb[9].mxu0  ;;  %v1657_v15 = vadd.f32 %v1656_v11, %v1455_v10  ;;  %v5059_v11 = vld [vmem:[%s6824_s18 + $0xf4] ss:$8 sps:$4 sm:$0xff]  }
 0x342   : > { %v6088_v13 = vadd.f32 %v1658_v12, %v1459_v8  ;;  %v1660_v14 = vpop.f32.mrb[10].mxu0  ;;  %v5057_v12 = vld [vmem:[%s6824_s18 + $0xf0] ss:$8 sps:$4 sm:$0xff]  }
 0x343   : > { %v1661_v17 = vadd.f32 %v1660_v14, %v1455_v10  ;;  %v1662_v18 = vpop.f32.mrb[11].mxu0 }
 0x344   : > { %v6090_v19 = vadd.f32 %v1662_v18, %v1459_v8 }
 0x345   : > { %v1675_v20 = vpack.c.bf16 %v1661_v17, %v1657_v15  ;;  %v6142_v15 = vld [vmem:[%s6825_s20] ss:$0 sm:$0xff] }
 0x346   : > { %v1676_v21 = vpack.c.bf16 %v6090_v19, %v6088_v13 }
 0x347   : > { %4759 = vmatpush3.bf16.xpose.msra.mxu1 %v1675_v20 }
 0x348   : > { %v1666_v24 = vpop.f32.mrb[12].mxu0  ;;  %4764 = vmatprep.subr.bf16.mxu1 %v5555_v42 }
 0x349   : > { %v1668_v25 = vpop.f32.mrb[13].mxu0  ;;  %v1667_v28 = vadd.f32 %v1666_v24, %v1455_v10 }
 0x34a   : > { %v6095_v26 = vadd.f32 %v1668_v25, %v1459_v8  ;;  %v1670_v27 = vpop.f32.mrb[14].mxu0 }
 0x34b   : > { %v1671_v29 = vadd.f32 %v1670_v27, %v1455_v10  ;;  %v1672_v22 = vpop.f32.mrb[15].mxu0  ;;  %v5054_v10 = vld [vmem:[%s6824_s18 + $0xe0] ss:$8 sps:$4 sm:$0xff]  }
 0x34c   : > { %v6097_v23 = vadd.f32 %v1672_v22, %v1459_v8  ;;  %v5056_v8 = vld [vmem:[%s6824_s18 + $0xe4] ss:$8 sps:$4 sm:$0xff]  }
 0x34d   : > { %v1677_v30 = vpack.c.bf16 %v1671_v29, %v1667_v28 }
 0x34e   : > { %v1678_v31 = vpack.c.bf16 %v6097_v23, %v6095_v26  ;;  %4761 = vmatmul.mubr.bf16.vlgmr.msra.gmra.mrb[0].mxu1 %v1414_v58  ;;  %v5039_v58 = vld [vmem:[%s6824_s18 + $0x90] ss:$8 sps:$4 sm:$0xff]  }
 0x34f   : > { %4765 = vmatpush3.bf16.xpose.msra.mxu1 %v1677_v30  ;;  %4766 = vmatprep.mubr.msk.bf16.mxu1 %vm5556_vm0, %v5555_v42 }
 0x350   : > { %4770 = vmatprep.subr.bf16.mxu1 %v5555_v42  ;;  %1902 = vmatpush1.bf16.msra.mxu0 %v5039_v58 }
 0x351   : > { %1903 = vmatprep.subr.bf16.mxu0 %v5044_v60 }
 0x354   : > { %1904 = vmatpush1.bf16.msra.mxu0 %v5042_v61 }
 0x355   : > { %1905 = vmatprep.subr.bf16.mxu0 %v5047_v62 }
 0x356   : > { %4767 = vmatmul.mubr.bf16.vlgmr.msra.gmra.mrb[4].mxu1 %v1416_v4  ;;  %v5053_v4 = vld [vmem:[%s6824_s18 + $0xd4] ss:$8 sps:$4 sm:$0xff]  }
 0x357   : > { %4772 = vmatprep.mubr.msk.bf16.mxu1 %vm5556_vm0, %v5555_v42 }
 0x358   : > { %1906 = vmatpush1.bf16.msra.mxu0 %v5045_v0 }
 0x359   : > { %1907 = vmatprep.subr.bf16.mxu0 %v5050_v1 }
 0x35c   : > { %1908 = vmatpush1.bf16.msra.mxu0 %v5048_v2 }
 0x35d   : > { %1909 = vmatprep.subr.bf16.mxu0 %v5053_v4 }
 0x360   : > { %1910 = vmatpush1.bf16.msra.mxu0 %v5051_v6 }
 0x361   : > { %1911 = vmatprep.subr.bf16.mxu0 %v5056_v8  ;;  %v1711_v8 = vld [vmem:[%s6827_s17] sm:$0x3] }
 0x364   : > { %1912 = vmatpush1.bf16.msra.mxu0 %v5054_v10 }
 0x365   : > { %1913 = vmatprep.subr.bf16.mxu0 %v5059_v11  ;;  %v1716_v11 = vrot.slane %v1711_v8, %v6057_v46 }
 0x368   : > { %1914 = vmatpush1.bf16.msra.mxu0 %v5057_v12  ;;  %v1720_v12 = vrot.slane %v1711_v8, %v6065_v45 }
 0x36b   : > { %1916 = vmatmul.mubr.bf16.vlgmr.msra.gmra.mrb[16].mxu0 %v6006_v7 }
 0x36c   : > { %1925 = vmatprep.mubr.bf16.mxu0 %v6009_v9  ;;  %v6148_v9 = vld [vmem:[%s6825_s20 + $0x1] ss:$0 sm:$0xff] }
 0x373   : > { %1926 = vmatmul.mubr.bf16.gmra.mrb[20].mxu0 %v6017_v16 }
 0x421   : > { %v1976_v14 = vpop.f32.mrb[0].mxu1 }
 0x422   : > { %v2024_v17 = vmul.f32 0.088388346, %v1976_v14  ;;  %v4762_v18 = vpop.f32.mrb[1].mxu1 }
 0x423   : > { %v1979_v20 = vpop.f32.mrb[2].mxu1 }
 0x424   : > { %v2025_v24 = vmul.f32 0.088388346, %v1979_v20  ;;  %v4763_v25 = vpop.f32.mrb[3].mxu1  ;;  %v2040_v27 = vadd.f32 %v6142_v15, %v2024_v17 }
 0x426   : > { %v2045_v28 = vsel %vm2044_vm1, %v2040_v27, -inf  ;;  %v2041_v7 = vadd.f32 %v6142_v15, %v2025_v24 }
 0x427   : > { %2046 = vmax.xlane.f32.xlu0 %v2045_v28 }
 0x428   : > { %v2048_v30 = vsel %vm2044_vm1, %v2041_v7, -inf }
 0x429   : > { %v2017_v29 = vpop.f32.mrb[4].mxu1 }
 0x42a   : > { %v2026_v16 = vmul.f32 0.088388346, %v2017_v29  ;;  %v4768_v22 = vpop.f32.mrb[5].mxu1 }
 0x42b   : > { %2049 = vmax.xlane.f32.xlu0 %v2048_v30  ;;  %v2020_v32 = vpop.f32.mrb[6].mxu1 }
 0x42c   : > { %v2027_v33 = vmul.f32 0.088388346, %v2020_v32  ;;  %v4769_v34 = vpop.f32.mrb[7].mxu1  ;;  %v2042_v35 = vadd.f32 %v6148_v9, %v2026_v16 }
 0x42e   : > { %v2051_v36 = vsel %vm2044_vm1, %v2042_v35, -inf  ;;  %v2043_v37 = vadd.f32 %v6148_v9, %v2027_v33 }
 0x42f   : > { %2052 = vmax.xlane.f32.xlu1 %v2051_v36 }
 0x430   : > { %v2054_v38 = vsel %vm2044_vm1, %v2043_v37, -inf }
 0x433   : > { %2055 = vmax.xlane.f32.xlu1 %v2054_v38 }
 0x43e   : > { %v1917_v6 = vpop.f32.mrb[16].mxu0 }
 0x43f   : > { %v1919_v10 = vpop.f32.mrb[17].mxu0  ;;  %v1918_v18 = vadd.f32 %v1917_v6, %v1716_v11 }
 0x440   : > { %v1921_v14 = vpop.f32.mrb[18].mxu0  ;;  %v1920_v20 = vadd.f32 %v1919_v10, %v1720_v12 }
 0x441   : > { %v1923_v17 = vpop.f32.mrb[19].mxu0  ;;  %v1922_v24 = vadd.f32 %v1921_v14, %v1716_v11 }
 0x442   : > { %v1924_v25 = vadd.f32 %v1923_v17, %v1720_v12 }
 0x444   : > { %v1937_v28 = vpack.c.bf16 %v1924_v25, %v1920_v20 }
 0x4b4   : > { %v2047_v39 = vpop.xlane.xlu0 %2046 }
 0x4b5   : > { %v2057_v40 = vsub.f32 %v2040_v27, %v2047_v39  ;;  %v1936_v27 = vpack.c.bf16 %v1922_v24, %v1918_v18 }
 0x4b7   : > { %v2061_v41 = vmul.f32 1.442695, %v2057_v40  ;;  %4771 = vmatpush3.bf16.msra.mxu1 %v1936_v27 }
 0x4b8   : > { %v2050_v47 = vpop.xlane.xlu0 %2049  ;;  %4776 = vmatprep.subr.bf16.mxu1 %v5555_v42 }
 0x4b9   : > { %5300 = vpow2.f32 %v2061_v41  ;;  %v2058_v48 = vsub.f32 %v2041_v7, %v2050_v47  ;;  %v1927_v7 = vpop.f32.mrb[20].mxu0 }
 0x4ba   : > { %v1929_v29 = vpop.f32.mrb[21].mxu0  ;;  %v1928_v30 = vadd.f32 %v1927_v7, %v1716_v11 }
 0x4bb   : > { %v2063_v49 = vmul.f32 1.442695, %v2058_v48  ;;  %v1931_v16 = vpop.f32.mrb[22].mxu0  ;;  %v6167_v32 = vadd.f32 %v1929_v29, %v1720_v12 }
 0x4bc   : > { %v2053_v50 = vpop.xlane.xlu1 %2052  ;;  %v1933_v22 = vpop.f32.mrb[23].mxu0  ;;  %v1932_v33 = vadd.f32 %v1931_v16, %v1716_v11 }
 0x4bd   : > { %5302 = vpow2.f32 %v2063_v49  ;;  %v2059_v51 = vsub.f32 %v2042_v35, %v2053_v50  ;;  %v6169_v34 = vadd.f32 %v1933_v22, %v1720_v12 }
 0x4be   : > { %v1938_v35 = vpack.c.bf16 %v1932_v33, %v1928_v30 }
 0x4bf   : > { %v2065_v52 = vmul.f32 1.442695, %v2059_v51  ;;  %v1939_v36 = vpack.c.bf16 %v6169_v34, %v6167_v32 }
 0x4c0   : > { %v2056_v53 = vpop.xlane.xlu1 %2055 }
 0x4c1   : > { %5304 = vpow2.f32 %v2065_v52  ;;  %v2060_v54 = vsub.f32 %v2043_v37, %v2056_v53 }
 0x4c3   : > { %v5301_v55 = vpop.eup %5300  ;;  %v2067_v58 = vmul.f32 1.442695, %v2060_v54 }
 0x4c4   : > { %v2069_v60 = vsel %vm2044_vm1, %v5301_v55, 0.0 }
 0x4c5   : > { %5306 = vpow2.f32 %v2067_v58  ;;  %2070 = vadd.xlane.f32.xlu0 %v2069_v60 }
 0x4c7   : > { %v5303_v61 = vpop.eup %5302 }
 0x4c8   : > { %v2072_v62 = vsel %vm2044_vm1, %v5303_v61, 0.0 }
 0x4c9   : > { %2073 = vadd.xlane.f32.xlu1 %v2072_v62 }
 0x4cb   : > { %v5305_v0 = vpop.eup %5304 }
 0x4cc   : > { %v2075_v1 = vsel %vm2044_vm1, %v5305_v0, 0.0 }
 0x4cd   : > { %2076 = vadd.xlane.f32.xlu0 %v2075_v1 }
 0x4cf   : > { %v5307_v2 = vpop.eup %5306 }
 0x4d0   : > { %v2078_v4 = vsel %vm2044_vm1, %v5307_v2, 0.0 }
 0x4d1   : > { %2079 = vadd.xlane.f32.xlu1 %v2078_v4 }
 0x552   : > { %v2071_v37 = vpop.xlane.xlu0 %2070 }
 0x553   : > { %5308 = vrcp.f32 %v2071_v37 }
 0x556   : > { %v2074_v38 = vpop.xlane.xlu1 %2073 }
 0x557   : > { %5310 = vrcp.f32 %v2074_v38 }
 0x55a   : > { %v2077_v39 = vpop.xlane.xlu0 %2076 }
 0x55b   : > { %5312 = vrcp.f32 %v2077_v39 }
 0x55d   : > { %v5309_v41 = vpop.eup %5308 }
 0x55e   : > { %v2080_v40 = vpop.xlane.xlu1 %2079  ;;  %v2085_v48 = vmul.f32 %v5309_v41, %v5301_v55 }
 0x55f   : > { %5314 = vrcp.f32 %v2080_v40 }
 0x561   : > { %v5311_v47 = vpop.eup %5310 }
 0x562   : > { %v2086_v49 = vmul.f32 %v5311_v47, %v5303_v61 }
 0x564   : > { %v2089_v50 = vpack.c.bf16 %v2086_v49, %v2085_v48 }
 0x565   : > { %v5313_v51 = vpop.eup %5312 }
 0x566   : > { %4773 = vmatmul.mubr.msk.bf16.vlgmr.msra.gmra.mrb[8].mxu1 %vm2044_vm1, %v2089_v50  ;;  %v2087_v53 = vmul.f32 %v5313_v51, %v5305_v0  ;;  %v5060_v50 = vld [vmem:[%s6828_s30] ss:$8 sps:$4 sm:$0xff]   ;;  %v5062_v51 = vld [vmem:[%s6828_s30 + $0x4] ss:$8 sps:$4 sm:$0xff]  }
 0x567   : > { %4777 = vmatpush3.bf16.msra.mxu1 %v1938_v35  ;;  %4778 = vmatprep.mubr.msk.bf16.mxu1 %vm5556_vm0, %v5555_v42 }
 0x568   : > { %4782 = vmatprep.subr.bf16.mxu1 %v5555_v42  ;;  %2627 = vmatprep.subr.bf16.mxu0 %v5062_v51 }
 0x569   : > { %v5315_v52 = vpop.eup %5314  ;;  %2628 = vmatpush1.bf16.msra.mxu0 %v5060_v50 }
 0x56a   : > { %v2088_v54 = vmul.f32 %v5315_v52, %v5307_v2  ;;  %v5065_v52 = vld [vmem:[%s6828_s30 + $0x14] ss:$8 sps:$4 sm:$0xff]  }
 0x56b   : > { %2629 = vmatprep.subr.bf16.mxu0 %v5065_v52  ;;  %v2455_v52 = vld [vmem:[%s6830_s11] sm:$0x3] }
 0x56c   : > { %v2090_v58 = vpack.c.bf16 %v2088_v54, %v2087_v53  ;;  %v5063_v53 = vld [vmem:[%s6828_s30 + $0x10] ss:$8 sps:$4 sm:$0xff]   ;;  %v5068_v54 = vld [vmem:[%s6828_s30 + $0x24] ss:$8 sps:$4 sm:$0xff]  }
 0x56d   : > { %2630 = vmatpush1.bf16.msra.mxu0 %v5063_v53  ;;  %v2460_v53 = vrot.slane %v2455_v52, %v6057_v46 }
 0x56e   : > { %4779 = vmatmul.mubr.msk.bf16.vlgmr.msra.gmra.mrb[12].mxu1 %vm2044_vm1, %v2090_v58  ;;  %v5066_v58 = vld [vmem:[%s6828_s30 + $0x20] ss:$8 sps:$4 sm:$0xff]   ;;  %2631 = vmatprep.subr.bf16.mxu0 %v5068_v54 }
 0x56f   : > { %4784 = vmatprep.mubr.msk.bf16.mxu1 %vm5556_vm0, %v5555_v42 }
 0x570   : > { %4783 = vmatpush3.bf16.xpose.msra.mxu1 %v1676_v21 }
 0x571   : > { %4788 = vmatprep.subr.bf16.mxu1 %v5555_v42  ;;  %2632 = vmatpush1.bf16.msra.mxu0 %v5066_v58 }
 0x577   : > { %4785 = vmatmul.mubr.bf16.vlgmr.msra.gmra.mrb[16].mxu1 %v1415_v59 }
 0x578   : > { %4789 = vmatpush3.bf16.xpose.msra.mxu1 %v1678_v31  ;;  %4790 = vmatprep.mubr.msk.bf16.mxu1 %vm5556_vm0, %v5555_v42 }
 0x579   : > { %4794 = vmatprep.subr.bf16.mxu1 %v5555_v42 }
 0x57f   : > { %4791 = vmatmul.mubr.bf16.vlgmr.msra.gmra.mrb[20].mxu1 %v1417_v5 }
 0x580   : > { %4795 = vmatpush3.bf16.msra.mxu1 %v1937_v28  ;;  %4796 = vmatprep.mubr.msk.bf16.mxu1 %vm5556_vm0, %v5555_v42 }
 0x581   : > { %4800 = vmatprep.subr.bf16.mxu1 %v5555_v42 }
 0x639   : > { %v6199_v56 = vpop.f32.mrb[8].mxu1 }
 0x63a   : > { %v4774_v57 = vpop.f32.mrb[9].mxu1 }
 0x63b   : > { %v6201_v59 = vpop.f32.mrb[10].mxu1  ;;  %v5071_v57 = vld [vmem:[%s6828_s30 + $0x34] ss:$8 sps:$4 sm:$0xff]  }
 0x63c   : > { %v2419_v13 = vpack.c.bf16 %v6201_v59, %v6199_v56  ;;  %v4775_v19 = vpop.f32.mrb[11].mxu1  ;;  %2633 = vmatprep.subr.bf16.mxu0 %v5071_v57  ;;  %v2464_v56 = vrot.slane %v2455_v52, %v6065_v45  ;;  %v5143_v52 = vld [vmem:[%s6831_s12 + $0xac] ss:$16 sps:$4 sm:$0xff]  }
 0x63d   : > { %v5069_v19 = vld [vmem:[%s6828_s30 + $0x30] ss:$8 sps:$4 sm:$0xff]  }
 0x63e   : > { %2634 = vmatpush1.bf16.msra.mxu0 %v5069_v19  ;;  %v5380_v19 = vld [vmem:[#allocation2] sm:$0xff] }
 0x641   : > { %v6205_v21 = vpop.f32.mrb[12].mxu1 }
 0x642   : > { %v4780_v26 = vpop.f32.mrb[13].mxu1 }
 0x643   : > { %v6207_v63 = vpop.f32.mrb[14].mxu1  ;;  %v5074_v26 = vld [vmem:[%s6828_s30 + $0x44] ss:$8 sps:$4 sm:$0xff]  }
 0x644   : > { %v2421_v3 = vpack.c.bf16 %v6207_v63, %v6205_v21  ;;  %v4781_v5 = vpop.f32.mrb[15].mxu1  ;;  %2635 = vmatprep.subr.bf16.mxu0 %v5074_v26  ;;  %v5381_v63 = vld [vmem:[#allocation2 + $0x8] sm:$0xff] }
 0x645   : > { %v5072_v5 = vld [vmem:[%s6828_s30 + $0x40] ss:$8 sps:$4 sm:$0xff]  }
 0x646   : > { %2636 = vmatpush1.bf16.msra.mxu0 %v5072_v5 }
 0x64a   : > { %v2217_v23 = vpop.f32.mrb[16].mxu1 }
 0x64b   : > { %v2265_v31 = vmul.f32 0.088388346, %v2217_v23  ;;  %v4786_v55 = vpop.f32.mrb[17].mxu1  ;;  %v5077_v23 = vld [vmem:[%s6828_s30 + $0x54] ss:$8 sps:$4 sm:$0xff]  }
 0x64c   : > { %v2220_v60 = vpop.f32.mrb[18].mxu1  ;;  %2637 = vmatprep.subr.bf16.mxu0 %v5077_v23  ;;  %v5080_v55 = vld [vmem:[%s6828_s30 + $0x64] ss:$8 sps:$4 sm:$0xff]  }
 0x64d   : > { %v2266_v61 = vmul.f32 0.088388346, %v2220_v60  ;;  %v4787_v62 = vpop.f32.mrb[19].mxu1  ;;  %v2269_v0 = vadd.f32 %v6142_v15, %v2265_v31  ;;  %v5075_v31 = vld [vmem:[%s6828_s30 + $0x50] ss:$8 sps:$4 sm:$0xff]  }
 0x64e   : > { %2638 = vmatpush1.bf16.msra.mxu0 %v5075_v31  ;;  %v5078_v60 = vld [vmem:[%s6828_s30 + $0x60] ss:$8 sps:$4 sm:$0xff]   ;;  %v5081_v62 = vld [vmem:[%s6828_s30 + $0x70] ss:$8 sps:$4 sm:$0xff]  }
 0x64f   : > { %v2273_v1 = vsel %vm2044_vm1, %v2269_v0, -inf  ;;  %v2270_v2 = vadd.f32 %v6142_v15, %v2266_v61  ;;  %2639 = vmatprep.subr.bf16.mxu0 %v5080_v55  ;;  %v5083_v61 = vld [vmem:[%s6828_s30 + $0x74] ss:$8 sps:$4 sm:$0xff]  }
 0x650   : > { %2274 = vmax.xlane.f32.xlu0 %v2273_v1  ;;  %v5084_v1 = vld [vmem:[%s6828_s30 + $0x80] ss:$8 sps:$4 sm:$0xff]   ;;  %v5382_v31 = vld [vmem:[#allocation2 + $0x10] sm:$0xff] }
 0x651   : > { %v2276_v4 = vsel %vm2044_vm1, %v2270_v2, -inf }
 0x652   : > { %2277 = vmax.xlane.f32.xlu1 %v2276_v4  ;;  %v2258_v6 = vpop.f32.mrb[20].mxu1  ;;  %2640 = vmatpush1.bf16.msra.mxu0 %v5078_v60  ;;  %v5087_v4 = vld [vmem:[%s6828_s30 + $0x90] ss:$8 sps:$4 sm:$0xff]  }
 0x653   : > { %v2267_v8 = vmul.f32 0.088388346, %v2258_v6  ;;  %v4792_v10 = vpop.f32.mrb[21].mxu1  ;;  %2641 = vmatprep.subr.bf16.mxu0 %v5083_v61  ;;  %v5092_v6 = vld [vmem:[%s6828_s30 + $0xa4] ss:$8 sps:$4 sm:$0xff]   ;;  %v5383_v60 = vld [vmem:[#allocation2 + $0x18] sm:$0xff] }
 0x654   : > { %v2261_v11 = vpop.f32.mrb[22].mxu1  ;;  %v5095_v10 = vld [vmem:[%s6828_s30 + $0xb4] ss:$8 sps:$4 sm:$0xff]  }
 0x655   : > { %v2268_v12 = vmul.f32 0.088388346, %v2261_v11  ;;  %v4793_v14 = vpop.f32.mrb[23].mxu1  ;;  %v2271_v17 = vadd.f32 %v6148_v9, %v2267_v8  ;;  %v5090_v8 = vld [vmem:[%s6828_s30 + $0xa0] ss:$8 sps:$4 sm:$0xff]  }
 0x656   : > { %2642 = vmatpush1.bf16.msra.mxu0 %v5081_v62  ;;  %v5093_v11 = vld [vmem:[%s6828_s30 + $0xb0] ss:$8 sps:$4 sm:$0xff]   ;;  %v5096_v14 = vld [vmem:[%s6828_s30 + $0xc0] ss:$8 sps:$4 sm:$0xff]  }
 0x657   : > { %v2279_v18 = vsel %vm2044_vm1, %v2271_v17, -inf  ;;  %v2272_v20 = vadd.f32 %v6148_v9, %v2268_v12  ;;  %v5098_v12 = vld [vmem:[%s6828_s30 + $0xc4] ss:$8 sps:$4 sm:$0xff]  }
 0x658   : > { %2280 = vmax.xlane.f32.xlu0 %v2279_v18  ;;  %v5099_v18 = vld [vmem:[%s6828_s30 + $0xd0] ss:$8 sps:$4 sm:$0xff]  }
 0x659   : > { %v2282_v24 = vsel %vm2044_vm1, %v2272_v20, -inf }
 0x65a   : > { %2283 = vmax.xlane.f32.xlu1 %v2282_v24  ;;  %v5102_v24 = vld [vmem:[%s6828_s30 + $0xe0] ss:$8 sps:$4 sm:$0xff]  }
 0x6dd   : > { %v2275_v15 = vpop.xlane.xlu0 %2274 }
 0x6de   : > { %v2285_v25 = vsub.f32 %v2269_v0, %v2275_v15  ;;  %v5086_v0 = vld [vmem:[%s6828_s30 + $0x84] ss:$8 sps:$4 sm:$0xff]  }
 0x6df   : > { %v2278_v27 = vpop.xlane.xlu1 %2277  ;;  %2643 = vmatprep.subr.bf16.mxu0 %v5086_v0 }
 0x6e0   : > { %v2289_v28 = vmul.f32 1.442695, %v2285_v25  ;;  %v2286_v7 = vsub.f32 %v2270_v2, %v2278_v27  ;;  %v5089_v2 = vld [vmem:[%s6828_s30 + $0x94] ss:$8 sps:$4 sm:$0xff]   ;;  %2644 = vmatpush1.bf16.msra.mxu0 %v5084_v1 }
 0x6e1   : > { %2645 = vmatprep.subr.bf16.mxu0 %v5089_v2 }
 0x6e2   : > { %5316 = vpow2.f32 %v2289_v28  ;;  %v2291_v29 = vmul.f32 1.442695, %v2286_v7 }
 0x6e4   : > { %5318 = vpow2.f32 %v2291_v29  ;;  %2646 = vmatpush1.bf16.msra.mxu0 %v5087_v4 }
 0x6e5   : > { %v2281_v16 = vpop.xlane.xlu0 %2280  ;;  %2647 = vmatprep.subr.bf16.mxu0 %v5092_v6 }
 0x6e6   : > { %v2287_v22 = vsub.f32 %v2271_v17, %v2281_v16  ;;  %v5101_v17 = vld [vmem:[%s6828_s30 + $0xd4] ss:$8 sps:$4 sm:$0xff]  }
 0x6e7   : > { %v2284_v30 = vpop.xlane.xlu1 %2283 }
 0x6e8   : > { %v2293_v33 = vmul.f32 1.442695, %v2287_v22  ;;  %v2288_v35 = vsub.f32 %v2272_v20, %v2284_v30  ;;  %2648 = vmatpush1.bf16.msra.mxu0 %v5090_v8  ;;  %v5104_v20 = vld [vmem:[%s6828_s30 + $0xe4] ss:$8 sps:$4 sm:$0xff]  }
 0x6e9   : > { %2649 = vmatprep.subr.bf16.mxu0 %v5095_v10  ;;  %v5384_v10 = vld [vmem:[#allocation2 + $0x20] sm:$0xff] }
 0x6ea   : > { %5320 = vpow2.f32 %v2293_v33  ;;  %v2295_v9 = vmul.f32 1.442695, %v2288_v35 }
 0x6ec   : > { %v6219_v37 = vpop.eup %5316  ;;  %5322 = vpow2.f32 %v2295_v9  ;;  %2650 = vmatpush1.bf16.msra.mxu0 %v5093_v11 }
 0x6ed   : > { %v2297_v38 = vsel %vm2044_vm1, %v6219_v37, 0.0  ;;  %2651 = vmatprep.subr.bf16.mxu0 %v5098_v12 }
 0x6ee   : > { %v6223_v39 = vpop.eup %5318  ;;  %2298 = vadd.xlane.f32.xlu0 %v2297_v38 }
 0x6ef   : > { %v2300_v40 = vsel %vm2044_vm1, %v6223_v39, 0.0 }
 0x6f0   : > { %2301 = vadd.xlane.f32.xlu1 %v2300_v40  ;;  %2652 = vmatpush1.bf16.msra.mxu0 %v5096_v14 }
 0x6f1   : > { %2653 = vmatprep.subr.bf16.mxu0 %v5101_v17  ;;  %v5385_v17 = vld [vmem:[#allocation2 + $0x28] sm:$0xff] }
 0x6f4   : > { %v6227_v41 = vpop.eup %5320  ;;  %2654 = vmatpush1.bf16.msra.mxu0 %v5099_v18 }
 0x6f5   : > { %v2303_v47 = vsel %vm2044_vm1, %v6227_v41, 0.0  ;;  %2655 = vmatprep.subr.bf16.mxu0 %v5104_v20 }
 0x6f6   : > { %v6231_v48 = vpop.eup %5322  ;;  %2304 = vadd.xlane.f32.xlu0 %v2303_v47 }
 0x6f7   : > { %v2306_v49 = vsel %vm2044_vm1, %v6231_v48, 0.0 }
 0x6f8   : > { %2307 = vadd.xlane.f32.xlu1 %v2306_v49  ;;  %2656 = vmatpush1.bf16.msra.mxu0 %v5102_v24  ;;  %v5386_v24 = vld [vmem:[#allocation2 + $0x30] sm:$0xff] }
 0x77b   : > { %v2299_v15 = vpop.xlane.xlu0 %2298 }
 0x77c   : > { %5324 = vrcp.f32 %v2299_v15 }
 0x77d   : > { %v2302_v25 = vpop.xlane.xlu1 %2301 }
 0x77e   : > { %5326 = vrcp.f32 %v2302_v25  ;;  %v5387_v25 = vld [vmem:[#allocation2 + $0x38] sm:$0xff] }
 0x783   : > { %v2305_v27 = vpop.xlane.xlu0 %2304 }
 0x784   : > { %5328 = vrcp.f32 %v2305_v27 }
 0x785   : > { %v2308_v28 = vpop.xlane.xlu1 %2307 }
 0x786   : > { %v5325_v7 = vpop.eup %5324  ;;  %5330 = vrcp.f32 %v2308_v28 }
 0x787   : > { %v2313_v16 = vmul.f32 %v5325_v7, %v6219_v37  ;;  %v5107_v37 = vld [vmem:[%s6828_s30 + $0xf4] ss:$8 sps:$4 sm:$0xff]  }
 0x788   : > { %v5327_v29 = vpop.eup %5326  ;;  %2657 = vmatprep.subr.bf16.mxu0 %v5107_v37  ;;  %v5125_v37 = vld [vmem:[%s6831_s12 + $0x4c] ss:$16 sps:$4 sm:$0xff]  }
 0x789   : > { %v2314_v22 = vmul.f32 %v5327_v29, %v6223_v39  ;;  %v5105_v39 = vld [vmem:[%s6828_s30 + $0xf0] ss:$8 sps:$4 sm:$0xff]  }
 0x78a   : > { %2658 = vmatpush1.bf16.msra.mxu0 %v5105_v39  ;;  %v5108_v29 = vld [vmem:[%s6831_s12] ss:$16 sps:$4 sm:$0xff]  }
 0x78b   : > { %v2317_v30 = vpack.c.bf16 %v2314_v22, %v2313_v16  ;;  %v5110_v16 = vld [vmem:[%s6831_s12 + $0x4] ss:$16 sps:$4 sm:$0xff]   ;;  %v5111_v22 = vld [vmem:[%s6831_s12 + $0x8] ss:$16 sps:$4 sm:$0xff]   ;;  %v5120_v39 = vld [vmem:[%s6831_s12 + $0x40] ss:$16 sps:$4 sm:$0xff]  }
 0x78d   : > { %4797 = vmatmul.mubr.msk.bf16.vlgmr.msra.gmra.mrb[24].mxu1 %vm2044_vm1, %v2317_v30  ;;  %v5113_v30 = vld [vmem:[%s6831_s12 + $0xc] ss:$16 sps:$4 sm:$0xff]  }
 0x78e   : > { %v5329_v33 = vpop.eup %5328  ;;  %4801 = vmatpush3.bf16.msra.mxu1 %v1939_v36  ;;  %4802 = vmatprep.mubr.msk.bf16.mxu1 %vm5556_vm0, %v5555_v42 }
 0x78f   : > { %v2315_v9 = vmul.f32 %v5329_v33, %v6227_v41  ;;  %v5116_v33 = vld [vmem:[%s6831_s12 + $0x24] ss:$16 sps:$4 sm:$0xff]   ;;  %3203 = vmatprep.subr.bf16.mxu1 %v5110_v16  ;;  %3256 = vmatprep.subr.bf16.mxu0 %v5113_v30 }
 0x790   : > { %v5331_v35 = vpop.eup %5330 }
 0x791   : > { %v2316_v38 = vmul.f32 %v5331_v35, %v6231_v48  ;;  %v5119_v35 = vld [vmem:[%s6831_s12 + $0x2c] ss:$16 sps:$4 sm:$0xff]  }
 0x793   : > { %v2318_v40 = vpack.c.bf16 %v2316_v38, %v2315_v9  ;;  %v5114_v9 = vld [vmem:[%s6831_s12 + $0x20] ss:$16 sps:$4 sm:$0xff]   ;;  %v5117_v38 = vld [vmem:[%s6831_s12 + $0x28] ss:$16 sps:$4 sm:$0xff]  }
 0x795   : > { %4803 = vmatmul.mubr.msk.bf16.vlgmr.msra.gmra.mrb[28].mxu1 %vm2044_vm1, %v2318_v40  ;;  %v5122_v40 = vld [vmem:[%s6831_s12 + $0x44] ss:$16 sps:$4 sm:$0xff]  }
 0x796   : > { %3204 = vmatpush1.bf16.msra.mxu1 %v5108_v29 }
 0x797   : > { %3205 = vmatprep.subr.bf16.mxu1 %v5116_v33 }
 0x79a   : > { %3206 = vmatpush1.bf16.msra.mxu1 %v5114_v9 }
 0x79b   : > { %3207 = vmatprep.subr.bf16.mxu1 %v5122_v40  ;;  %v5170_v40 = vld [vmem:[%s6831_s12 + $0x144] ss:$16 sps:$4 sm:$0xff]  }
 0x79e   : > { %3208 = vmatpush1.bf16.msra.mxu1 %v5120_v39  ;;  %v5168_v39 = vld [vmem:[%s6831_s12 + $0x140] ss:$16 sps:$4 sm:$0xff]  }
 0x860   : > { %v2356_v47 = vpop.f32.mrb[24].mxu1 }
 0x861   : > { %v4798_v49 = vpop.f32.mrb[25].mxu1 }
 0x862   : > { %v2359_v32 = vpop.f32.mrb[26].mxu1  ;;  %v5128_v49 = vld [vmem:[%s6831_s12 + $0x64] ss:$16 sps:$4 sm:$0xff]  }
 0x863   : > { %v2420_v34 = vpack.c.bf16 %v2359_v32, %v2356_v47  ;;  %v4799_v36 = vpop.f32.mrb[27].mxu1  ;;  %v5123_v47 = vld [vmem:[%s6831_s12 + $0x48] ss:$16 sps:$4 sm:$0xff]   ;;  %v5131_v32 = vld [vmem:[%s6831_s12 + $0x6c] ss:$16 sps:$4 sm:$0xff]   ;;  %3209 = vmatprep.subr.bf16.mxu1 %v5128_v49 }
 0x864   : > { %v5129_v36 = vld [vmem:[%s6831_s12 + $0x68] ss:$16 sps:$4 sm:$0xff]   ;;  %v5176_v49 = vld [vmem:[%s6831_s12 + $0x164] ss:$16 sps:$4 sm:$0xff]  }
 0x865   : > { %2659 = vmatprep.mubr.bf16.mxu0 %v2420_v34  ;;  %v5126_v34 = vld [vmem:[%s6831_s12 + $0x60] ss:$16 sps:$4 sm:$0xff]  }
 0x866   : > { %2660 = vmatmul.mubr.bf16.vlgmr.msra.gmra.mrb[24].mxu0 %v2419_v13  ;;  %3210 = vmatpush1.bf16.msra.mxu1 %v5126_v34  ;;  %v5174_v34 = vld [vmem:[%s6831_s12 + $0x160] ss:$16 sps:$4 sm:$0xff]  }
 0x867   : > { %3257 = vmatpush1.bf16.msra.mxu0 %v5111_v22 }
 0x868   : > { %v2400_v42 = vpop.f32.mrb[28].mxu1  ;;  %3258 = vmatprep.subr.bf16.mxu0 %v5119_v35 }
 0x869   : > { %v4804_v41 = vpop.f32.mrb[29].mxu1 }
 0x86a   : > { %v2403_v48 = vpop.f32.mrb[30].mxu1  ;;  %v5137_v41 = vld [vmem:[%s6831_s12 + $0x8c] ss:$16 sps:$4 sm:$0xff]  }
 0x86b   : > { %v2422_v50 = vpack.c.bf16 %v2403_v48, %v2400_v42  ;;  %v4805_v51 = vpop.f32.mrb[31].mxu1  ;;  %3259 = vmatpush1.bf16.msra.mxu0 %v5117_v38  ;;  %v5134_v42 = vld [vmem:[%s6831_s12 + $0x84] ss:$16 sps:$4 sm:$0xff]   ;;  %v5132_v48 = vld [vmem:[%s6831_s12 + $0x80] ss:$16 sps:$4 sm:$0xff]  }
 0x86c   : > { %3260 = vmatprep.subr.bf16.mxu0 %v5125_v37  ;;  %3211 = vmatprep.subr.bf16.mxu1 %v5134_v42  ;;  %v5140_v51 = vld [vmem:[%s6831_s12 + $0xa4] ss:$16 sps:$4 sm:$0xff]   ;;  %v5173_v37 = vld [vmem:[%s6831_s12 + $0x14c] ss:$16 sps:$4 sm:$0xff]  }
 0x86d   : > { %2669 = vmatprep.mubr.bf16.mxu0 %v2422_v50  ;;  %v5135_v50 = vld [vmem:[%s6831_s12 + $0x88] ss:$16 sps:$4 sm:$0xff]   ;;  %3212 = vmatpush1.bf16.msra.mxu1 %v5132_v48  ;;  %v5182_v42 = vld [vmem:[%s6831_s12 + $0x184] ss:$16 sps:$4 sm:$0xff]   ;;  %v5180_v48 = vld [vmem:[%s6831_s12 + $0x180] ss:$16 sps:$4 sm:$0xff]  }
 0x86e   : > { %2670 = vmatmul.mubr.bf16.gmra.mrb[28].mxu0 %v2421_v3  ;;  %3213 = vmatprep.subr.bf16.mxu1 %v5140_v51  ;;  %v5188_v51 = vld [vmem:[%s6831_s12 + $0x1a4] ss:$16 sps:$4 sm:$0xff]  }
 0x86f   : > { %3261 = vmatpush1.bf16.msra.mxu0 %v5123_v47  ;;  %v5171_v47 = vld [vmem:[%s6831_s12 + $0x148] ss:$16 sps:$4 sm:$0xff]  }
 0x870   : > { %3262 = vmatprep.subr.bf16.mxu0 %v5131_v32  ;;  %v5179_v32 = vld [vmem:[%s6831_s12 + $0x16c] ss:$16 sps:$4 sm:$0xff]  }
 0x873   : > { %3263 = vmatpush1.bf16.msra.mxu0 %v5129_v36  ;;  %v5177_v36 = vld [vmem:[%s6831_s12 + $0x168] ss:$16 sps:$4 sm:$0xff]  }
 0x874   : > { %3264 = vmatprep.subr.bf16.mxu0 %v5137_v41  ;;  %v5185_v41 = vld [vmem:[%s6831_s12 + $0x18c] ss:$16 sps:$4 sm:$0xff]  }
 0x877   : > { %3265 = vmatpush1.bf16.msra.mxu0 %v5135_v50  ;;  %v5183_v50 = vld [vmem:[%s6831_s12 + $0x188] ss:$16 sps:$4 sm:$0xff]  }
 0x878   : > { %3266 = vmatprep.subr.bf16.mxu0 %v5143_v52  ;;  %v5191_v52 = vld [vmem:[%s6831_s12 + $0x1ac] ss:$16 sps:$4 sm:$0xff]  }
 0x939   : > { %v2661_v59 = vpop.f32.mrb[24].mxu0 }
 0x93a   : > { %v2662_v13 = vadd.f32 %v2661_v59, %v2460_v53  ;;  %v2663_v54 = vpop.f32.mrb[25].mxu0  ;;  %v5146_v59 = vld [vmem:[%s6831_s12 + $0xc4] ss:$16 sps:$4 sm:$0xff]  }
 0x93b   : > { %v2664_v58 = vadd.f32 %v2663_v54, %v2464_v56  ;;  %v2665_v57 = vpop.f32.mrb[26].mxu0  ;;  %v5144_v54 = vld [vmem:[%s6831_s12 + $0xc0] ss:$16 sps:$4 sm:$0xff]  }
 0x93c   : > { %v6291_v26 = vadd.f32 %v5380_v19, %v2662_v13  ;;  %v2666_v5 = vadd.f32 %v2665_v57, %v2460_v53  ;;  %v2667_v21 = vpop.f32.mrb[27].mxu0  ;;  %v5149_v13 = vld [vmem:[%s6831_s12 + $0xcc] ss:$16 sps:$4 sm:$0xff]   ;;  %v5152_v57 = vld [vmem:[%s6831_s12 + $0xe4] ss:$16 sps:$4 sm:$0xff]  }
 0x93d   : > { %v6293_v3 = vadd.f32 %v5381_v63, %v2664_v58  ;;  %v2668_v23 = vadd.f32 %v2667_v21, %v2464_v56  ;;  %v5147_v58 = vld [vmem:[%s6831_s12 + $0xc8] ss:$16 sps:$4 sm:$0xff]   ;;  %v5155_v19 = vld [vmem:[%s6831_s12 + $0xec] ss:$16 sps:$4 sm:$0xff]   ;;  %v5158_v63 = vld [vmem:[%s6831_s12 + $0x104] ss:$16 sps:$4 sm:$0xff]  }
 0x93e   : > { %v6295_v55 = vadd.f32 %v5382_v31, %v2666_v5  ;;  %v5150_v5 = vld [vmem:[%s6831_s12 + $0xe0] ss:$16 sps:$4 sm:$0xff]   ;;  %v5153_v21 = vld [vmem:[%s6831_s12 + $0xe8] ss:$16 sps:$4 sm:$0xff]  }
 0x93f   : > { %v6297_v61 = vadd.f32 %v5383_v60, %v2668_v23  ;;  %v2690_v62 = vadd.f32 %v6293_v3, %v6291_v26  ;;  %v5161_v23 = vld [vmem:[%s6831_s12 + $0x10c] ss:$16 sps:$4 sm:$0xff]   ;;  %v5156_v31 = vld [vmem:[%s6831_s12 + $0x100] ss:$16 sps:$4 sm:$0xff]   ;;  %v5159_v60 = vld [vmem:[%s6831_s12 + $0x108] ss:$16 sps:$4 sm:$0xff]  }
 0x941   : > { %2691 = vadd.xlane.f32.xlu0 %v2690_v62  ;;  %v2671_v0 = vpop.f32.mrb[28].mxu0  ;;  %v2693_v1 = vadd.f32 %v6297_v61, %v6295_v55  ;;  %v5164_v62 = vld [vmem:[%s6831_s12 + $0x124] ss:$16 sps:$4 sm:$0xff]  }
 0x942   : > { %v2672_v2 = vadd.f32 %v2671_v0, %v2460_v53  ;;  %v2673_v4 = vpop.f32.mrb[29].mxu0  ;;  %v5167_v0 = vld [vmem:[%s6831_s12 + $0x12c] ss:$16 sps:$4 sm:$0xff]  }
 0x943   : > { %v2674_v6 = vadd.f32 %v2673_v4, %v2464_v56  ;;  %2694 = vadd.xlane.f32.xlu1 %v2693_v1  ;;  %v2675_v8 = vpop.f32.mrb[30].mxu0  ;;  %v5162_v1 = vld [vmem:[%s6831_s12 + $0x120] ss:$16 sps:$4 sm:$0xff]  }
 0x944   : > { %v6303_v11 = vadd.f32 %v5384_v10, %v2672_v2  ;;  %v2676_v12 = vadd.f32 %v2675_v8, %v2460_v53  ;;  %v2677_v14 = vpop.f32.mrb[31].mxu0  ;;  %v5138_v53 = vld [vmem:[%s6831_s12 + $0xa0] ss:$16 sps:$4 sm:$0xff]   ;;  %v5165_v2 = vld [vmem:[%s6831_s12 + $0x128] ss:$16 sps:$4 sm:$0xff]  }
 0x945   : > { %v6305_v18 = vadd.f32 %v5385_v17, %v2674_v6  ;;  %v2678_v20 = vadd.f32 %v2677_v14, %v2464_v56  ;;  %v5141_v56 = vld [vmem:[%s6831_s12 + $0xa8] ss:$16 sps:$4 sm:$0xff]   ;;  %3214 = vmatpush1.bf16.msra.mxu1 %v5138_v53  ;;  %v5186_v53 = vld [vmem:[%s6831_s12 + $0x1a0] ss:$16 sps:$4 sm:$0xff]  }
 0x946   : > { %v6307_v15 = vadd.f32 %v5386_v24, %v2676_v12  ;;  %3267 = vmatpush1.bf16.msra.mxu0 %v5141_v56  ;;  %3215 = vmatprep.subr.bf16.mxu1 %v5146_v59  ;;  %v5189_v56 = vld [vmem:[%s6831_s12 + $0x1a8] ss:$16 sps:$4 sm:$0xff]   ;;  %v5192_v59 = vld [vmem:[%s6831_s12 + $0x1c0] ss:$16 sps:$4 sm:$0xff]  }
 0x947   : > { %v6309_v27 = vadd.f32 %v5387_v25, %v2678_v20  ;;  %v2696_v28 = vadd.f32 %v6305_v18, %v6303_v11  ;;  %3268 = vmatprep.subr.bf16.mxu0 %v5149_v13  ;;  %v5194_v13 = vld [vmem:[%s6831_s12 + $0x1c4] ss:$16 sps:$4 sm:$0xff]  }
 0x949   : > { %2697 = vadd.xlane.f32.xlu0 %v2696_v28  ;;  %v2699_v7 = vadd.f32 %v6309_v27, %v6307_v15  ;;  %3216 = vmatpush1.bf16.msra.mxu1 %v5144_v54  ;;  %v5195_v54 = vld [vmem:[%s6831_s12 + $0x1c8] ss:$16 sps:$4 sm:$0xff]  }
 0x94a   : > { %3269 = vmatpush1.bf16.msra.mxu0 %v5147_v58  ;;  %3217 = vmatprep.subr.bf16.mxu1 %v5152_v57  ;;  %v5197_v58 = vld [vmem:[%s6831_s12 + $0x1cc] ss:$16 sps:$4 sm:$0xff]   ;;  %v5200_v57 = vld [vmem:[%s6831_s12 + $0x1e4] ss:$16 sps:$4 sm:$0xff]  }
 0x94b   : > { %2700 = vadd.xlane.f32.xlu1 %v2699_v7  ;;  %3270 = vmatprep.subr.bf16.mxu0 %v5155_v19  ;;  %v5203_v19 = vld [vmem:[%s6831_s12 + $0x1ec] ss:$16 sps:$4 sm:$0xff]  }
 0x94d   : > { %3218 = vmatpush1.bf16.msra.mxu1 %v5150_v5  ;;  %v5198_v5 = vld [vmem:[%s6831_s12 + $0x1e0] ss:$16 sps:$4 sm:$0xff]  }
 0x94e   : > { %3271 = vmatpush1.bf16.msra.mxu0 %v5153_v21  ;;  %3219 = vmatprep.subr.bf16.mxu1 %v5158_v63  ;;  %v5201_v21 = vld [vmem:[%s6831_s12 + $0x1e8] ss:$16 sps:$4 sm:$0xff]   ;;  %v5206_v63 = vld [vmem:[%s5935_s10 + $0x4] ss:$8 sps:$4 sm:$0xff]  }
 0x94f   : > { %3272 = vmatprep.subr.bf16.mxu0 %v5161_v23 }
 0x951   : > { %3220 = vmatpush1.bf16.msra.mxu1 %v5156_v31 }
 0x952   : > { %3273 = vmatpush1.bf16.msra.mxu0 %v5159_v60  ;;  %3221 = vmatprep.subr.bf16.mxu1 %v5164_v62 }
 0x953   : > { %3274 = vmatprep.subr.bf16.mxu0 %v5167_v0 }
 0x955   : > { %3222 = vmatpush1.bf16.msra.mxu1 %v5162_v1 }
 0x956   : > { %3275 = vmatpush1.bf16.msra.mxu0 %v5165_v2  ;;  %3223 = vmatprep.subr.bf16.mxu1 %v5170_v40 }
 0x957   : > { %3276 = vmatprep.subr.bf16.mxu0 %v5173_v37 }
 0x959   : > { %3224 = vmatpush1.bf16.msra.mxu1 %v5168_v39 }
 0x95a   : > { %3277 = vmatpush1.bf16.msra.mxu0 %v5171_v47  ;;  %3225 = vmatprep.subr.bf16.mxu1 %v5176_v49 }
 0x95b   : > { %3278 = vmatprep.subr.bf16.mxu0 %v5179_v32 }
 0x95d   : > { %3226 = vmatpush1.bf16.msra.mxu1 %v5174_v34  ;;  %v5204_v34 = vld [vmem:[%s5935_s10] ss:$8 sps:$4 sm:$0xff]  }
 0x95e   : > { %3279 = vmatpush1.bf16.msra.mxu0 %v5177_v36  ;;  %3227 = vmatprep.subr.bf16.mxu1 %v5182_v42  ;;  %v5209_v42 = vld [vmem:[%s5935_s10 + $0x14] ss:$8 sps:$4 sm:$0xff]  }
 0x95f   : > { %3280 = vmatprep.subr.bf16.mxu0 %v5185_v41 }
 0x961   : > { %3228 = vmatpush1.bf16.msra.mxu1 %v5180_v48 }
 0x962   : > { %3281 = vmatpush1.bf16.msra.mxu0 %v5183_v50  ;;  %3229 = vmatprep.subr.bf16.mxu1 %v5188_v51 }
 0x963   : > { %3282 = vmatprep.subr.bf16.mxu0 %v5191_v52 }
 0x965   : > { %3230 = vmatpush1.bf16.msra.mxu1 %v5186_v53  ;;  %v5212_v53 = vld [vmem:[%s5935_s10 + $0x24] ss:$8 sps:$4 sm:$0xff]  }
 0x966   : > { %3283 = vmatpush1.bf16.msra.mxu0 %v5189_v56  ;;  %3231 = vmatprep.subr.bf16.mxu1 %v5194_v13 }
 0x967   : > { %3284 = vmatprep.subr.bf16.mxu0 %v5197_v58  ;;  %v5210_v58 = vld [vmem:[%s5935_s10 + $0x20] ss:$8 sps:$4 sm:$0xff]  }
 0x969   : > { %3232 = vmatpush1.bf16.msra.mxu1 %v5192_v59 }
 0x96a   : > { %3285 = vmatpush1.bf16.msra.mxu0 %v5195_v54  ;;  %3233 = vmatprep.subr.bf16.mxu1 %v5200_v57  ;;  %v5215_v57 = vld [vmem:[%s5935_s10 + $0x34] ss:$8 sps:$4 sm:$0xff]  }
 0x96b   : > { %3286 = vmatprep.subr.bf16.mxu0 %v5203_v19  ;;  %v5213_v19 = vld [vmem:[%s5935_s10 + $0x30] ss:$8 sps:$4 sm:$0xff]  }
 0x96d   : > { %3234 = vmatpush1.bf16.msra.mxu1 %v5198_v5  ;;  %v5218_v5 = vld [vmem:[%s5935_s10 + $0x44] ss:$8 sps:$4 sm:$0xff]  }
 0x96e   : > { %3287 = vmatpush1.bf16.msra.mxu0 %v5201_v21  ;;  %3857 = vmatprep.subr.bf16.mxu1 %v5206_v63  ;;  %v5216_v21 = vld [vmem:[%s5935_s10 + $0x40] ss:$8 sps:$4 sm:$0xff]   ;;  %v5221_v63 = vld [vmem:[%s5935_s10 + $0x54] ss:$8 sps:$4 sm:$0xff]  }
 0x9ce   : > { %v2692_v4 = vpop.xlane.xlu0 %2691 }
 0x9cf   : > { %v2703_v6 = vmul.f32 0.00390625, %v2692_v4 }
 0x9d0   : > { %v2695_v8 = vpop.xlane.xlu1 %2694 }
 0x9d1   : > { %v6356_v10 = vsub.f32 %v6291_v26, %v2703_v6  ;;  %v6359_v12 = vsub.f32 %v6293_v3, %v2703_v6  ;;  %v2704_v14 = vmul.f32 0.00390625, %v2695_v8 }
 0x9d3   : > { %v6362_v17 = vsub.f32 %v6295_v55, %v2704_v14  ;;  %v6365_v20 = vsub.f32 %v6297_v61, %v2704_v14  ;;  %v2715_v24 = vmul.f32 %v6356_v10, %v6356_v10  ;;  %v2716_v25 = vmul.f32 %v6359_v12, %v6359_v12 }
 0x9d5   : > { %v2723_v28 = vadd.f32 %v2716_v25, %v2715_v24  ;;  %v2717_v26 = vmul.f32 %v6362_v17, %v6362_v17  ;;  %v2718_v3 = vmul.f32 %v6365_v20, %v6365_v20  ;;  %v2688_v24 = vld [vmem:[%s6833_s16] sm:$0x3] }
 0x9d6   : > { %v2698_v7 = vpop.xlane.xlu0 %2697 }
 0x9d7   : > { %v2705_v29 = vmul.f32 0.00390625, %v2698_v7  ;;  %2724 = vadd.xlane.f32.xlu0 %v2723_v28  ;;  %v2726_v55 = vadd.f32 %v2718_v3, %v2717_v26  ;;  %v2689_v28 = vld [vmem:[%s6835_s28] sm:$0x3]  ;;  %v2759_v26 = vrot.slane %v2688_v24, %v6057_v46  ;;  %v2763_v3 = vrot.slane %v2688_v24, %v6065_v45  ;;  %v5239_v24 = vld [vmem:[%s5935_s10 + $0xb4] ss:$8 sps:$4 sm:$0xff]  }
 0x9d8   : > { %v2701_v61 = vpop.xlane.xlu1 %2700 }
 0x9d9   : > { %v6376_v16 = vsub.f32 %v6303_v11, %v2705_v29  ;;  %v6379_v22 = vsub.f32 %v6305_v18, %v2705_v29  ;;  %v2706_v30 = vmul.f32 0.00390625, %v2701_v61  ;;  %2727 = vadd.xlane.f32.xlu1 %v2726_v55 }
 0x9db   : > { %v6382_v33 = vsub.f32 %v6307_v15, %v2706_v30  ;;  %v6385_v35 = vsub.f32 %v6309_v27, %v2706_v30  ;;  %v2719_v9 = vmul.f32 %v6376_v16, %v6376_v16  ;;  %v2720_v11 = vmul.f32 %v6379_v22, %v6379_v22 }
 0x9dc   : > { %v2778_v30 = vrot.slane %v2689_v28, %v6057_v46 }
 0x9dd   : > { %v2729_v38 = vadd.f32 %v2720_v11, %v2719_v9  ;;  %v2721_v18 = vmul.f32 %v6382_v33, %v6382_v33  ;;  %v2722_v15 = vmul.f32 %v6385_v35, %v6385_v35  ;;  %v2782_v9 = vrot.slane %v2689_v28, %v6065_v45  ;;  %v5242_v28 = vld [vmem:[%s5935_s10 + $0xc4] ss:$8 sps:$4 sm:$0xff]  }
 0x9df   : > { %2730 = vadd.xlane.f32.xlu0 %v2729_v38  ;;  %v2732_v27 = vadd.f32 %v2722_v15, %v2721_v18 }
 0x9e1   : > { %2733 = vadd.xlane.f32.xlu1 %v2732_v27 }
 0xa64   : > { %v2725_v23 = vpop.xlane.xlu0 %2724 }
 0xa65   : > { %v2735_v31 = vmul.f32 0.00390625, %v2725_v23  ;;  %v5219_v23 = vld [vmem:[%s5935_s10 + $0x50] ss:$8 sps:$4 sm:$0xff]  }
 0xa66   : > { %v2728_v60 = vpop.xlane.xlu1 %2727 }
 0xa67   : > { %v2739_v62 = vadd.f32 1e-05, %v2735_v31  ;;  %v2736_v0 = vmul.f32 0.00390625, %v2728_v60  ;;  %v5224_v31 = vld [vmem:[%s5935_s10 + $0x64] ss:$8 sps:$4 sm:$0xff]  }
 0xa68   : > { %v5222_v60 = vld [vmem:[%s5935_s10 + $0x60] ss:$8 sps:$4 sm:$0xff]  }
 0xa69   : > { %5332 = vrsqrt.f32 %v2739_v62  ;;  %v2740_v1 = vadd.f32 1e-05, %v2736_v0  ;;  %v5227_v62 = vld [vmem:[%s5935_s10 + $0x74] ss:$8 sps:$4 sm:$0xff]   ;;  %v5225_v0 = vld [vmem:[%s5935_s10 + $0x70] ss:$8 sps:$4 sm:$0xff]  }
 0xa6b   : > { %5334 = vrsqrt.f32 %v2740_v1  ;;  %v5230_v1 = vld [vmem:[%s5935_s10 + $0x84] ss:$8 sps:$4 sm:$0xff]  }
 0xa6c   : > { %v2731_v2 = vpop.xlane.xlu0 %2730 }
 0xa6d   : > { %v2737_v4 = vmul.f32 0.00390625, %v2731_v2  ;;  %v5228_v2 = vld [vmem:[%s5935_s10 + $0x80] ss:$8 sps:$4 sm:$0xff]  }
 0xa6e   : > { %v2734_v6 = vpop.xlane.xlu1 %2733 }
 0xa6f   : > { %v2741_v8 = vadd.f32 1e-05, %v2737_v4  ;;  %v2738_v14 = vmul.f32 0.00390625, %v2734_v6  ;;  %v5233_v4 = vld [vmem:[%s5935_s10 + $0x94] ss:$8 sps:$4 sm:$0xff]  }
 0xa70   : > { %v5231_v6 = vld [vmem:[%s5935_s10 + $0x90] ss:$8 sps:$4 sm:$0xff]  }
 0xa71   : > { %5336 = vrsqrt.f32 %v2741_v8  ;;  %v2742_v25 = vadd.f32 1e-05, %v2738_v14  ;;  %v5236_v8 = vld [vmem:[%s5935_s10 + $0xa4] ss:$8 sps:$4 sm:$0xff]   ;;  %v5234_v14 = vld [vmem:[%s5935_s10 + $0xa0] ss:$8 sps:$4 sm:$0xff]  }
 0xa73   : > { %v5333_v7 = vpop.eup %5332  ;;  %5338 = vrsqrt.f32 %v2742_v25  ;;  %v5237_v25 = vld [vmem:[%s5935_s10 + $0xb0] ss:$8 sps:$4 sm:$0xff]  }
 0xa74   : > { %v2747_v29 = vmul.f32 %v5333_v7, %v6356_v10  ;;  %v2748_v55 = vmul.f32 %v5333_v7, %v6359_v12  ;;  %v5245_v7 = vld [vmem:[%s5935_s10 + $0xd4] ss:$8 sps:$4 sm:$0xff]  }
 0xa75   : > { %v5335_v61 = vpop.eup %5334 }
 0xa76   : > { %v2749_v11 = vmul.f32 %v5335_v61, %v6362_v17  ;;  %v2750_v38 = vmul.f32 %v5335_v61, %v6365_v20  ;;  %v2767_v18 = vmul.f32 %v2763_v3, %v2748_v55  ;;  %v2766_v15 = vmul.f32 %v2759_v26, %v2747_v29  ;;  %v5248_v29 = vld [vmem:[%s5935_s10 + $0xe4] ss:$8 sps:$4 sm:$0xff]   ;;  %v5246_v55 = vld [vmem:[%s5935_s10 + $0xe0] ss:$8 sps:$4 sm:$0xff]   ;;  %v5251_v61 = vld [vmem:[%s5935_s10 + $0xf4] ss:$8 sps:$4 sm:$0xff]  }
 0xa78   : > { %v2769_v27 = vmul.f32 %v2763_v3, %v2750_v38  ;;  %v2768_v40 = vmul.f32 %v2759_v26, %v2749_v11  ;;  %v6438_v37 = vadd.f32 %v2782_v9, %v2767_v18  ;;  %v6442_v12 = vadd.f32 %v2778_v30, %v2766_v15  ;;  %v2861_v38 = vld [vmem:[%s5930_s25] sm:$0xf] }
 0xa79   : > { %v2873_v11 = vsub.s32 2, %v6054_v44  ;;  %v6501_v18 = vrot.slane %v2861_v38, %v6057_v46 }
 0xa7a   : > { %v6440_v10 = vadd.f32 %v2782_v9, %v2769_v27  ;;  %v6444_v39 = vadd.f32 %v2778_v30, %v2768_v40  ;;  %v6506_v27 = vrot.slane %v2861_v38, %v6065_v45  ;;  %v2877_v40 = vsub.s32 3, %v6054_v44 }
 0xa7b   : > { %v5337_v47 = vpop.eup %5336  ;;  %v6503_v15 = vrot.slane %v2861_v38, %v2873_v11 }
 0xa7c   : > { %v2794_v49 = vpack.c.bf16 %v6440_v10, %v6438_v37  ;;  %v2793_v17 = vpack.c.bf16 %v6444_v39, %v6442_v12  ;;  %v2752_v20 = vmul.f32 %v5337_v47, %v6379_v22  ;;  %v2751_v32 = vmul.f32 %v5337_v47, %v6376_v16  ;;  %v5207_v16 = vld [vmem:[%s5935_s10 + $0x10] ss:$8 sps:$4 sm:$0xff]  }
 0xa7d   : > { %v5339_v36 = vpop.eup %5338 }
 0xa7e   : > { %3235 = vmatprep.mubr.bf16.mxu1 %v2794_v49  ;;  %3288 = vmatprep.mubr.bf16.mxu0 %v2794_v49  ;;  %v2754_v41 = vmul.f32 %v5339_v36, %v6385_v35  ;;  %v2771_v48 = vmul.f32 %v2763_v3, %v2752_v20  ;;  %v2753_v50 = vmul.f32 %v5339_v36, %v6382_v33 }
 0xa7f   : > { %3236 = vmatmul.mubr.bf16.vlgmr.msra.gmra.mrb[32].mxu1 %v2793_v17  ;;  %3289 = vmatmul.mubr.bf16.vlgmr.msra.gmra.mrb[32].mxu0 %v2793_v17  ;;  %v2770_v51 = vmul.f32 %v2759_v26, %v2751_v32 }
 0xa80   : > { %v2773_v22 = vmul.f32 %v2763_v3, %v2754_v41  ;;  %v2772_v52 = vmul.f32 %v2759_v26, %v2753_v50  ;;  %3858 = vmatpush1.bf16.msra.mxu1 %v5204_v34  ;;  %v6458_v56 = vadd.f32 %v2782_v9, %v2771_v48  ;;  %v5240_v26 = vld [vmem:[%s5935_s10 + $0xc0] ss:$8 sps:$4 sm:$0xff]   ;;  %v5243_v3 = vld [vmem:[%s5935_s10 + $0xd0] ss:$8 sps:$4 sm:$0xff]  }
 0xa81   : > { %3859 = vmatprep.subr.bf16.mxu1 %v5209_v42  ;;  %v6462_v35 = vadd.f32 %v2778_v30, %v2770_v51  ;;  %v6514_v51 = vrot.slane %v2861_v38, %v2877_v40 }
 0xa82   : > { %v6460_v59 = vadd.f32 %v2782_v9, %v2773_v22  ;;  %v6464_v33 = vadd.f32 %v2778_v30, %v2772_v52  ;;  %v5249_v30 = vld [vmem:[%s5935_s10 + $0xf0] ss:$8 sps:$4 sm:$0xff]   ;;  %v5254_v9 = vld [vmem:[%s5935_s10 + $0x104] ss:$8 sps:$4 sm:$0xff]  }
 0xa84   : > { %v2796_v13 = vpack.c.bf16 %v6460_v59, %v6458_v56  ;;  %v2795_v54 = vpack.c.bf16 %v6464_v33, %v6462_v35  ;;  %3860 = vmatpush1.bf16.msra.mxu1 %v5207_v16 }
 0xa85   : > { %3861 = vmatprep.subr.bf16.mxu1 %v5212_v53 }
 0xa86   : > { %3245 = vmatprep.mubr.bf16.mxu1 %v2796_v13  ;;  %3298 = vmatprep.mubr.bf16.mxu0 %v2796_v13 }
 0xa87   : > { %3246 = vmatmul.mubr.bf16.gmra.mrb[36].mxu1 %v2795_v54  ;;  %3299 = vmatmul.mubr.bf16.gmra.mrb[36].mxu0 %v2795_v54 }
 0xa88   : > { %3862 = vmatpush1.bf16.msra.mxu1 %v5210_v58 }
 0xa89   : > { %3863 = vmatprep.subr.bf16.mxu1 %v5215_v57 }
 0xa8c   : > { %3864 = vmatpush1.bf16.msra.mxu1 %v5213_v19 }
 0xa8d   : > { %3865 = vmatprep.subr.bf16.mxu1 %v5218_v5 }
 0xa90   : > { %3866 = vmatpush1.bf16.msra.mxu1 %v5216_v21 }
 0xa91   : > { %3867 = vmatprep.subr.bf16.mxu1 %v5221_v63 }
 0xa94   : > { %3868 = vmatpush1.bf16.msra.mxu1 %v5219_v23 }
 0xa95   : > { %3869 = vmatprep.subr.bf16.mxu1 %v5224_v31 }
 0xa98   : > { %3870 = vmatpush1.bf16.msra.mxu1 %v5222_v60 }
 0xa99   : > { %3871 = vmatprep.subr.bf16.mxu1 %v5227_v62 }
 0xa9c   : > { %3872 = vmatpush1.bf16.msra.mxu1 %v5225_v0 }
 0xa9d   : > { %3873 = vmatprep.subr.bf16.mxu1 %v5230_v1 }
 0xaa0   : > { %3874 = vmatpush1.bf16.msra.mxu1 %v5228_v2 }
 0xaa1   : > { %3875 = vmatprep.subr.bf16.mxu1 %v5233_v4 }
 0xaa4   : > { %3876 = vmatpush1.bf16.msra.mxu1 %v5231_v6 }
 0xaa5   : > { %3877 = vmatprep.subr.bf16.mxu1 %v5236_v8 }
 0xaa8   : > { %3878 = vmatpush1.bf16.msra.mxu1 %v5234_v14 }
 0xaa9   : > { %3879 = vmatprep.subr.bf16.mxu1 %v5239_v24 }
 0xaac   : > { %3880 = vmatpush1.bf16.msra.mxu1 %v5237_v25 }
 0xaad   : > { %3881 = vmatprep.subr.bf16.mxu1 %v5242_v28 }
 0xab0   : > { %3882 = vmatpush1.bf16.msra.mxu1 %v5240_v26 }
 0xab1   : > { %3883 = vmatprep.subr.bf16.mxu1 %v5245_v7 }
 0xab4   : > { %3884 = vmatpush1.bf16.msra.mxu1 %v5243_v3 }
 0xab5   : > { %3885 = vmatprep.subr.bf16.mxu1 %v5248_v29 }
 0xab8   : > { %3886 = vmatpush1.bf16.msra.mxu1 %v5246_v55 }
 0xab9   : > { %3887 = vmatprep.subr.bf16.mxu1 %v5251_v61 }
 0xabc   : > { %3888 = vmatpush1.bf16.msra.mxu1 %v5249_v30 }
 0xabd   : > { %3910 = vmatprep.subr.bf16.mxu1 %v5254_v9 }
 0xb52   : > { %v3237_v47 = vpop.f32.mrb[32].mxu1  ;;  %v3290_v49 = vpop.f32.mrb[32].mxu0 }
 0xb53   : > { %v3238_v17 = vadd.f32 %v3237_v47, %v6501_v18  ;;  %v3291_v20 = vadd.f32 %v3290_v49, %v6503_v15  ;;  %v3239_v32 = vpop.f32.mrb[33].mxu1  ;;  %v3292_v34 = vpop.f32.mrb[33].mxu0 }
 0xb54   : > { %v6512_v36 = vadd.f32 %v3239_v32, %v6506_v27  ;;  %v3241_v42 = vpop.f32.mrb[34].mxu1  ;;  %v3294_v41 = vpop.f32.mrb[34].mxu0  ;;  %v6525_v63 = vadd.f32 %v3292_v34, %v6514_v51 }
 0xb55   : > { %v3325_v48 = vmul.f32 0.044715, %v3238_v17  ;;  %v3327_v50 = vmul.f32 0.044715, %v3291_v20  ;;  %v3242_v22 = vadd.f32 %v3241_v42, %v6501_v18  ;;  %v6518_v52 = vadd.f32 %v3294_v41, %v6503_v15  ;;  %v3243_v16 = vpop.f32.mrb[35].mxu1  ;;  %v3296_v53 = vpop.f32.mrb[35].mxu0 }
 0xb56   : > { %v3326_v58 = vmul.f32 0.044715, %v6512_v36  ;;  %v6522_v57 = vadd.f32 %v3243_v16, %v6506_v27  ;;  %v6528_v31 = vmul.f32 0.5, %v3238_v17  ;;  %v6530_v60 = vmul.f32 0.5, %v3291_v20 }
 0xb57   : > { %v3341_v13 = vmul.f32 %v3325_v48, %v3238_v17  ;;  %v3343_v54 = vmul.f32 %v3327_v50, %v3291_v20  ;;  %v3329_v19 = vmul.f32 0.044715, %v3242_v22  ;;  %v3331_v23 = vmul.f32 0.044715, %v6518_v52 }
 0xb58   : > { %v3330_v0 = vmul.f32 0.044715, %v6522_v57  ;;  %v3342_v8 = vmul.f32 %v3326_v58, %v6512_v36  ;;  %v6537_v3 = vadd.f32 %v3296_v53, %v6514_v51  ;;  %v3328_v40 = vmul.f32 0.044715, %v6525_v63 }
 0xb59   : > { %v3357_v5 = vmul.f32 %v3341_v13, %v3238_v17  ;;  %v3359_v21 = vmul.f32 %v3343_v54, %v3291_v20  ;;  %v3345_v62 = vmul.f32 %v3329_v19, %v3242_v22  ;;  %v3347_v14 = vmul.f32 %v3331_v23, %v6518_v52 }
 0xb5a   : > { %v3247_v1 = vpop.f32.mrb[36].mxu1  ;;  %v3300_v2 = vpop.f32.mrb[36].mxu0  ;;  %v3346_v26 = vmul.f32 %v3330_v0, %v6522_v57  ;;  %v3332_v48 = vmul.f32 0.044715, %v6537_v3  ;;  %v3313_v0 = vmul.f32 0.5, %v3242_v22 }
 0xb5b   : > { %v3373_v4 = vadd.f32 %v3357_v5, %v3238_v17  ;;  %v3375_v6 = vadd.f32 %v3359_v21, %v3291_v20  ;;  %v3249_v24 = vpop.f32.mrb[37].mxu1  ;;  %v3302_v25 = vpop.f32.mrb[37].mxu0  ;;  %v3361_v28 = vmul.f32 %v3345_v62, %v3242_v22  ;;  %v6540_v7 = vadd.f32 %v3247_v1, %v6501_v18 }
 0xb5c   : > { %v3251_v29 = vpop.f32.mrb[38].mxu1  ;;  %v3304_v55 = vpop.f32.mrb[38].mxu0  ;;  %v3363_v9 = vmul.f32 %v3347_v14, %v6518_v52  ;;  %v6546_v17 = vadd.f32 %v3300_v2, %v6503_v15  ;;  %v3358_v20 = vmul.f32 %v3342_v8, %v6512_v36  ;;  %v6551_v34 = vadd.f32 %v3249_v24, %v6506_v27 }
 0xb5d   : > { %v3389_v61 = vmul.f32 0.7978846, %v3373_v4  ;;  %v3391_v30 = vmul.f32 0.7978846, %v3375_v6  ;;  %v3253_v11 = vpop.f32.mrb[39].mxu1  ;;  %v3306_v38 = vpop.f32.mrb[39].mxu0  ;;  %v3377_v47 = vadd.f32 %v3361_v28, %v3242_v22  ;;  %v3362_v41 = vmul.f32 %v3346_v26, %v6522_v57 }
 0xb5e   : > { %v3333_v49 = vmul.f32 0.044715, %v6540_v7  ;;  %v3379_v32 = vadd.f32 %v3363_v9, %v6518_v52  ;;  %v3334_v16 = vmul.f32 0.044715, %v6551_v34  ;;  %v6557_v53 = vadd.f32 %v3302_v25, %v6514_v51 }
 0xb5f   : > { %5340 = vtanh.f32 %v3389_v61  ;;  %v3393_v42 = vmul.f32 0.7978846, %v3377_v47  ;;  %v6560_v13 = vadd.f32 %v3251_v29, %v6501_v18  ;;  %v3335_v58 = vmul.f32 0.044715, %v6546_v17 }
 0xb60   : > { %5342 = vtanh.f32 %v3391_v30  ;;  %v3395_v50 = vmul.f32 0.7978846, %v3379_v32  ;;  %v3349_v54 = vmul.f32 %v3333_v49, %v6540_v7  ;;  %v6565_v19 = vadd.f32 %v3304_v55, %v6503_v15 }
 0xb61   : > { %5344 = vtanh.f32 %v3393_v42  ;;  %v3350_v5 = vmul.f32 %v3334_v16, %v6551_v34  ;;  %v3336_v21 = vmul.f32 0.044715, %v6557_v53  ;;  %v3337_v23 = vmul.f32 0.044715, %v6560_v13 }
 0xb62   : > { %5346 = vtanh.f32 %v3395_v50  ;;  %v3344_v62 = vmul.f32 %v3328_v40, %v6525_v63  ;;  %v6572_v18 = vadd.f32 %v3253_v11, %v6506_v27  ;;  %v6575_v1 = vadd.f32 %v3306_v38, %v6514_v51 }
 0xb63   : > { %v3315_v2 = vmul.f32 0.5, %v6518_v52  ;;  %v3348_v15 = vmul.f32 %v3332_v48, %v6537_v3  ;;  %v3366_v4 = vmul.f32 %v3350_v5, %v6551_v34  ;;  %v3353_v6 = vmul.f32 %v3337_v23, %v6560_v13 }
 0xb64   : > { %v3351_v8 = vmul.f32 %v3335_v58, %v6546_v17  ;;  %v3338_v14 = vmul.f32 0.044715, %v6572_v18  ;;  %v3340_v22 = vmul.f32 0.044715, %v6575_v1  ;;  %v3374_v27 = vadd.f32 %v3358_v20, %v6512_v36 }
 0xb65   : > { %v3365_v24 = vmul.f32 %v3349_v54, %v6540_v7  ;;  %v3352_v51 = vmul.f32 %v3336_v21, %v6557_v53  ;;  %v3339_v52 = vmul.f32 0.044715, %v6565_v19  ;;  %v3378_v25 = vadd.f32 %v3362_v41, %v6522_v57 }
 0xb66   : > { %v3369_v28 = vmul.f32 %v3353_v6, %v6560_v13  ;;  %v3354_v26 = vmul.f32 %v3338_v14, %v6572_v18  ;;  %v3356_v29 = vmul.f32 %v3340_v22, %v6575_v1  ;;  %v3390_v55 = vmul.f32 0.7978846, %v3374_v27 }
 0xb67   : > { %v3360_v30 = vmul.f32 %v3344_v62, %v6525_v63  ;;  %v3364_v9 = vmul.f32 %v3348_v15, %v6537_v3  ;;  %v3394_v11 = vmul.f32 0.7978846, %v3378_v25  ;;  %v3382_v38 = vadd.f32 %v3366_v4, %v6551_v34 }
 0xb68   : > { %v3367_v47 = vmul.f32 %v3351_v8, %v6546_v17  ;;  %v3370_v49 = vmul.f32 %v3354_v26, %v6572_v18  ;;  %5348 = vtanh.f32 %v3390_v55  ;;  %v3355_v32 = vmul.f32 %v3339_v52, %v6565_v19 }
 0xb69   : > { %v5341_v61 = vpop.eup %5340  ;;  %5350 = vtanh.f32 %v3394_v11  ;;  %v3398_v42 = vmul.f32 0.7978846, %v3382_v38  ;;  %v3381_v41 = vadd.f32 %v3365_v24, %v6540_v7  ;;  %v3368_v50 = vmul.f32 %v3352_v51, %v6557_v53 }
 0xb6a   : > { %v5343_v40 = vpop.eup %5342  ;;  %v3421_v20 = vadd.f32 1.0, %v5341_v61  ;;  %v3372_v16 = vmul.f32 %v3356_v29, %v6575_v1  ;;  %v3386_v54 = vadd.f32 %v3370_v49, %v6572_v18  ;;  %v3385_v58 = vadd.f32 %v3369_v28, %v6560_v13 }
 0xb6b   : > { %v5345_v48 = vpop.eup %5344  ;;  %5352 = vtanh.f32 %v3398_v42  ;;  %v3397_v62 = vmul.f32 0.7978846, %v3381_v41  ;;  %v3376_v6 = vadd.f32 %v3360_v30, %v6525_v63  ;;  %v3380_v8 = vadd.f32 %v3364_v9, %v6537_v3 }
 0xb6c   : > { %v5347_v5 = vpop.eup %5346  ;;  %v3425_v21 = vadd.f32 1.0, %v5345_v48  ;;  %v3437_v23 = vmul.f32 %v3421_v20, %v6528_v31  ;;  %v3402_v15 = vmul.f32 0.7978846, %v3386_v54  ;;  %v3401_v4 = vmul.f32 0.7978846, %v3385_v58 }
 0xb6d   : > { %5354 = vtanh.f32 %v3397_v62  ;;  %v3423_v22 = vadd.f32 1.0, %v5343_v40  ;;  %v3427_v27 = vadd.f32 1.0, %v5347_v5  ;;  %v3371_v24 = vmul.f32 %v3355_v32, %v6565_v19  ;;  %v5257_v5 = vld [vmem:[%s5935_s10 + $0x114] ss:$8 sps:$4 sm:$0xff]  }
 0xb6e   : > { %v3441_v14 = vmul.f32 %v3425_v21, %v3313_v0  ;;  %5356 = vtanh.f32 %v3402_v15  ;;  %v3392_v51 = vmul.f32 0.7978846, %v3376_v6  ;;  %v3396_v52 = vmul.f32 0.7978846, %v3380_v8 }
 0xb6f   : > { %5358 = vtanh.f32 %v3401_v4  ;;  %v6608_v31 = vmul.f32 %v3423_v22, %v6530_v60  ;;  %v6610_v28 = vmul.f32 %v3427_v27, %v3315_v2  ;;  %v3384_v26 = vadd.f32 %v3368_v50, %v6557_v53 }
 0xb70   : > { %v3453_v25 = vpack.c.bf16 %v3441_v14, %v3437_v23  ;;  %5360 = vtanh.f32 %v3392_v51  ;;  %v3388_v0 = vadd.f32 %v3372_v16, %v6575_v1  ;;  %v3383_v9 = vadd.f32 %v3367_v47, %v6546_v17 }
 0xb71   : > { %5362 = vtanh.f32 %v3396_v52  ;;  %v3455_v29 = vpack.c.bf16 %v6610_v28, %v6608_v31  ;;  %v3400_v61 = vmul.f32 0.7978846, %v3384_v26  ;;  %v3387_v11 = vadd.f32 %v3371_v24, %v6565_v19 }
 0xb72   : > { %v5349_v55 = vpop.eup %5348  ;;  %v3404_v30 = vmul.f32 0.7978846, %v3388_v0  ;;  %v3310_v2 = vmul.f32 0.5, %v6512_v36  ;;  %v3314_v38 = vmul.f32 0.5, %v6522_v57  ;;  %v3399_v20 = vmul.f32 0.7978846, %v3383_v9 }
 0xb73   : > { %v5351_v60 = vpop.eup %5350  ;;  %v3422_v40 = vadd.f32 1.0, %v5349_v55  ;;  %5364 = vtanh.f32 %v3400_v61  ;;  %v3403_v32 = vmul.f32 0.7978846, %v3387_v11  ;;  %v5252_v36 = vld [vmem:[%s5935_s10 + $0x100] ss:$8 sps:$4 sm:$0xff]   ;;  %v3318_v21 = vmul.f32 0.5, %v6551_v34 }
 0xb74   : > { %v3426_v49 = vadd.f32 1.0, %v5351_v60  ;;  %5366 = vtanh.f32 %v3404_v30  ;;  %v3322_v23 = vmul.f32 0.5, %v6572_v18  ;;  %v3317_v4 = vmul.f32 0.5, %v6540_v7  ;;  %v5255_v34 = vld [vmem:[%s5935_s10 + $0x110] ss:$8 sps:$4 sm:$0xff]  }
 0xb75   : > { %v5353_v42 = vpop.eup %5352  ;;  %v3438_v41 = vmul.f32 %v3422_v40, %v3310_v2  ;;  %5368 = vtanh.f32 %v3399_v20  ;;  %v3321_v6 = vmul.f32 0.5, %v6560_v13  ;;  %v3312_v24 = vmul.f32 0.5, %v6525_v63  ;;  %v5260_v13 = vld [vmem:[%s5935_s10 + $0x124] ss:$8 sps:$4 sm:$0xff]   ;;  %v5258_v60 = vld [vmem:[%s5935_s10 + $0x120] ss:$8 sps:$4 sm:$0xff]  }
 0xb76   : > { %v3442_v48 = vmul.f32 %v3426_v49, %v3314_v38  ;;  %v3430_v50 = vadd.f32 1.0, %v5353_v42  ;;  %5370 = vtanh.f32 %v3403_v32  ;;  %v3316_v26 = vmul.f32 0.5, %v6537_v3  ;;  %v5263_v20 = vld [vmem:[%s5935_s10 + $0x134] ss:$8 sps:$4 sm:$0xff]  }
 0xb77   : > { %v5355_v47 = vpop.eup %5354  ;;  %v3320_v38 = vmul.f32 0.5, %v6557_v53  ;;  %v3324_v3 = vmul.f32 0.5, %v6575_v1  ;;  %v3319_v32 = vmul.f32 0.5, %v6546_v17  ;;  %v5261_v53 = vld [vmem:[%s5935_s10 + $0x130] ss:$8 sps:$4 sm:$0xff]  }
 0xb78   : > { %v5357_v16 = vpop.eup %5356  ;;  %v3454_v54 = vpack.c.bf16 %v3442_v48, %v3438_v41  ;;  %v3429_v58 = vadd.f32 1.0, %v5355_v47  ;;  %v3446_v22 = vmul.f32 %v3430_v50, %v3318_v21  ;;  %v3323_v47 = vmul.f32 0.5, %v6565_v19  ;;  %v5264_v19 = vld [vmem:[%s5935_s10 + $0x140] ss:$8 sps:$4 sm:$0xff]  }
 0xb79   : > { %v5359_v57 = vpop.eup %5358  ;;  %v3434_v62 = vadd.f32 1.0, %v5357_v16  ;;  %v5270_v21 = vld [vmem:[%s5935_s10 + $0x160] ss:$8 sps:$4 sm:$0xff]  }
 0xb7a   : > { %v5361_v15 = vpop.eup %5360  ;;  %3889 = vmatprep.mubr.bf16.mxu1 %v3454_v54  ;;  %v3433_v8 = vadd.f32 1.0, %v5359_v57  ;;  %v3445_v52 = vmul.f32 %v3429_v58, %v3317_v4  ;;  %v5266_v54 = vld [vmem:[%s5935_s10 + $0x144] ss:$8 sps:$4 sm:$0xff]   ;;  %v5269_v58 = vld [vmem:[%s5935_s10 + $0x154] ss:$8 sps:$4 sm:$0xff]  }
 0xb7b   : > { %v5363_v14 = vpop.eup %5362  ;;  %3890 = vmatmul.mubr.bf16.vlgmr.msra.gmra.mrb[40].mxu1 %v3453_v25  ;;  %v3450_v27 = vmul.f32 %v3434_v62, %v3322_v23  ;;  %v3424_v51 = vadd.f32 1.0, %v5361_v15  ;;  %v5267_v57 = vld [vmem:[%s5935_s10 + $0x150] ss:$8 sps:$4 sm:$0xff]   ;;  %v5275_v23 = vld [vmem:[%s5935_s10 + $0x174] ss:$8 sps:$4 sm:$0xff]  }
 0xb7c   : > { %3911 = vmatpush1.bf16.msra.mxu1 %v5252_v36  ;;  %v3449_v18 = vmul.f32 %v3433_v8, %v3321_v6  ;;  %v3428_v0 = vadd.f32 1.0, %v5363_v14  ;;  %v5273_v62 = vld [vmem:[%s5935_s10 + $0x170] ss:$8 sps:$4 sm:$0xff]   ;;  %v5278_v15 = vld [vmem:[%s5935_s10 + $0x184] ss:$8 sps:$4 sm:$0xff]  }
 0xb7d   : > { %3912 = vmatprep.subr.bf16.mxu1 %v5257_v5  ;;  %v3458_v7 = vpack.c.bf16 %v3450_v27, %v3446_v22  ;;  %v5365_v55 = vpop.eup %5364  ;;  %v3440_v25 = vmul.f32 %v3424_v51, %v3312_v24  ;;  %v5272_v5 = vld [vmem:[%s5935_s10 + $0x164] ss:$8 sps:$4 sm:$0xff]   ;;  %v5276_v4 = vld [vmem:[%s5935_s10 + $0x180] ss:$8 sps:$4 sm:$0xff]   ;;  %v5281_v6 = vld [vmem:[%s5935_s10 + $0x194] ss:$8 sps:$4 sm:$0xff]  }
 0xb7e   : > { %v3457_v61 = vpack.c.bf16 %v3449_v18, %v3445_v52  ;;  %v3444_v30 = vmul.f32 %v3428_v0, %v3316_v26  ;;  %v5367_v9 = vpop.eup %5366  ;;  %v3432_v63 = vadd.f32 1.0, %v5365_v55  ;;  %v5279_v8 = vld [vmem:[%s5935_s10 + $0x190] ss:$8 sps:$4 sm:$0xff]   ;;  %v5284_v14 = vld [vmem:[%s5935_s10 + $0x1a4] ss:$8 sps:$4 sm:$0xff]  }
 0xb7f   : > { %3899 = vmatprep.mubr.bf16.mxu1 %v3458_v7  ;;  %v5369_v11 = vpop.eup %5368  ;;  %v3436_v40 = vadd.f32 1.0, %v5367_v9  ;;  %v5282_v22 = vld [vmem:[%s5935_s10 + $0x1a0] ss:$8 sps:$4 sm:$0xff]   ;;  %v5287_v27 = vld [vmem:[%s5935_s10 + $0x1b4] ss:$8 sps:$4 sm:$0xff]  }
 0xb80   : > { %3913 = vmatpush1.bf16.msra.mxu1 %v5255_v34  ;;  %v3456_v2 = vpack.c.bf16 %v3444_v30, %v3440_v25  ;;  %v5371_v49 = vpop.eup %5370  ;;  %v3431_v42 = vadd.f32 1.0, %v5369_v11  ;;  %v6635_v41 = vmul.f32 %v3432_v63, %v3320_v38  ;;  %v5285_v24 = vld [vmem:[%s5935_s10 + $0x1b0] ss:$8 sps:$4 sm:$0xff]   ;;  %v5290_v51 = vld [vmem:[%s5935_s10 + $0x1c4] ss:$8 sps:$4 sm:$0xff]  }
 0xb81   : > { %3914 = vmatprep.subr.bf16.mxu1 %v5260_v13  ;;  %v3452_v48 = vmul.f32 %v3436_v40, %v3324_v3  ;;  %v3435_v50 = vadd.f32 1.0, %v5371_v49  ;;  %v5288_v34 = vld [vmem:[%s5935_s10 + $0x1c0] ss:$8 sps:$4 sm:$0xff]   ;;  %v5293_v52 = vld [vmem:[%s5935_s10 + $0x1d4] ss:$8 sps:$4 sm:$0xff]  }
 0xb82   : > { %v3447_v16 = vmul.f32 %v3431_v42, %v3319_v32  ;;  %v5291_v18 = vld [vmem:[%s5935_s10 + $0x1d0] ss:$8 sps:$4 sm:$0xff]   ;;  %v5296_v26 = vld [vmem:[%s5935_s10 + $0x1e4] ss:$8 sps:$4 sm:$0xff]   ;;  %v5294_v0 = vld [vmem:[%s5935_s10 + $0x1e0] ss:$8 sps:$4 sm:$0xff]  }
 0xb83   : > { %3900 = vmatmul.mubr.bf16.gmra.mrb[44].mxu1 %v3457_v61  ;;  %v3460_v1 = vpack.c.bf16 %v3452_v48, %v6635_v41  ;;  %v3451_v17 = vmul.f32 %v3435_v50, %v3323_v47  ;;  %v5299_v7 = vld [vmem:[%s5935_s10 + $0x1f4] ss:$8 sps:$4 sm:$0xff]   ;;  %v5297_v13 = vld [vmem:[%s5935_s10 + $0x1f0] ss:$8 sps:$4 sm:$0xff]   ;;  %v3525_v55 = vld [vmem:[%s1004_s15] sm:$0x3] }
 0xb84   : > { %3915 = vmatpush1.bf16.msra.mxu1 %v5258_v60  ;;  %3942 = vmatprep.mubr.bf16.mxu1 %v3456_v2  ;;  %v3530_v61 = vrot.slane %v3525_v55, %v6057_v46  ;;  %v3534_v25 = vrot.slane %v3525_v55, %v6065_v45 }
 0xb85   : > { %3916 = vmatprep.subr.bf16.mxu1 %v5263_v20  ;;  %v3459_v36 = vpack.c.bf16 %v3451_v17, %v3447_v16 }
 0xb88   : > { %3917 = vmatpush1.bf16.msra.mxu1 %v5261_v53 }
 0xb89   : > { %3918 = vmatprep.subr.bf16.mxu1 %v5266_v54 }
 0xb8c   : > { %3919 = vmatpush1.bf16.msra.mxu1 %v5264_v19 }
 0xb8d   : > { %3920 = vmatprep.subr.bf16.mxu1 %v5269_v58 }
 0xb90   : > { %3921 = vmatpush1.bf16.msra.mxu1 %v5267_v57 }
 0xb91   : > { %3922 = vmatprep.subr.bf16.mxu1 %v5272_v5 }
 0xb94   : > { %3923 = vmatpush1.bf16.msra.mxu1 %v5270_v21 }
 0xb95   : > { %3924 = vmatprep.subr.bf16.mxu1 %v5275_v23 }
 0xb98   : > { %3925 = vmatpush1.bf16.msra.mxu1 %v5273_v62 }
 0xb99   : > { %3926 = vmatprep.subr.bf16.mxu1 %v5278_v15 }
 0xb9c   : > { %3927 = vmatpush1.bf16.msra.mxu1 %v5276_v4 }
 0xb9d   : > { %3928 = vmatprep.subr.bf16.mxu1 %v5281_v6 }
 0xba0   : > { %3929 = vmatpush1.bf16.msra.mxu1 %v5279_v8 }
 0xba1   : > { %3930 = vmatprep.subr.bf16.mxu1 %v5284_v14 }
 0xba4   : > { %3931 = vmatpush1.bf16.msra.mxu1 %v5282_v22 }
 0xba5   : > { %3932 = vmatprep.subr.bf16.mxu1 %v5287_v27 }
 0xba8   : > { %3933 = vmatpush1.bf16.msra.mxu1 %v5285_v24 }
 0xba9   : > { %3934 = vmatprep.subr.bf16.mxu1 %v5290_v51 }
 0xbac   : > { %3935 = vmatpush1.bf16.msra.mxu1 %v5288_v34 }
 0xbad   : > { %3936 = vmatprep.subr.bf16.mxu1 %v5293_v52 }
 0xbb0   : > { %3937 = vmatpush1.bf16.msra.mxu1 %v5291_v18 }
 0xbb1   : > { %3938 = vmatprep.subr.bf16.mxu1 %v5296_v26 }
 0xbb4   : > { %3939 = vmatpush1.bf16.msra.mxu1 %v5294_v0 }
 0xbb5   : > { %3940 = vmatprep.subr.bf16.mxu1 %v5299_v7 }
 0xbb8   : > { %3941 = vmatpush1.bf16.msra.mxu1 %v5297_v13 }
 0xbbb   : > { %3943 = vmatmul.mubr.bf16.vlgmr.msra.gmra.mrb[40].mxu1 %v3455_v29 }
 0xbbc   : > { %3952 = vmatprep.mubr.bf16.mxu1 %v3460_v1 }
 0xbc3   : > { %3953 = vmatmul.mubr.bf16.gmra.mrb[44].mxu1 %v3459_v36 }
 0xc8e   : > { %v3944_v30 = vpop.f32.mrb[40].mxu1 }
 0xc8f   : > { %v4806_v9 = vadd.f32 %v3944_v30, %v3530_v61  ;;  %v3946_v63 = vpop.f32.mrb[41].mxu1 }
 0xc90   : > { %v4807_v11 = vadd.f32 %v3946_v63, %v3534_v25  ;;  %v3948_v60 = vpop.f32.mrb[42].mxu1 }
 0xc91   : > { %v3963_v2 = vadd.f32 %v4806_v9, %v6442_v12  ;;  %v4808_v31 = vadd.f32 %v3948_v60, %v3530_v61  ;;  %v3950_v28 = vpop.f32.mrb[43].mxu1 }
 0xc92   : > { %v3964_v29 = vadd.f32 %v4807_v11, %v6438_v37  ;;  %v4809_v38 = vadd.f32 %v3950_v28, %v3534_v25 }
 0xc93   : > { %v3965_v3 = vadd.f32 %v4808_v31, %v6444_v39 }
 0xc94   : > { %v3966_v40 = vadd.f32 %v4809_v38, %v6440_v10  ;;  %v3973_v49 = vadd.f32 %v3964_v29, %v3963_v2 }
 0xc96   : > { %v3954_v20 = vpop.f32.mrb[44].mxu1  ;;  %3974 = vadd.xlane.f32.xlu0 %v3973_v49  ;;  %v3976_v32 = vadd.f32 %v3966_v40, %v3965_v3 }
 0xc97   : > { %v4810_v42 = vadd.f32 %v3954_v20, %v3530_v61  ;;  %v3956_v41 = vpop.f32.mrb[45].mxu1 }
 0xc98   : > { %v4811_v48 = vadd.f32 %v3956_v41, %v3534_v25  ;;  %v3958_v47 = vpop.f32.mrb[46].mxu1  ;;  %3977 = vadd.xlane.f32.xlu1 %v3976_v32 }
 0xc99   : > { %v3967_v12 = vadd.f32 %v4810_v42, %v6462_v35  ;;  %v4812_v50 = vadd.f32 %v3958_v47, %v3530_v61  ;;  %v3960_v53 = vpop.f32.mrb[47].mxu1 }
 0xc9a   : > { %v3968_v37 = vadd.f32 %v4811_v48, %v6458_v56  ;;  %v4813_v1 = vadd.f32 %v3960_v53, %v3534_v25 }
 0xc9b   : > { %v3969_v39 = vadd.f32 %v4812_v50, %v6464_v33 }
 0xc9c   : > { %v3970_v10 = vadd.f32 %v4813_v1, %v6460_v59  ;;  %v3979_v16 = vadd.f32 %v3968_v37, %v3967_v12 }
 0xc9e   : > { %3980 = vadd.xlane.f32.xlu0 %v3979_v16  ;;  %v3982_v17 = vadd.f32 %v3970_v10, %v3969_v39 }
 0xca0   : > { %3983 = vadd.xlane.f32.xlu1 %v3982_v17 }
 0xd23   : > { %v3975_v54 = vpop.xlane.xlu0 %3974 }
 0xd24   : > { %v3985_v36 = vmul.f32 0.00390625, %v3975_v54 }
 0xd25   : > { %v3978_v19 = vpop.xlane.xlu1 %3977 }
 0xd26   : > { %v3989_v58 = vsub.f32 %v3963_v2, %v3985_v36  ;;  %v3990_v57 = vsub.f32 %v3964_v29, %v3985_v36  ;;  %v3986_v5 = vmul.f32 0.00390625, %v3978_v19  ;;  %v3971_v2 = vld [vmem:[%s1008_s1] sm:$0x3] }
 0xd27   : > { %v3972_v29 = vld [vmem:[%s5950_s9] sm:$0x3] }
 0xd28   : > { %v3991_v35 = vsub.f32 %v3965_v3, %v3986_v5  ;;  %v3992_v21 = vsub.f32 %v3966_v40, %v3986_v5  ;;  %v3997_v23 = vmul.f32 %v3989_v58, %v3989_v58  ;;  %v3998_v62 = vmul.f32 %v3990_v57, %v3990_v57 }
 0xd29   : > { %v4041_v3 = vrot.slane %v3971_v2, %v6057_v46  ;;  %v4045_v40 = vrot.slane %v3971_v2, %v6065_v45  ;;  %v4060_v20 = vrot.slane %v3972_v29, %v6057_v46  ;;  %v4064_v32 = vrot.slane %v3972_v29, %v6065_v45 }
 0xd2a   : > { %v4005_v56 = vadd.f32 %v3998_v62, %v3997_v23  ;;  %v3999_v15 = vmul.f32 %v3991_v35, %v3991_v35  ;;  %v4000_v4 = vmul.f32 %v3992_v21, %v3992_v21 }
 0xd2b   : > { %v3981_v33 = vpop.xlane.xlu0 %3980 }
 0xd2c   : > { %v3987_v6 = vmul.f32 0.00390625, %v3981_v33  ;;  %4006 = vadd.xlane.f32.xlu0 %v4005_v56  ;;  %v4008_v59 = vadd.f32 %v4000_v4, %v3999_v15  ;;  %v5557_v4 = vmov (!%p4731_p11), 1966171168  }
 0xd2d   : > { %v3984_v8 = vpop.xlane.xlu1 %3983  ;;  %v4093_v33 = vunpack.c.l.s4 (!%p4731_p11), %v5557_v4 }
 0xd2e   : > { %v3993_v14 = vsub.f32 %v3967_v12, %v3987_v6  ;;  %v3994_v22 = vsub.f32 %v3968_v37, %v3987_v6  ;;  %v3988_v27 = vmul.f32 0.00390625, %v3984_v8  ;;  %4009 = vadd.xlane.f32.xlu1 %v4008_v59 }
 0xd2f   : > { %v4094_v59 = vunpack.c.0.s8 (!%p4731_p11), %v4093_v33 }
 0xd30   : > { %v3995_v24 = vsub.f32 %v3969_v39, %v3988_v27  ;;  %v3996_v51 = vsub.f32 %v3970_v10, %v3988_v27  ;;  %v4001_v34 = vmul.f32 %v3993_v14, %v3993_v14  ;;  %v4002_v52 = vmul.f32 %v3994_v22, %v3994_v22 }
 0xd32   : > { %v4011_v18 = vadd.f32 %v4002_v52, %v4001_v34  ;;  %v4003_v26 = vmul.f32 %v3995_v24, %v3995_v24  ;;  %v4004_v0 = vmul.f32 %v3996_v51, %v3996_v51 }
 0xd34   : > { %4012 = vadd.xlane.f32.xlu0 %v4011_v18  ;;  %v4014_v7 = vadd.f32 %v4004_v0, %v4003_v26 }
 0xd36   : > { %4015 = vadd.xlane.f32.xlu1 %v4014_v7 }
 0xdb9   : > { %v4007_v13 = vpop.xlane.xlu0 %4006 }
 0xdba   : > { %v4017_v55 = vmul.f32 0.00390625, %v4007_v13 }
 0xdbb   : > { %v4010_v61 = vpop.xlane.xlu1 %4009 }
 0xdbc   : > { %v4021_v25 = vadd.f32 1e-05, %v4017_v55  ;;  %v4018_v30 = vmul.f32 0.00390625, %v4010_v61 }
 0xdbe   : > { %5372 = vrsqrt.f32 %v4021_v25  ;;  %v4022_v9 = vadd.f32 1e-05, %v4018_v30 }
 0xdc0   : > { %5374 = vrsqrt.f32 %v4022_v9 }
 0xdc1   : > { %v4013_v63 = vpop.xlane.xlu0 %4012 }
 0xdc2   : > { %v4019_v11 = vmul.f32 0.00390625, %v4013_v63 }
 0xdc3   : > { %v4016_v60 = vpop.xlane.xlu1 %4015 }
 0xdc4   : > { %v4023_v31 = vadd.f32 1e-05, %v4019_v11  ;;  %v4020_v28 = vmul.f32 0.00390625, %v4016_v60 }
 0xdc6   : > { %5376 = vrsqrt.f32 %v4023_v31  ;;  %v4024_v38 = vadd.f32 1e-05, %v4020_v28 }
 0xdc8   : > { %v5373_v49 = vpop.eup %5372  ;;  %5378 = vrsqrt.f32 %v4024_v38 }
 0xdc9   : > { %v4029_v42 = vmul.f32 %v5373_v49, %v3989_v58  ;;  %v4030_v41 = vmul.f32 %v5373_v49, %v3990_v57 }
 0xdca   : > { %v5375_v48 = vpop.eup %5374 }
 0xdcb   : > { %v4048_v47 = vmul.f32 %v4041_v3, %v4029_v42  ;;  %v4049_v12 = vmul.f32 %v4045_v40, %v4030_v41  ;;  %v4031_v50 = vmul.f32 %v5375_v48, %v3991_v35  ;;  %v4032_v53 = vmul.f32 %v5375_v48, %v3992_v21 }
 0xdcd   : > { %v4067_v37 = vadd.f32 %v4060_v20, %v4048_v47  ;;  %v4068_v1 = vadd.f32 %v4064_v32, %v4049_v12  ;;  %v4050_v39 = vmul.f32 %v4041_v3, %v4031_v50  ;;  %v4051_v10 = vmul.f32 %v4045_v40, %v4032_v53 }
 0xdcf   : > { %4075 = vst [vmem:[#allocation2] sm:$0xff] %v4067_v37  ;;  %4076 = vst [vmem:[#allocation2 + $0x8] sm:$0xff] %v4068_v1  ;;  %v4069_v16 = vadd.f32 %v4060_v20, %v4050_v39  ;;  %v4070_v17 = vadd.f32 %v4064_v32, %v4051_v10  ;;  %v4091_v6 = vcombine.low (!%p4731_p11), %v4067_v37, %v4068_v1 }
 0xdd0   : > { %v5377_v54 = vpop.eup %5376 }
 0xdd1   : > { %4077 = vst [vmem:[#allocation2 + $0x10] sm:$0xff] %v4069_v16  ;;  %4078 = vst [vmem:[#allocation2 + $0x18] sm:$0xff] %v4070_v17  ;;  %v4033_v46 = vmul.f32 %v5377_v54, %v3993_v14  ;;  %v4034_v45 = vmul.f32 %v5377_v54, %v3994_v22  ;;  %v4097_v14 = vsub.s32 (!%p4731_p11), %v4094_v59, %v6054_v44 }
 0xdd2   : > { %v5379_v36 = vpop.eup %5378 }
 0xdd3   : > { %v4052_v19 = vmul.f32 %v4041_v3, %v4033_v46  ;;  %v4053_v58 = vmul.f32 %v4045_v40, %v4034_v45  ;;  %v4035_v57 = vmul.f32 %v5379_v36, %v3995_v24  ;;  %v4036_v5 = vmul.f32 %v5379_v36, %v3996_v51  ;;  %4086 = sbr.rel (%p4731_p11) target bundleno = 3550 (0xdde), region = 120 }
 0xdd4   : > { %v4098_v22 = vrot.slane (!%p4731_p11), %v4091_v6, %v4097_v14 }
 0xdd5   : > { %v4071_v35 = vadd.f32 %v4060_v20, %v4052_v19  ;;  %v4072_v21 = vadd.f32 %v4064_v32, %v4053_v58  ;;  %v4054_v23 = vmul.f32 %v4041_v3, %v4035_v57  ;;  %v4055_v62 = vmul.f32 %v4045_v40, %v4036_v5 }
 0xdd6   : > { %v4105_v24 = vrot.slane (!%p4731_p11), %v4098_v22, %v4097_v14 }
 0xdd7   : > { %4079 = vst [vmem:[#allocation2 + $0x20] sm:$0xff] %v4071_v35  ;;  %4080 = vst [vmem:[#allocation2 + $0x28] sm:$0xff] %v4072_v21  ;;  %v4073_v56 = vadd.f32 %v4060_v20, %v4054_v23  ;;  %v4074_v15 = vadd.f32 %v4064_v32, %v4055_v62  ;;  %v4106_v8 = vcombine.low (!%p4731_p11), %v4071_v35, %v4072_v21 }
 0xdd8   : > { %4127 = vst.msk [vmem:[%s5948_s19] sm:$0x3] (!%p4731_p11), %vm4125_vm2, %v4105_v24 }
 0xdd9   : > { %4081 = vst [vmem:[#allocation2 + $0x30] sm:$0xff] %v4073_v56  ;;  %4082 = vst [vmem:[#allocation2 + $0x38] sm:$0xff] %v4074_v15  ;;  %v4113_v27 = vrot.slane (!%p4731_p11), %v4106_v8, %v4097_v14 }
 0xddb   : > { %v4120_v51 = vrot.slane %v4113_v27, %v4097_v14 }
 0xddd   : > { %4128 = vst.msk [vmem:[%s5948_s19 + $0x2] sm:$0x3] %vm4125_vm2, %v4120_v51 }
 0xdde PF: > { %s6838_s24 = sld [smem:[#allocation15_spill]]  ;;  %s6839_s1 = sld [smem:[#allocation11_spill]] }
 0xddf   : > { %s6840_s22 = sld [smem:[#allocation12_spill]]  ;;  %s6841_s23 = sld [smem:[#allocation18_spill]] }
 0xde0   : > { %s6843_s2 = sld [smem:[#allocation14_spill]]  ;;  %s6844_s25 = sld [smem:[#allocation16_spill]] }
 0xde1   : > { %s6845_s3 = sld [smem:[#allocation17_spill]] }
 0xde4   : > { %s36_s26 = sadd.s32 1, %s6838_s24   ;;  %s6842_s24 = sld [smem:[#allocation13_spill]] }
 0xde5   : > { %p33_p4 = scmp.ge.s32.totalorder %s36_s26, 6  }
 0xde7   :  { %35 = sbr.rel (!%p33_p4) target bundleno = 27 (0x1b), region = 217 }
 0xdee   :  { %4151 = vsyncpa [#allocation5], 1 }
 0xdef   :  { %4153 = vsyncpa [#allocation5 + $0x1], 1 }
 0xdf0   :  { %4154 = vsyncpa [#allocation7], 1 }
 0xdf1   :  { %4156 = vsyncpa [#allocation7 + $0x1], 1 }

</bundles_post_ra>
